<compile_context>
chip_gen: v7x
topology: tpu7x:2x2x1
jax: 0.10.0
libtpu: 0.0.40
codegen_flags: <defaults>
</compile_context>

<pallas_src>
import functools
import math

import jax
import jax.numpy as jnp
from jax import lax
from jax.experimental import pallas as pl
from jax.experimental.pallas import tpu as pltpu

# ---------------- config (small synthetic sizes) ----------------
D_MODEL = 32
NHEAD = 4
DIM_FF = 64
NUM_LAYERS = 2
EPS = 1e-5


def _layer_norm(x, g, b):
    mean = jnp.mean(x, axis=-1, keepdims=True)
    var = jnp.mean((x - mean) ** 2, axis=-1, keepdims=True)
    return (x - mean) * lax.rsqrt(var + EPS) * g + b


# ---------------- fused Pallas kernel ----------------
def fused_encoder_kernel(src_ref, pos_ref, wqk_ref, wv_ref, wo_ref, w1_ref,
                         w2_ref, bvec_ref, b1_ref, *rest,
                         num_layers, has_final_norm):
    # src_ref / pos_ref / out_ref are (L, C) tiles for one batch element.
    if has_final_norm:
        fnorm_ref, out_ref = rest
    else:
        (out_ref,) = rest

    C = D_MODEL
    hd = C // NHEAD

    x = src_ref[...]          # (L, C) f32 tokens; stay resident across all layers
    p = pos_ref[...]

    for li in range(num_layers):
        w_qk = wqk_ref[li]    # (C, 2C) bf16; q columns pre-scaled by 1/sqrt(hd)
        w_v = wv_ref[li]      # (C, C)  bf16
        w_o = wo_ref[li]      # (C, C)  bf16
        w1 = w1_ref[li]       # (C, FF) bf16
        w2 = w2_ref[li]       # (FF, C) bf16
        bias = bvec_ref[li]   # (9, C)  f32: bq*scale, bk, bv, bo, b2, g1, c1, g2, c2
        bf1 = b1_ref[li]      # (1, FF) f32

        # ----- fused, lane-dense projections (bf16 MXU inputs, f32 accumulate) -----
        qk_in = (x + p).astype(jnp.bfloat16)
        qk = jnp.dot(qk_in, w_qk, preferred_element_type=jnp.float32)           # (L, 2C)
        v = jnp.dot(x.astype(jnp.bfloat16), w_v,
                    preferred_element_type=jnp.float32)                         # (L, C)
        q = qk[:, :C] + bias[0, :]     # 1/sqrt(hd) already folded into w_qk / bias[0]
        k = qk[:, C:] + bias[1, :]
        v = v + bias[2, :]

        # ----- per-head attention on lane slices (no activation reshape/transpose) -----
        heads = []
        for h in range(NHEAD):
            qh = q[:, h * hd:(h + 1) * hd].astype(jnp.bfloat16)
            kh = k[:, h * hd:(h + 1) * hd].astype(jnp.bfloat16)
            vh = v[:, h * hd:(h + 1) * hd].astype(jnp.bfloat16)
            s = lax.dot_general(qh, kh, (((1,), (1,)), ((), ())),
                                preferred_element_type=jnp.float32)             # (L, L)
            s = s - jnp.max(s, axis=-1, keepdims=True)
            e = jnp.exp(s)
            a = e * pl.reciprocal(jnp.sum(e, axis=-1, keepdims=True), approx=True)
            heads.append(jnp.dot(a.astype(jnp.bfloat16), vh,
                                 preferred_element_type=jnp.float32))           # (L, hd)

        # concat heads -> single K=C output projection
        oh = jnp.concatenate(heads, axis=-1).astype(jnp.bfloat16)               # (L, C)
        attn = jnp.dot(oh, w_o, preferred_element_type=jnp.float32) + bias[3, :]

        # ----- residual + norm1 -----
        x1 = _layer_norm(x + attn, bias[5, :], bias[6, :])

        # ----- FFN: linear2(relu(linear1(x))) -----
        h1 = jnp.maximum(
            jnp.dot(x1.astype(jnp.bfloat16), w1,
                    preferred_element_type=jnp.float32) + bf1[0, :], 0.0)
        h2 = jnp.dot(h1.astype(jnp.bfloat16), w2,
                     preferred_element_type=jnp.float32) + bias[4, :]

        # ----- residual + norm2 -----
        x = _layer_norm(x1 + h2, bias[7, :], bias[8, :])

    if has_final_norm:
        x = _layer_norm(x, fnorm_ref[0, :], fnorm_ref[1, :])

    out_ref[...] = x


# ---------------- host-side weight packing (pre-transposed, stacked, bf16) ----------------
def _prepare_stacked_params(layer_params):
    """PyTorch-convention per-layer params -> 7 stacked kernel-friendly arrays."""
    C = D_MODEL
    hd = C // NHEAD
    scale = 1.0 / math.sqrt(hd)

    wqk, wv, wo, w1, w2, bvec, b1 = [], [], [], [], [], [], []
    for (in_w, in_b, out_w, out_b, l1w, l1b, l2w, l2b,
         n1g, n1b, n2g, n2b) in layer_params:
        Wq, Wk, Wv = in_w[:C], in_w[C:2 * C], in_w[2 * C:]       # (C_out, C_in)
        bq, bk, bv_ = in_b[:C], in_b[C:2 * C], in_b[2 * C:]
        wqk.append(jnp.concatenate([Wq.T * scale, Wk.T], axis=1))   # (C, 2C), q pre-scaled
        wv.append(Wv.T)                                             # (C, C)
        wo.append(out_w.T)                                          # (C, C)
        w1.append(l1w.T)                                            # (C, FF)
        w2.append(l2w.T)                                            # (FF, C)
        bvec.append(jnp.stack([bq * scale, bk, bv_, out_b, l2b,
                               n1g, n1b, n2g, n2b], axis=0))        # (9, C) f32
        b1.append(l1b.reshape(1, DIM_FF))                           # (1, FF) f32

    stack = lambda xs, dt: jnp.stack(xs).astype(dt)
    return (stack(wqk, jnp.bfloat16), stack(wv, jnp.bfloat16),
            stack(wo, jnp.bfloat16), stack(w1, jnp.bfloat16),
            stack(w2, jnp.bfloat16), stack(bvec, jnp.float32),
            stack(b1, jnp.float32))


# ---------------- wrapper ----------------
def transformer_fusion_encoder(src_temp, src_search, pos_src1, pos_src2,
                               layer_params, norm_params=None):
    B, C, H_t, W_t = src_temp.shape

    def to_tokens(z):  # NCHW -> (B, HW, C)
        b, c, h, w = z.shape
        return jnp.transpose(z.reshape(b, c, h * w), (0, 2, 1))

    # Each PyTorch iteration splits/reshapes back to NCHW and re-flattens next layer,
    # which is the identity on the token representation, so we iterate on tokens.
    tokens = jnp.concatenate([to_tokens(src_temp), to_tokens(src_search)], axis=1)
    pos = jnp.concatenate([to_tokens(pos_src1), to_tokens(pos_src2)], axis=1)
    L = tokens.shape[1]

    weights = list(_prepare_stacked_params(layer_params))
    has_norm = norm_params is not None
    if has_norm:
        weights.append(jnp.stack([norm_params[0], norm_params[1]]).astype(jnp.float32))

    tok_spec = pl.BlockSpec((None, L, C), lambda b: (b, 0, 0))

    def wspec(w):   # full-array weight block, same block for every batch step (no re-DMA)
        return pl.BlockSpec(w.shape, lambda b, nd=w.ndim: (0,) * nd)

    kernel = functools.partial(fused_encoder_kernel,
                               num_layers=len(layer_params),
                               has_final_norm=has_norm)

    out = pl.pallas_call(
        kernel,
        out_shape=jax.ShapeDtypeStruct((B, L, C), jnp.float32),
        grid=(B,),
        in_specs=[tok_spec, tok_spec] + [wspec(w) for w in weights],
        out_specs=tok_spec,
        compiler_params=pltpu.CompilerParams(dimension_semantics=("parallel",)),
    )(tokens, pos, *weights)

    # back to PyTorch (L, B, C) output convention
    return jnp.transpose(out, (1, 0, 2))


# ---------------- deterministic parameter init (PyTorch-convention shapes) ----------------
def init_layer_params(key, d_model, dim_ff):
    ks = jax.random.split(key, 8)
    sc = 0.02
    in_proj_w = sc * jax.random.normal(ks[0], (3 * d_model, d_model), jnp.float32)
    in_proj_b = sc * jax.random.normal(ks[1], (3 * d_model,), jnp.float32)
    out_proj_w = sc * jax.random.normal(ks[2], (d_model, d_model), jnp.float32)
    out_proj_b = sc * jax.random.normal(ks[3], (d_model,), jnp.float32)
    lin1_w = sc * jax.random.normal(ks[4], (dim_ff, d_model), jnp.float32)
    lin1_b = sc * jax.random.normal(ks[5], (dim_ff,), jnp.float32)
    lin2_w = sc * jax.random.normal(ks[6], (d_model, dim_ff), jnp.float32)
    lin2_b = sc * jax.random.normal(ks[7], (d_model,), jnp.float32)
    n1_g = jnp.ones((d_model,), jnp.float32)
    n1_b = jnp.zeros((d_model,), jnp.float32)
    n2_g = jnp.ones((d_model,), jnp.float32)
    n2_b = jnp.zeros((d_model,), jnp.float32)
    return (in_proj_w, in_proj_b, out_proj_w, out_proj_b,
            lin1_w, lin1_b, lin2_w, lin2_b,
            n1_g, n1_b, n2_g, n2_b)


if __name__ == "__main__":
    key = jax.random.PRNGKey(0)
    k_in, k_par = jax.random.split(key)

    B, C = 2, D_MODEL
    H_t = W_t = 4
    H_s = W_s = 4

    k1, k2, k3, k4 = jax.random.split(k_in, 4)
    src_temp = jax.random.normal(k1, (B, C, H_t, W_t), jnp.float32)
    src_search = jax.random.normal(k2, (B, C, H_s, W_s), jnp.float32)
    pos_src1 = jax.random.normal(k3, (B, C, H_t, W_t), jnp.float32)
    pos_src2 = jax.random.normal(k4, (B, C, H_s, W_s), jnp.float32)

    layer_keys = jax.random.split(k_par, NUM_LAYERS)
    layer_params = [init_layer_params(lk, D_MODEL, DIM_FF) for lk in layer_keys]
    norm_params = (jnp.ones((D_MODEL,), jnp.float32),
                   jnp.zeros((D_MODEL,), jnp.float32))

    out = transformer_fusion_encoder(src_temp, src_search, pos_src1, pos_src2,
                                     layer_params, norm_params)
    out = jax.block_until_ready(out)
    assert out.shape == (H_t * W_t + H_s * W_s, B, C)
    assert bool(jnp.all(jnp.isfinite(out)))
    print("KERNEL_OK")
</pallas_src>

<mosaic_0001>
module attributes {stable_mosaic.version = 11 : i64} {
  func.func @fused_encoder_kernel(%arg0: i32, %arg1: memref<1x32x32xf32, #tpu.memory_space<vmem>>, %arg2: memref<1x32x32xf32, #tpu.memory_space<vmem>>, %arg3: memref<2x32x64xbf16, #tpu.memory_space<vmem>>, %arg4: memref<2x32x32xbf16, #tpu.memory_space<vmem>>, %arg5: memref<2x32x32xbf16, #tpu.memory_space<vmem>>, %arg6: memref<2x32x64xbf16, #tpu.memory_space<vmem>>, %arg7: memref<2x64x32xbf16, #tpu.memory_space<vmem>>, %arg8: memref<2x9x32xf32, #tpu.memory_space<vmem>>, %arg9: memref<2x1x64xf32, #tpu.memory_space<vmem>>, %arg10: memref<2x32xf32, #tpu.memory_space<vmem>>, %arg11: memref<1x32x32xf32, #tpu.memory_space<vmem>>) attributes {dimension_semantics = [#tpu.dimension_semantics<parallel>], iteration_bounds = array<i64: 2>, scalar_prefetch = 0 : i64, scratch_operands = 0 : i64, tpu.core_type = #tpu.core_type<tc>, window_params = [{transform_indices = @transform_0, window_bounds = array<i64: 1, 32, 32>}, {transform_indices = @transform_1, window_bounds = array<i64: 1, 32, 32>}, {pipeline_mode = #tpu.pipeline_mode<synchronous>, transform_indices = @transform_2, window_bounds = array<i64: 2, 32, 64>}, {pipeline_mode = #tpu.pipeline_mode<synchronous>, transform_indices = @transform_3, window_bounds = array<i64: 2, 32, 32>}, {pipeline_mode = #tpu.pipeline_mode<synchronous>, transform_indices = @transform_4, window_bounds = array<i64: 2, 32, 32>}, {pipeline_mode = #tpu.pipeline_mode<synchronous>, transform_indices = @transform_5, window_bounds = array<i64: 2, 32, 64>}, {pipeline_mode = #tpu.pipeline_mode<synchronous>, transform_indices = @transform_6, window_bounds = array<i64: 2, 64, 32>}, {pipeline_mode = #tpu.pipeline_mode<synchronous>, transform_indices = @transform_7, window_bounds = array<i64: 2, 9, 32>}, {pipeline_mode = #tpu.pipeline_mode<synchronous>, transform_indices = @transform_8, window_bounds = array<i64: 2, 1, 64>}, {pipeline_mode = #tpu.pipeline_mode<synchronous>, transform_indices = @transform_9, window_bounds = array<i64: 2, 32>}, {transform_indices = @transform_10, window_bounds = array<i64: 1, 32, 32>}]} {
    %c0 = arith.constant 0 : index
    %c0_0 = arith.constant 0 : index
    %c0_1 = arith.constant 0 : index
    %0 = vector.load %arg1[%c0, %c0_0, %c0_1] : memref<1x32x32xf32, #tpu.memory_space<vmem>>, vector<1x32x32xf32>
    %1 = vector.shape_cast %0 : vector<1x32x32xf32> to vector<32x32xf32>
    %c0_2 = arith.constant 0 : index
    %c0_3 = arith.constant 0 : index
    %c0_4 = arith.constant 0 : index
    %2 = vector.load %arg2[%c0_2, %c0_3, %c0_4] : memref<1x32x32xf32, #tpu.memory_space<vmem>>, vector<1x32x32xf32>
    %3 = vector.shape_cast %2 : vector<1x32x32xf32> to vector<32x32xf32>
    %c0_5 = arith.constant 0 : index
    %c0_6 = arith.constant 0 : index
    %c0_7 = arith.constant 0 : index
    %4 = vector.load %arg3[%c0_5, %c0_6, %c0_7] : memref<2x32x64xbf16, #tpu.memory_space<vmem>>, vector<1x32x64xbf16>
    %5 = vector.shape_cast %4 : vector<1x32x64xbf16> to vector<32x64xbf16>
    %c0_8 = arith.constant 0 : index
    %c0_9 = arith.constant 0 : index
    %c0_10 = arith.constant 0 : index
    %6 = vector.load %arg4[%c0_8, %c0_9, %c0_10] : memref<2x32x32xbf16, #tpu.memory_space<vmem>>, vector<1x32x32xbf16>
    %7 = vector.shape_cast %6 : vector<1x32x32xbf16> to vector<32x32xbf16>
    %c0_11 = arith.constant 0 : index
    %c0_12 = arith.constant 0 : index
    %c0_13 = arith.constant 0 : index
    %8 = vector.load %arg5[%c0_11, %c0_12, %c0_13] : memref<2x32x32xbf16, #tpu.memory_space<vmem>>, vector<1x32x32xbf16>
    %9 = vector.shape_cast %8 : vector<1x32x32xbf16> to vector<32x32xbf16>
    %c0_14 = arith.constant 0 : index
    %c0_15 = arith.constant 0 : index
    %c0_16 = arith.constant 0 : index
    %10 = vector.load %arg6[%c0_14, %c0_15, %c0_16] : memref<2x32x64xbf16, #tpu.memory_space<vmem>>, vector<1x32x64xbf16>
    %11 = vector.shape_cast %10 : vector<1x32x64xbf16> to vector<32x64xbf16>
    %c0_17 = arith.constant 0 : index
    %c0_18 = arith.constant 0 : index
    %c0_19 = arith.constant 0 : index
    %12 = vector.load %arg7[%c0_17, %c0_18, %c0_19] : memref<2x64x32xbf16, #tpu.memory_space<vmem>>, vector<1x64x32xbf16>
    %13 = vector.shape_cast %12 : vector<1x64x32xbf16> to vector<64x32xbf16>
    %c0_20 = arith.constant 0 : index
    %c0_21 = arith.constant 0 : index
    %c0_22 = arith.constant 0 : index
    %14 = vector.load %arg8[%c0_20, %c0_21, %c0_22] : memref<2x9x32xf32, #tpu.memory_space<vmem>>, vector<1x9x32xf32>
    %15 = vector.shape_cast %14 : vector<1x9x32xf32> to vector<9x32xf32>
    %c0_23 = arith.constant 0 : index
    %c0_24 = arith.constant 0 : index
    %c0_25 = arith.constant 0 : index
    %16 = vector.load %arg9[%c0_23, %c0_24, %c0_25] : memref<2x1x64xf32, #tpu.memory_space<vmem>>, vector<1x1x64xf32>
    %17 = vector.shape_cast %16 : vector<1x1x64xf32> to vector<1x64xf32>
    %18 = arith.addf %1, %3 : vector<32x32xf32>
    %19 = arith.truncf %18 : vector<32x32xf32> to vector<32x32xbf16>
    %cst = arith.constant dense<0.000000e+00> : vector<32x64xf32>
    %20 = tpu.matmul %19, %5, %cst {dimension_numbers = #tpu.dot_dimension_numbers<[1], [0], [0], [1], [0, 0, 1, 1], [], []>} : vector<32x32xbf16>, vector<32x64xbf16>, vector<32x64xf32> -> vector<32x64xf32>
    %21 = arith.truncf %1 : vector<32x32xf32> to vector<32x32xbf16>
    %cst_26 = arith.constant dense<0.000000e+00> : vector<32x32xf32>
    %22 = tpu.matmul %21, %7, %cst_26 {dimension_numbers = #tpu.dot_dimension_numbers<[1], [0], [0], [1], [0, 0, 1, 1], [], []>} : vector<32x32xbf16>, vector<32x32xbf16>, vector<32x32xf32> -> vector<32x32xf32>
    %23 = vector.extract_strided_slice %20 {offsets = [0, 0], sizes = [32, 32], strides = [1, 1]} : vector<32x64xf32> to vector<32x32xf32>
    %24 = vector.extract_strided_slice %15 {offsets = [0, 0], sizes = [1, 32], strides = [1, 1]} : vector<9x32xf32> to vector<1x32xf32>
    %25 = vector.shape_cast %24 : vector<1x32xf32> to vector<32xf32>
    %26 = vector.shape_cast %25 : vector<32xf32> to vector<1x32xf32>
    %27 = vector.broadcast %26 : vector<1x32xf32> to vector<32x32xf32>
    %28 = arith.addf %23, %27 : vector<32x32xf32>
    %29 = vector.extract_strided_slice %20 {offsets = [0, 32], sizes = [32, 32], strides = [1, 1]} : vector<32x64xf32> to vector<32x32xf32>
    %30 = vector.extract_strided_slice %15 {offsets = [1, 0], sizes = [1, 32], strides = [1, 1]} : vector<9x32xf32> to vector<1x32xf32>
    %31 = vector.shape_cast %30 : vector<1x32xf32> to vector<32xf32>
    %32 = vector.shape_cast %31 : vector<32xf32> to vector<1x32xf32>
    %33 = vector.broadcast %32 : vector<1x32xf32> to vector<32x32xf32>
    %34 = arith.addf %29, %33 : vector<32x32xf32>
    %35 = vector.extract_strided_slice %15 {offsets = [2, 0], sizes = [1, 32], strides = [1, 1]} : vector<9x32xf32> to vector<1x32xf32>
    %36 = vector.shape_cast %35 : vector<1x32xf32> to vector<32xf32>
    %37 = vector.shape_cast %36 : vector<32xf32> to vector<1x32xf32>
    %38 = vector.broadcast %37 : vector<1x32xf32> to vector<32x32xf32>
    %39 = arith.addf %22, %38 : vector<32x32xf32>
    %40 = vector.extract_strided_slice %28 {offsets = [0, 0], sizes = [32, 8], strides = [1, 1]} : vector<32x32xf32> to vector<32x8xf32>
    %41 = arith.truncf %40 : vector<32x8xf32> to vector<32x8xbf16>
    %42 = vector.extract_strided_slice %34 {offsets = [0, 0], sizes = [32, 8], strides = [1, 1]} : vector<32x32xf32> to vector<32x8xf32>
    %43 = arith.truncf %42 : vector<32x8xf32> to vector<32x8xbf16>
    %44 = vector.extract_strided_slice %39 {offsets = [0, 0], sizes = [32, 8], strides = [1, 1]} : vector<32x32xf32> to vector<32x8xf32>
    %45 = arith.truncf %44 : vector<32x8xf32> to vector<32x8xbf16>
    %cst_27 = arith.constant dense<0.000000e+00> : vector<32x32xf32>
    %46 = tpu.matmul %41, %43, %cst_27 {dimension_numbers = #tpu.dot_dimension_numbers<[1], [1], [0], [0], [0, 0, 1, 0], [], []>} : vector<32x8xbf16>, vector<32x8xbf16>, vector<32x32xf32> -> vector<32x32xf32>
    %cst_28 = arith.constant dense<0xFF800000> : vector<32xf32>
    %47 = vector.multi_reduction <maximumf>, %46, %cst_28 [1] : vector<32x32xf32> to vector<32xf32>
    %48 = vector.shape_cast %47 : vector<32xf32> to vector<32x1xf32>
    %49 = vector.broadcast %48 : vector<32x1xf32> to vector<32x32xf32>
    %50 = arith.subf %46, %49 : vector<32x32xf32>
    %51 = math.exp %50 : vector<32x32xf32>
    %cst_29 = arith.constant dense<0.000000e+00> : vector<32xf32>
    %52 = vector.multi_reduction <add>, %51, %cst_29 [1] : vector<32x32xf32> to vector<32xf32>
    %53 = vector.shape_cast %52 : vector<32xf32> to vector<32x1xf32>
    %54 = tpu.reciprocal %53 {approx = true} : vector<32x1xf32> -> vector<32x1xf32>
    %55 = vector.broadcast %54 : vector<32x1xf32> to vector<32x32xf32>
    %56 = arith.mulf %51, %55 : vector<32x32xf32>
    %57 = arith.truncf %56 : vector<32x32xf32> to vector<32x32xbf16>
    %cst_30 = arith.constant dense<0.000000e+00> : vector<32x8xf32>
    %58 = tpu.matmul %57, %45, %cst_30 {dimension_numbers = #tpu.dot_dimension_numbers<[1], [0], [0], [1], [0, 0, 1, 1], [], []>} : vector<32x32xbf16>, vector<32x8xbf16>, vector<32x8xf32> -> vector<32x8xf32>
    %59 = vector.extract_strided_slice %28 {offsets = [0, 8], sizes = [32, 8], strides = [1, 1]} : vector<32x32xf32> to vector<32x8xf32>
    %60 = arith.truncf %59 : vector<32x8xf32> to vector<32x8xbf16>
    %61 = vector.extract_strided_slice %34 {offsets = [0, 8], sizes = [32, 8], strides = [1, 1]} : vector<32x32xf32> to vector<32x8xf32>
    %62 = arith.truncf %61 : vector<32x8xf32> to vector<32x8xbf16>
    %63 = vector.extract_strided_slice %39 {offsets = [0, 8], sizes = [32, 8], strides = [1, 1]} : vector<32x32xf32> to vector<32x8xf32>
    %64 = arith.truncf %63 : vector<32x8xf32> to vector<32x8xbf16>
    %cst_31 = arith.constant dense<0.000000e+00> : vector<32x32xf32>
    %65 = tpu.matmul %60, %62, %cst_31 {dimension_numbers = #tpu.dot_dimension_numbers<[1], [1], [0], [0], [0, 0, 1, 0], [], []>} : vector<32x8xbf16>, vector<32x8xbf16>, vector<32x32xf32> -> vector<32x32xf32>
    %cst_32 = arith.constant dense<0xFF800000> : vector<32xf32>
    %66 = vector.multi_reduction <maximumf>, %65, %cst_32 [1] : vector<32x32xf32> to vector<32xf32>
    %67 = vector.shape_cast %66 : vector<32xf32> to vector<32x1xf32>
    %68 = vector.broadcast %67 : vector<32x1xf32> to vector<32x32xf32>
    %69 = arith.subf %65, %68 : vector<32x32xf32>
    %70 = math.exp %69 : vector<32x32xf32>
    %cst_33 = arith.constant dense<0.000000e+00> : vector<32xf32>
    %71 = vector.multi_reduction <add>, %70, %cst_33 [1] : vector<32x32xf32> to vector<32xf32>
    %72 = vector.shape_cast %71 : vector<32xf32> to vector<32x1xf32>
    %73 = tpu.reciprocal %72 {approx = true} : vector<32x1xf32> -> vector<32x1xf32>
    %74 = vector.broadcast %73 : vector<32x1xf32> to vector<32x32xf32>
    %75 = arith.mulf %70, %74 : vector<32x32xf32>
    %76 = arith.truncf %75 : vector<32x32xf32> to vector<32x32xbf16>
    %cst_34 = arith.constant dense<0.000000e+00> : vector<32x8xf32>
    %77 = tpu.matmul %76, %64, %cst_34 {dimension_numbers = #tpu.dot_dimension_numbers<[1], [0], [0], [1], [0, 0, 1, 1], [], []>} : vector<32x32xbf16>, vector<32x8xbf16>, vector<32x8xf32> -> vector<32x8xf32>
    %78 = vector.extract_strided_slice %28 {offsets = [0, 16], sizes = [32, 8], strides = [1, 1]} : vector<32x32xf32> to vector<32x8xf32>
    %79 = arith.truncf %78 : vector<32x8xf32> to vector<32x8xbf16>
    %80 = vector.extract_strided_slice %34 {offsets = [0, 16], sizes = [32, 8], strides = [1, 1]} : vector<32x32xf32> to vector<32x8xf32>
    %81 = arith.truncf %80 : vector<32x8xf32> to vector<32x8xbf16>
    %82 = vector.extract_strided_slice %39 {offsets = [0, 16], sizes = [32, 8], strides = [1, 1]} : vector<32x32xf32> to vector<32x8xf32>
    %83 = arith.truncf %82 : vector<32x8xf32> to vector<32x8xbf16>
    %cst_35 = arith.constant dense<0.000000e+00> : vector<32x32xf32>
    %84 = tpu.matmul %79, %81, %cst_35 {dimension_numbers = #tpu.dot_dimension_numbers<[1], [1], [0], [0], [0, 0, 1, 0], [], []>} : vector<32x8xbf16>, vector<32x8xbf16>, vector<32x32xf32> -> vector<32x32xf32>
    %cst_36 = arith.constant dense<0xFF800000> : vector<32xf32>
    %85 = vector.multi_reduction <maximumf>, %84, %cst_36 [1] : vector<32x32xf32> to vector<32xf32>
    %86 = vector.shape_cast %85 : vector<32xf32> to vector<32x1xf32>
    %87 = vector.broadcast %86 : vector<32x1xf32> to vector<32x32xf32>
    %88 = arith.subf %84, %87 : vector<32x32xf32>
    %89 = math.exp %88 : vector<32x32xf32>
    %cst_37 = arith.constant dense<0.000000e+00> : vector<32xf32>
    %90 = vector.multi_reduction <add>, %89, %cst_37 [1] : vector<32x32xf32> to vector<32xf32>
    %91 = vector.shape_cast %90 : vector<32xf32> to vector<32x1xf32>
    %92 = tpu.reciprocal %91 {approx = true} : vector<32x1xf32> -> vector<32x1xf32>
    %93 = vector.broadcast %92 : vector<32x1xf32> to vector<32x32xf32>
    %94 = arith.mulf %89, %93 : vector<32x32xf32>
    %95 = arith.truncf %94 : vector<32x32xf32> to vector<32x32xbf16>
    %cst_38 = arith.constant dense<0.000000e+00> : vector<32x8xf32>
    %96 = tpu.matmul %95, %83, %cst_38 {dimension_numbers = #tpu.dot_dimension_numbers<[1], [0], [0], [1], [0, 0, 1, 1], [], []>} : vector<32x32xbf16>, vector<32x8xbf16>, vector<32x8xf32> -> vector<32x8xf32>
    %97 = vector.extract_strided_slice %28 {offsets = [0, 24], sizes = [32, 8], strides = [1, 1]} : vector<32x32xf32> to vector<32x8xf32>
    %98 = arith.truncf %97 : vector<32x8xf32> to vector<32x8xbf16>
    %99 = vector.extract_strided_slice %34 {offsets = [0, 24], sizes = [32, 8], strides = [1, 1]} : vector<32x32xf32> to vector<32x8xf32>
    %100 = arith.truncf %99 : vector<32x8xf32> to vector<32x8xbf16>
    %101 = vector.extract_strided_slice %39 {offsets = [0, 24], sizes = [32, 8], strides = [1, 1]} : vector<32x32xf32> to vector<32x8xf32>
    %102 = arith.truncf %101 : vector<32x8xf32> to vector<32x8xbf16>
    %cst_39 = arith.constant dense<0.000000e+00> : vector<32x32xf32>
    %103 = tpu.matmul %98, %100, %cst_39 {dimension_numbers = #tpu.dot_dimension_numbers<[1], [1], [0], [0], [0, 0, 1, 0], [], []>} : vector<32x8xbf16>, vector<32x8xbf16>, vector<32x32xf32> -> vector<32x32xf32>
    %cst_40 = arith.constant dense<0xFF800000> : vector<32xf32>
    %104 = vector.multi_reduction <maximumf>, %103, %cst_40 [1] : vector<32x32xf32> to vector<32xf32>
    %105 = vector.shape_cast %104 : vector<32xf32> to vector<32x1xf32>
    %106 = vector.broadcast %105 : vector<32x1xf32> to vector<32x32xf32>
    %107 = arith.subf %103, %106 : vector<32x32xf32>
    %108 = math.exp %107 : vector<32x32xf32>
    %cst_41 = arith.constant dense<0.000000e+00> : vector<32xf32>
    %109 = vector.multi_reduction <add>, %108, %cst_41 [1] : vector<32x32xf32> to vector<32xf32>
    %110 = vector.shape_cast %109 : vector<32xf32> to vector<32x1xf32>
    %111 = tpu.reciprocal %110 {approx = true} : vector<32x1xf32> -> vector<32x1xf32>
    %112 = vector.broadcast %111 : vector<32x1xf32> to vector<32x32xf32>
    %113 = arith.mulf %108, %112 : vector<32x32xf32>
    %114 = arith.truncf %113 : vector<32x32xf32> to vector<32x32xbf16>
    %cst_42 = arith.constant dense<0.000000e+00> : vector<32x8xf32>
    %115 = tpu.matmul %114, %102, %cst_42 {dimension_numbers = #tpu.dot_dimension_numbers<[1], [0], [0], [1], [0, 0, 1, 1], [], []>} : vector<32x32xbf16>, vector<32x8xbf16>, vector<32x8xf32> -> vector<32x8xf32>
    %116 = tpu.concatenate %58, %77, %96, %115 in 1 : vector<32x8xf32>, vector<32x8xf32>, vector<32x8xf32>, vector<32x8xf32> -> vector<32x32xf32>
    %117 = arith.truncf %116 : vector<32x32xf32> to vector<32x32xbf16>
    %cst_43 = arith.constant dense<0.000000e+00> : vector<32x32xf32>
    %118 = tpu.matmul %117, %9, %cst_43 {dimension_numbers = #tpu.dot_dimension_numbers<[1], [0], [0], [1], [0, 0, 1, 1], [], []>} : vector<32x32xbf16>, vector<32x32xbf16>, vector<32x32xf32> -> vector<32x32xf32>
    %119 = vector.extract_strided_slice %15 {offsets = [3, 0], sizes = [1, 32], strides = [1, 1]} : vector<9x32xf32> to vector<1x32xf32>
    %120 = vector.shape_cast %119 : vector<1x32xf32> to vector<32xf32>
    %121 = vector.shape_cast %120 : vector<32xf32> to vector<1x32xf32>
    %122 = vector.broadcast %121 : vector<1x32xf32> to vector<32x32xf32>
    %123 = arith.addf %118, %122 : vector<32x32xf32>
    %124 = arith.addf %1, %123 : vector<32x32xf32>
    %125 = vector.extract_strided_slice %15 {offsets = [5, 0], sizes = [1, 32], strides = [1, 1]} : vector<9x32xf32> to vector<1x32xf32>
    %126 = vector.shape_cast %125 : vector<1x32xf32> to vector<32xf32>
    %127 = vector.extract_strided_slice %15 {offsets = [6, 0], sizes = [1, 32], strides = [1, 1]} : vector<9x32xf32> to vector<1x32xf32>
    %128 = vector.shape_cast %127 : vector<1x32xf32> to vector<32xf32>
    %cst_44 = arith.constant dense<0.000000e+00> : vector<32xf32>
    %129 = vector.multi_reduction <add>, %124, %cst_44 [1] : vector<32x32xf32> to vector<32xf32>
    %130 = vector.shape_cast %129 : vector<32xf32> to vector<32x1xf32>
    %cst_45 = arith.constant 3.200000e+01 : f32
    %131 = vector.broadcast %cst_45 : f32 to vector<32x1xf32>
    %132 = arith.divf %130, %131 : vector<32x1xf32>
    %133 = vector.broadcast %132 : vector<32x1xf32> to vector<32x32xf32>
    %134 = arith.subf %124, %133 : vector<32x32xf32>
    %135 = arith.mulf %134, %134 : vector<32x32xf32>
    %cst_46 = arith.constant dense<0.000000e+00> : vector<32xf32>
    %136 = vector.multi_reduction <add>, %135, %cst_46 [1] : vector<32x32xf32> to vector<32xf32>
    %137 = vector.shape_cast %136 : vector<32xf32> to vector<32x1xf32>
    %cst_47 = arith.constant 3.200000e+01 : f32
    %138 = vector.broadcast %cst_47 : f32 to vector<32x1xf32>
    %139 = arith.divf %137, %138 : vector<32x1xf32>
    %140 = vector.broadcast %132 : vector<32x1xf32> to vector<32x32xf32>
    %141 = arith.subf %124, %140 : vector<32x32xf32>
    %cst_48 = arith.constant 9.99999974E-6 : f32
    %142 = vector.broadcast %cst_48 : f32 to vector<32x1xf32>
    %143 = arith.addf %139, %142 : vector<32x1xf32>
    %144 = math.rsqrt %143 : vector<32x1xf32>
    %145 = vector.broadcast %144 : vector<32x1xf32> to vector<32x32xf32>
    %146 = arith.mulf %141, %145 : vector<32x32xf32>
    %147 = vector.shape_cast %126 : vector<32xf32> to vector<1x32xf32>
    %148 = vector.broadcast %147 : vector<1x32xf32> to vector<32x32xf32>
    %149 = arith.mulf %146, %148 : vector<32x32xf32>
    %150 = vector.shape_cast %128 : vector<32xf32> to vector<1x32xf32>
    %151 = vector.broadcast %150 : vector<1x32xf32> to vector<32x32xf32>
    %152 = arith.addf %149, %151 : vector<32x32xf32>
    %153 = arith.truncf %152 : vector<32x32xf32> to vector<32x32xbf16>
    %cst_49 = arith.constant dense<0.000000e+00> : vector<32x64xf32>
    %154 = tpu.matmul %153, %11, %cst_49 {dimension_numbers = #tpu.dot_dimension_numbers<[1], [0], [0], [1], [0, 0, 1, 1], [], []>} : vector<32x32xbf16>, vector<32x64xbf16>, vector<32x64xf32> -> vector<32x64xf32>
    %155 = vector.shape_cast %17 : vector<1x64xf32> to vector<64xf32>
    %156 = vector.shape_cast %155 : vector<64xf32> to vector<1x64xf32>
    %157 = vector.broadcast %156 : vector<1x64xf32> to vector<32x64xf32>
    %158 = arith.addf %154, %157 : vector<32x64xf32>
    %cst_50 = arith.constant 0.000000e+00 : f32
    %159 = vector.broadcast %cst_50 : f32 to vector<32x64xf32>
    %160 = arith.maximumf %158, %159 : vector<32x64xf32>
    %161 = arith.truncf %160 : vector<32x64xf32> to vector<32x64xbf16>
    %cst_51 = arith.constant dense<0.000000e+00> : vector<32x32xf32>
    %162 = tpu.matmul %161, %13, %cst_51 {dimension_numbers = #tpu.dot_dimension_numbers<[1], [0], [0], [1], [0, 0, 1, 1], [], []>} : vector<32x64xbf16>, vector<64x32xbf16>, vector<32x32xf32> -> vector<32x32xf32>
    %163 = vector.extract_strided_slice %15 {offsets = [4, 0], sizes = [1, 32], strides = [1, 1]} : vector<9x32xf32> to vector<1x32xf32>
    %164 = vector.shape_cast %163 : vector<1x32xf32> to vector<32xf32>
    %165 = vector.shape_cast %164 : vector<32xf32> to vector<1x32xf32>
    %166 = vector.broadcast %165 : vector<1x32xf32> to vector<32x32xf32>
    %167 = arith.addf %162, %166 : vector<32x32xf32>
    %168 = arith.addf %152, %167 : vector<32x32xf32>
    %169 = vector.extract_strided_slice %15 {offsets = [7, 0], sizes = [1, 32], strides = [1, 1]} : vector<9x32xf32> to vector<1x32xf32>
    %170 = vector.shape_cast %169 : vector<1x32xf32> to vector<32xf32>
    %171 = vector.extract_strided_slice %15 {offsets = [8, 0], sizes = [1, 32], strides = [1, 1]} : vector<9x32xf32> to vector<1x32xf32>
    %172 = vector.shape_cast %171 : vector<1x32xf32> to vector<32xf32>
    %cst_52 = arith.constant dense<0.000000e+00> : vector<32xf32>
    %173 = vector.multi_reduction <add>, %168, %cst_52 [1] : vector<32x32xf32> to vector<32xf32>
    %174 = vector.shape_cast %173 : vector<32xf32> to vector<32x1xf32>
    %cst_53 = arith.constant 3.200000e+01 : f32
    %175 = vector.broadcast %cst_53 : f32 to vector<32x1xf32>
    %176 = arith.divf %174, %175 : vector<32x1xf32>
    %177 = vector.broadcast %176 : vector<32x1xf32> to vector<32x32xf32>
    %178 = arith.subf %168, %177 : vector<32x32xf32>
    %179 = arith.mulf %178, %178 : vector<32x32xf32>
    %cst_54 = arith.constant dense<0.000000e+00> : vector<32xf32>
    %180 = vector.multi_reduction <add>, %179, %cst_54 [1] : vector<32x32xf32> to vector<32xf32>
    %181 = vector.shape_cast %180 : vector<32xf32> to vector<32x1xf32>
    %cst_55 = arith.constant 3.200000e+01 : f32
    %182 = vector.broadcast %cst_55 : f32 to vector<32x1xf32>
    %183 = arith.divf %181, %182 : vector<32x1xf32>
    %184 = vector.broadcast %176 : vector<32x1xf32> to vector<32x32xf32>
    %185 = arith.subf %168, %184 : vector<32x32xf32>
    %cst_56 = arith.constant 9.99999974E-6 : f32
    %186 = vector.broadcast %cst_56 : f32 to vector<32x1xf32>
    %187 = arith.addf %183, %186 : vector<32x1xf32>
    %188 = math.rsqrt %187 : vector<32x1xf32>
    %189 = vector.broadcast %188 : vector<32x1xf32> to vector<32x32xf32>
    %190 = arith.mulf %185, %189 : vector<32x32xf32>
    %191 = vector.shape_cast %170 : vector<32xf32> to vector<1x32xf32>
    %192 = vector.broadcast %191 : vector<1x32xf32> to vector<32x32xf32>
    %193 = arith.mulf %190, %192 : vector<32x32xf32>
    %194 = vector.shape_cast %172 : vector<32xf32> to vector<1x32xf32>
    %195 = vector.broadcast %194 : vector<1x32xf32> to vector<32x32xf32>
    %196 = arith.addf %193, %195 : vector<32x32xf32>
    %c1 = arith.constant 1 : index
    %c0_57 = arith.constant 0 : index
    %c0_58 = arith.constant 0 : index
    %197 = vector.load %arg3[%c1, %c0_57, %c0_58] : memref<2x32x64xbf16, #tpu.memory_space<vmem>>, vector<1x32x64xbf16>
    %198 = vector.shape_cast %197 : vector<1x32x64xbf16> to vector<32x64xbf16>
    %c1_59 = arith.constant 1 : index
    %c0_60 = arith.constant 0 : index
    %c0_61 = arith.constant 0 : index
    %199 = vector.load %arg4[%c1_59, %c0_60, %c0_61] : memref<2x32x32xbf16, #tpu.memory_space<vmem>>, vector<1x32x32xbf16>
    %200 = vector.shape_cast %199 : vector<1x32x32xbf16> to vector<32x32xbf16>
    %c1_62 = arith.constant 1 : index
    %c0_63 = arith.constant 0 : index
    %c0_64 = arith.constant 0 : index
    %201 = vector.load %arg5[%c1_62, %c0_63, %c0_64] : memref<2x32x32xbf16, #tpu.memory_space<vmem>>, vector<1x32x32xbf16>
    %202 = vector.shape_cast %201 : vector<1x32x32xbf16> to vector<32x32xbf16>
    %c1_65 = arith.constant 1 : index
    %c0_66 = arith.constant 0 : index
    %c0_67 = arith.constant 0 : index
    %203 = vector.load %arg6[%c1_65, %c0_66, %c0_67] : memref<2x32x64xbf16, #tpu.memory_space<vmem>>, vector<1x32x64xbf16>
    %204 = vector.shape_cast %203 : vector<1x32x64xbf16> to vector<32x64xbf16>
    %c1_68 = arith.constant 1 : index
    %c0_69 = arith.constant 0 : index
    %c0_70 = arith.constant 0 : index
    %205 = vector.load %arg7[%c1_68, %c0_69, %c0_70] : memref<2x64x32xbf16, #tpu.memory_space<vmem>>, vector<1x64x32xbf16>
    %206 = vector.shape_cast %205 : vector<1x64x32xbf16> to vector<64x32xbf16>
    %c1_71 = arith.constant 1 : index
    %c0_72 = arith.constant 0 : index
    %c0_73 = arith.constant 0 : index
    %207 = vector.load %arg8[%c1_71, %c0_72, %c0_73] : memref<2x9x32xf32, #tpu.memory_space<vmem>>, vector<1x9x32xf32>
    %208 = vector.shape_cast %207 : vector<1x9x32xf32> to vector<9x32xf32>
    %c1_74 = arith.constant 1 : index
    %c0_75 = arith.constant 0 : index
    %c0_76 = arith.constant 0 : index
    %209 = vector.load %arg9[%c1_74, %c0_75, %c0_76] : memref<2x1x64xf32, #tpu.memory_space<vmem>>, vector<1x1x64xf32>
    %210 = vector.shape_cast %209 : vector<1x1x64xf32> to vector<1x64xf32>
    %211 = arith.addf %196, %3 : vector<32x32xf32>
    %212 = arith.truncf %211 : vector<32x32xf32> to vector<32x32xbf16>
    %cst_77 = arith.constant dense<0.000000e+00> : vector<32x64xf32>
    %213 = tpu.matmul %212, %198, %cst_77 {dimension_numbers = #tpu.dot_dimension_numbers<[1], [0], [0], [1], [0, 0, 1, 1], [], []>} : vector<32x32xbf16>, vector<32x64xbf16>, vector<32x64xf32> -> vector<32x64xf32>
    %214 = arith.truncf %196 : vector<32x32xf32> to vector<32x32xbf16>
    %cst_78 = arith.constant dense<0.000000e+00> : vector<32x32xf32>
    %215 = tpu.matmul %214, %200, %cst_78 {dimension_numbers = #tpu.dot_dimension_numbers<[1], [0], [0], [1], [0, 0, 1, 1], [], []>} : vector<32x32xbf16>, vector<32x32xbf16>, vector<32x32xf32> -> vector<32x32xf32>
    %216 = vector.extract_strided_slice %213 {offsets = [0, 0], sizes = [32, 32], strides = [1, 1]} : vector<32x64xf32> to vector<32x32xf32>
    %217 = vector.extract_strided_slice %208 {offsets = [0, 0], sizes = [1, 32], strides = [1, 1]} : vector<9x32xf32> to vector<1x32xf32>
    %218 = vector.shape_cast %217 : vector<1x32xf32> to vector<32xf32>
    %219 = vector.shape_cast %218 : vector<32xf32> to vector<1x32xf32>
    %220 = vector.broadcast %219 : vector<1x32xf32> to vector<32x32xf32>
    %221 = arith.addf %216, %220 : vector<32x32xf32>
    %222 = vector.extract_strided_slice %213 {offsets = [0, 32], sizes = [32, 32], strides = [1, 1]} : vector<32x64xf32> to vector<32x32xf32>
    %223 = vector.extract_strided_slice %208 {offsets = [1, 0], sizes = [1, 32], strides = [1, 1]} : vector<9x32xf32> to vector<1x32xf32>
    %224 = vector.shape_cast %223 : vector<1x32xf32> to vector<32xf32>
    %225 = vector.shape_cast %224 : vector<32xf32> to vector<1x32xf32>
    %226 = vector.broadcast %225 : vector<1x32xf32> to vector<32x32xf32>
    %227 = arith.addf %222, %226 : vector<32x32xf32>
    %228 = vector.extract_strided_slice %208 {offsets = [2, 0], sizes = [1, 32], strides = [1, 1]} : vector<9x32xf32> to vector<1x32xf32>
    %229 = vector.shape_cast %228 : vector<1x32xf32> to vector<32xf32>
    %230 = vector.shape_cast %229 : vector<32xf32> to vector<1x32xf32>
    %231 = vector.broadcast %230 : vector<1x32xf32> to vector<32x32xf32>
    %232 = arith.addf %215, %231 : vector<32x32xf32>
    %233 = vector.extract_strided_slice %221 {offsets = [0, 0], sizes = [32, 8], strides = [1, 1]} : vector<32x32xf32> to vector<32x8xf32>
    %234 = arith.truncf %233 : vector<32x8xf32> to vector<32x8xbf16>
    %235 = vector.extract_strided_slice %227 {offsets = [0, 0], sizes = [32, 8], strides = [1, 1]} : vector<32x32xf32> to vector<32x8xf32>
    %236 = arith.truncf %235 : vector<32x8xf32> to vector<32x8xbf16>
    %237 = vector.extract_strided_slice %232 {offsets = [0, 0], sizes = [32, 8], strides = [1, 1]} : vector<32x32xf32> to vector<32x8xf32>
    %238 = arith.truncf %237 : vector<32x8xf32> to vector<32x8xbf16>
    %cst_79 = arith.constant dense<0.000000e+00> : vector<32x32xf32>
    %239 = tpu.matmul %234, %236, %cst_79 {dimension_numbers = #tpu.dot_dimension_numbers<[1], [1], [0], [0], [0, 0, 1, 0], [], []>} : vector<32x8xbf16>, vector<32x8xbf16>, vector<32x32xf32> -> vector<32x32xf32>
    %cst_80 = arith.constant dense<0xFF800000> : vector<32xf32>
    %240 = vector.multi_reduction <maximumf>, %239, %cst_80 [1] : vector<32x32xf32> to vector<32xf32>
    %241 = vector.shape_cast %240 : vector<32xf32> to vector<32x1xf32>
    %242 = vector.broadcast %241 : vector<32x1xf32> to vector<32x32xf32>
    %243 = arith.subf %239, %242 : vector<32x32xf32>
    %244 = math.exp %243 : vector<32x32xf32>
    %cst_81 = arith.constant dense<0.000000e+00> : vector<32xf32>
    %245 = vector.multi_reduction <add>, %244, %cst_81 [1] : vector<32x32xf32> to vector<32xf32>
    %246 = vector.shape_cast %245 : vector<32xf32> to vector<32x1xf32>
    %247 = tpu.reciprocal %246 {approx = true} : vector<32x1xf32> -> vector<32x1xf32>
    %248 = vector.broadcast %247 : vector<32x1xf32> to vector<32x32xf32>
    %249 = arith.mulf %244, %248 : vector<32x32xf32>
    %250 = arith.truncf %249 : vector<32x32xf32> to vector<32x32xbf16>
    %cst_82 = arith.constant dense<0.000000e+00> : vector<32x8xf32>
    %251 = tpu.matmul %250, %238, %cst_82 {dimension_numbers = #tpu.dot_dimension_numbers<[1], [0], [0], [1], [0, 0, 1, 1], [], []>} : vector<32x32xbf16>, vector<32x8xbf16>, vector<32x8xf32> -> vector<32x8xf32>
    %252 = vector.extract_strided_slice %221 {offsets = [0, 8], sizes = [32, 8], strides = [1, 1]} : vector<32x32xf32> to vector<32x8xf32>
    %253 = arith.truncf %252 : vector<32x8xf32> to vector<32x8xbf16>
    %254 = vector.extract_strided_slice %227 {offsets = [0, 8], sizes = [32, 8], strides = [1, 1]} : vector<32x32xf32> to vector<32x8xf32>
    %255 = arith.truncf %254 : vector<32x8xf32> to vector<32x8xbf16>
    %256 = vector.extract_strided_slice %232 {offsets = [0, 8], sizes = [32, 8], strides = [1, 1]} : vector<32x32xf32> to vector<32x8xf32>
    %257 = arith.truncf %256 : vector<32x8xf32> to vector<32x8xbf16>
    %cst_83 = arith.constant dense<0.000000e+00> : vector<32x32xf32>
    %258 = tpu.matmul %253, %255, %cst_83 {dimension_numbers = #tpu.dot_dimension_numbers<[1], [1], [0], [0], [0, 0, 1, 0], [], []>} : vector<32x8xbf16>, vector<32x8xbf16>, vector<32x32xf32> -> vector<32x32xf32>
    %cst_84 = arith.constant dense<0xFF800000> : vector<32xf32>
    %259 = vector.multi_reduction <maximumf>, %258, %cst_84 [1] : vector<32x32xf32> to vector<32xf32>
    %260 = vector.shape_cast %259 : vector<32xf32> to vector<32x1xf32>
    %261 = vector.broadcast %260 : vector<32x1xf32> to vector<32x32xf32>
    %262 = arith.subf %258, %261 : vector<32x32xf32>
    %263 = math.exp %262 : vector<32x32xf32>
    %cst_85 = arith.constant dense<0.000000e+00> : vector<32xf32>
    %264 = vector.multi_reduction <add>, %263, %cst_85 [1] : vector<32x32xf32> to vector<32xf32>
    %265 = vector.shape_cast %264 : vector<32xf32> to vector<32x1xf32>
    %266 = tpu.reciprocal %265 {approx = true} : vector<32x1xf32> -> vector<32x1xf32>
    %267 = vector.broadcast %266 : vector<32x1xf32> to vector<32x32xf32>
    %268 = arith.mulf %263, %267 : vector<32x32xf32>
    %269 = arith.truncf %268 : vector<32x32xf32> to vector<32x32xbf16>
    %cst_86 = arith.constant dense<0.000000e+00> : vector<32x8xf32>
    %270 = tpu.matmul %269, %257, %cst_86 {dimension_numbers = #tpu.dot_dimension_numbers<[1], [0], [0], [1], [0, 0, 1, 1], [], []>} : vector<32x32xbf16>, vector<32x8xbf16>, vector<32x8xf32> -> vector<32x8xf32>
    %271 = vector.extract_strided_slice %221 {offsets = [0, 16], sizes = [32, 8], strides = [1, 1]} : vector<32x32xf32> to vector<32x8xf32>
    %272 = arith.truncf %271 : vector<32x8xf32> to vector<32x8xbf16>
    %273 = vector.extract_strided_slice %227 {offsets = [0, 16], sizes = [32, 8], strides = [1, 1]} : vector<32x32xf32> to vector<32x8xf32>
    %274 = arith.truncf %273 : vector<32x8xf32> to vector<32x8xbf16>
    %275 = vector.extract_strided_slice %232 {offsets = [0, 16], sizes = [32, 8], strides = [1, 1]} : vector<32x32xf32> to vector<32x8xf32>
    %276 = arith.truncf %275 : vector<32x8xf32> to vector<32x8xbf16>
    %cst_87 = arith.constant dense<0.000000e+00> : vector<32x32xf32>
    %277 = tpu.matmul %272, %274, %cst_87 {dimension_numbers = #tpu.dot_dimension_numbers<[1], [1], [0], [0], [0, 0, 1, 0], [], []>} : vector<32x8xbf16>, vector<32x8xbf16>, vector<32x32xf32> -> vector<32x32xf32>
    %cst_88 = arith.constant dense<0xFF800000> : vector<32xf32>
    %278 = vector.multi_reduction <maximumf>, %277, %cst_88 [1] : vector<32x32xf32> to vector<32xf32>
    %279 = vector.shape_cast %278 : vector<32xf32> to vector<32x1xf32>
    %280 = vector.broadcast %279 : vector<32x1xf32> to vector<32x32xf32>
    %281 = arith.subf %277, %280 : vector<32x32xf32>
    %282 = math.exp %281 : vector<32x32xf32>
    %cst_89 = arith.constant dense<0.000000e+00> : vector<32xf32>
    %283 = vector.multi_reduction <add>, %282, %cst_89 [1] : vector<32x32xf32> to vector<32xf32>
    %284 = vector.shape_cast %283 : vector<32xf32> to vector<32x1xf32>
    %285 = tpu.reciprocal %284 {approx = true} : vector<32x1xf32> -> vector<32x1xf32>
    %286 = vector.broadcast %285 : vector<32x1xf32> to vector<32x32xf32>
    %287 = arith.mulf %282, %286 : vector<32x32xf32>
    %288 = arith.truncf %287 : vector<32x32xf32> to vector<32x32xbf16>
    %cst_90 = arith.constant dense<0.000000e+00> : vector<32x8xf32>
    %289 = tpu.matmul %288, %276, %cst_90 {dimension_numbers = #tpu.dot_dimension_numbers<[1], [0], [0], [1], [0, 0, 1, 1], [], []>} : vector<32x32xbf16>, vector<32x8xbf16>, vector<32x8xf32> -> vector<32x8xf32>
    %290 = vector.extract_strided_slice %221 {offsets = [0, 24], sizes = [32, 8], strides = [1, 1]} : vector<32x32xf32> to vector<32x8xf32>
    %291 = arith.truncf %290 : vector<32x8xf32> to vector<32x8xbf16>
    %292 = vector.extract_strided_slice %227 {offsets = [0, 24], sizes = [32, 8], strides = [1, 1]} : vector<32x32xf32> to vector<32x8xf32>
    %293 = arith.truncf %292 : vector<32x8xf32> to vector<32x8xbf16>
    %294 = vector.extract_strided_slice %232 {offsets = [0, 24], sizes = [32, 8], strides = [1, 1]} : vector<32x32xf32> to vector<32x8xf32>
    %295 = arith.truncf %294 : vector<32x8xf32> to vector<32x8xbf16>
    %cst_91 = arith.constant dense<0.000000e+00> : vector<32x32xf32>
    %296 = tpu.matmul %291, %293, %cst_91 {dimension_numbers = #tpu.dot_dimension_numbers<[1], [1], [0], [0], [0, 0, 1, 0], [], []>} : vector<32x8xbf16>, vector<32x8xbf16>, vector<32x32xf32> -> vector<32x32xf32>
    %cst_92 = arith.constant dense<0xFF800000> : vector<32xf32>
    %297 = vector.multi_reduction <maximumf>, %296, %cst_92 [1] : vector<32x32xf32> to vector<32xf32>
    %298 = vector.shape_cast %297 : vector<32xf32> to vector<32x1xf32>
    %299 = vector.broadcast %298 : vector<32x1xf32> to vector<32x32xf32>
    %300 = arith.subf %296, %299 : vector<32x32xf32>
    %301 = math.exp %300 : vector<32x32xf32>
    %cst_93 = arith.constant dense<0.000000e+00> : vector<32xf32>
    %302 = vector.multi_reduction <add>, %301, %cst_93 [1] : vector<32x32xf32> to vector<32xf32>
    %303 = vector.shape_cast %302 : vector<32xf32> to vector<32x1xf32>
    %304 = tpu.reciprocal %303 {approx = true} : vector<32x1xf32> -> vector<32x1xf32>
    %305 = vector.broadcast %304 : vector<32x1xf32> to vector<32x32xf32>
    %306 = arith.mulf %301, %305 : vector<32x32xf32>
    %307 = arith.truncf %306 : vector<32x32xf32> to vector<32x32xbf16>
    %cst_94 = arith.constant dense<0.000000e+00> : vector<32x8xf32>
    %308 = tpu.matmul %307, %295, %cst_94 {dimension_numbers = #tpu.dot_dimension_numbers<[1], [0], [0], [1], [0, 0, 1, 1], [], []>} : vector<32x32xbf16>, vector<32x8xbf16>, vector<32x8xf32> -> vector<32x8xf32>
    %309 = tpu.concatenate %251, %270, %289, %308 in 1 : vector<32x8xf32>, vector<32x8xf32>, vector<32x8xf32>, vector<32x8xf32> -> vector<32x32xf32>
    %310 = arith.truncf %309 : vector<32x32xf32> to vector<32x32xbf16>
    %cst_95 = arith.constant dense<0.000000e+00> : vector<32x32xf32>
    %311 = tpu.matmul %310, %202, %cst_95 {dimension_numbers = #tpu.dot_dimension_numbers<[1], [0], [0], [1], [0, 0, 1, 1], [], []>} : vector<32x32xbf16>, vector<32x32xbf16>, vector<32x32xf32> -> vector<32x32xf32>
    %312 = vector.extract_strided_slice %208 {offsets = [3, 0], sizes = [1, 32], strides = [1, 1]} : vector<9x32xf32> to vector<1x32xf32>
    %313 = vector.shape_cast %312 : vector<1x32xf32> to vector<32xf32>
    %314 = vector.shape_cast %313 : vector<32xf32> to vector<1x32xf32>
    %315 = vector.broadcast %314 : vector<1x32xf32> to vector<32x32xf32>
    %316 = arith.addf %311, %315 : vector<32x32xf32>
    %317 = arith.addf %196, %316 : vector<32x32xf32>
    %318 = vector.extract_strided_slice %208 {offsets = [5, 0], sizes = [1, 32], strides = [1, 1]} : vector<9x32xf32> to vector<1x32xf32>
    %319 = vector.shape_cast %318 : vector<1x32xf32> to vector<32xf32>
    %320 = vector.extract_strided_slice %208 {offsets = [6, 0], sizes = [1, 32], strides = [1, 1]} : vector<9x32xf32> to vector<1x32xf32>
    %321 = vector.shape_cast %320 : vector<1x32xf32> to vector<32xf32>
    %cst_96 = arith.constant dense<0.000000e+00> : vector<32xf32>
    %322 = vector.multi_reduction <add>, %317, %cst_96 [1] : vector<32x32xf32> to vector<32xf32>
    %323 = vector.shape_cast %322 : vector<32xf32> to vector<32x1xf32>
    %cst_97 = arith.constant 3.200000e+01 : f32
    %324 = vector.broadcast %cst_97 : f32 to vector<32x1xf32>
    %325 = arith.divf %323, %324 : vector<32x1xf32>
    %326 = vector.broadcast %325 : vector<32x1xf32> to vector<32x32xf32>
    %327 = arith.subf %317, %326 : vector<32x32xf32>
    %328 = arith.mulf %327, %327 : vector<32x32xf32>
    %cst_98 = arith.constant dense<0.000000e+00> : vector<32xf32>
    %329 = vector.multi_reduction <add>, %328, %cst_98 [1] : vector<32x32xf32> to vector<32xf32>
    %330 = vector.shape_cast %329 : vector<32xf32> to vector<32x1xf32>
    %cst_99 = arith.constant 3.200000e+01 : f32
    %331 = vector.broadcast %cst_99 : f32 to vector<32x1xf32>
    %332 = arith.divf %330, %331 : vector<32x1xf32>
    %333 = vector.broadcast %325 : vector<32x1xf32> to vector<32x32xf32>
    %334 = arith.subf %317, %333 : vector<32x32xf32>
    %cst_100 = arith.constant 9.99999974E-6 : f32
    %335 = vector.broadcast %cst_100 : f32 to vector<32x1xf32>
    %336 = arith.addf %332, %335 : vector<32x1xf32>
    %337 = math.rsqrt %336 : vector<32x1xf32>
    %338 = vector.broadcast %337 : vector<32x1xf32> to vector<32x32xf32>
    %339 = arith.mulf %334, %338 : vector<32x32xf32>
    %340 = vector.shape_cast %319 : vector<32xf32> to vector<1x32xf32>
    %341 = vector.broadcast %340 : vector<1x32xf32> to vector<32x32xf32>
    %342 = arith.mulf %339, %341 : vector<32x32xf32>
    %343 = vector.shape_cast %321 : vector<32xf32> to vector<1x32xf32>
    %344 = vector.broadcast %343 : vector<1x32xf32> to vector<32x32xf32>
    %345 = arith.addf %342, %344 : vector<32x32xf32>
    %346 = arith.truncf %345 : vector<32x32xf32> to vector<32x32xbf16>
    %cst_101 = arith.constant dense<0.000000e+00> : vector<32x64xf32>
    %347 = tpu.matmul %346, %204, %cst_101 {dimension_numbers = #tpu.dot_dimension_numbers<[1], [0], [0], [1], [0, 0, 1, 1], [], []>} : vector<32x32xbf16>, vector<32x64xbf16>, vector<32x64xf32> -> vector<32x64xf32>
    %348 = vector.shape_cast %210 : vector<1x64xf32> to vector<64xf32>
    %349 = vector.shape_cast %348 : vector<64xf32> to vector<1x64xf32>
    %350 = vector.broadcast %349 : vector<1x64xf32> to vector<32x64xf32>
    %351 = arith.addf %347, %350 : vector<32x64xf32>
    %cst_102 = arith.constant 0.000000e+00 : f32
    %352 = vector.broadcast %cst_102 : f32 to vector<32x64xf32>
    %353 = arith.maximumf %351, %352 : vector<32x64xf32>
    %354 = arith.truncf %353 : vector<32x64xf32> to vector<32x64xbf16>
    %cst_103 = arith.constant dense<0.000000e+00> : vector<32x32xf32>
    %355 = tpu.matmul %354, %206, %cst_103 {dimension_numbers = #tpu.dot_dimension_numbers<[1], [0], [0], [1], [0, 0, 1, 1], [], []>} : vector<32x64xbf16>, vector<64x32xbf16>, vector<32x32xf32> -> vector<32x32xf32>
    %356 = vector.extract_strided_slice %208 {offsets = [4, 0], sizes = [1, 32], strides = [1, 1]} : vector<9x32xf32> to vector<1x32xf32>
    %357 = vector.shape_cast %356 : vector<1x32xf32> to vector<32xf32>
    %358 = vector.shape_cast %357 : vector<32xf32> to vector<1x32xf32>
    %359 = vector.broadcast %358 : vector<1x32xf32> to vector<32x32xf32>
    %360 = arith.addf %355, %359 : vector<32x32xf32>
    %361 = arith.addf %345, %360 : vector<32x32xf32>
    %362 = vector.extract_strided_slice %208 {offsets = [7, 0], sizes = [1, 32], strides = [1, 1]} : vector<9x32xf32> to vector<1x32xf32>
    %363 = vector.shape_cast %362 : vector<1x32xf32> to vector<32xf32>
    %364 = vector.extract_strided_slice %208 {offsets = [8, 0], sizes = [1, 32], strides = [1, 1]} : vector<9x32xf32> to vector<1x32xf32>
    %365 = vector.shape_cast %364 : vector<1x32xf32> to vector<32xf32>
    %cst_104 = arith.constant dense<0.000000e+00> : vector<32xf32>
    %366 = vector.multi_reduction <add>, %361, %cst_104 [1] : vector<32x32xf32> to vector<32xf32>
    %367 = vector.shape_cast %366 : vector<32xf32> to vector<32x1xf32>
    %cst_105 = arith.constant 3.200000e+01 : f32
    %368 = vector.broadcast %cst_105 : f32 to vector<32x1xf32>
    %369 = arith.divf %367, %368 : vector<32x1xf32>
    %370 = vector.broadcast %369 : vector<32x1xf32> to vector<32x32xf32>
    %371 = arith.subf %361, %370 : vector<32x32xf32>
    %372 = arith.mulf %371, %371 : vector<32x32xf32>
    %cst_106 = arith.constant dense<0.000000e+00> : vector<32xf32>
    %373 = vector.multi_reduction <add>, %372, %cst_106 [1] : vector<32x32xf32> to vector<32xf32>
    %374 = vector.shape_cast %373 : vector<32xf32> to vector<32x1xf32>
    %cst_107 = arith.constant 3.200000e+01 : f32
    %375 = vector.broadcast %cst_107 : f32 to vector<32x1xf32>
    %376 = arith.divf %374, %375 : vector<32x1xf32>
    %377 = vector.broadcast %369 : vector<32x1xf32> to vector<32x32xf32>
    %378 = arith.subf %361, %377 : vector<32x32xf32>
    %cst_108 = arith.constant 9.99999974E-6 : f32
    %379 = vector.broadcast %cst_108 : f32 to vector<32x1xf32>
    %380 = arith.addf %376, %379 : vector<32x1xf32>
    %381 = math.rsqrt %380 : vector<32x1xf32>
    %382 = vector.broadcast %381 : vector<32x1xf32> to vector<32x32xf32>
    %383 = arith.mulf %378, %382 : vector<32x32xf32>
    %384 = vector.shape_cast %363 : vector<32xf32> to vector<1x32xf32>
    %385 = vector.broadcast %384 : vector<1x32xf32> to vector<32x32xf32>
    %386 = arith.mulf %383, %385 : vector<32x32xf32>
    %387 = vector.shape_cast %365 : vector<32xf32> to vector<1x32xf32>
    %388 = vector.broadcast %387 : vector<1x32xf32> to vector<32x32xf32>
    %389 = arith.addf %386, %388 : vector<32x32xf32>
    %c0_109 = arith.constant 0 : index
    %c0_110 = arith.constant 0 : index
    %390 = vector.load %arg10[%c0_109, %c0_110] : memref<2x32xf32, #tpu.memory_space<vmem>>, vector<1x32xf32>
    %391 = vector.shape_cast %390 : vector<1x32xf32> to vector<32xf32>
    %c1_111 = arith.constant 1 : index
    %c0_112 = arith.constant 0 : index
    %392 = vector.load %arg10[%c1_111, %c0_112] : memref<2x32xf32, #tpu.memory_space<vmem>>, vector<1x32xf32>
    %393 = vector.shape_cast %392 : vector<1x32xf32> to vector<32xf32>
    %cst_113 = arith.constant dense<0.000000e+00> : vector<32xf32>
    %394 = vector.multi_reduction <add>, %389, %cst_113 [1] : vector<32x32xf32> to vector<32xf32>
    %395 = vector.shape_cast %394 : vector<32xf32> to vector<32x1xf32>
    %cst_114 = arith.constant 3.200000e+01 : f32
    %396 = vector.broadcast %cst_114 : f32 to vector<32x1xf32>
    %397 = arith.divf %395, %396 : vector<32x1xf32>
    %398 = vector.broadcast %397 : vector<32x1xf32> to vector<32x32xf32>
    %399 = arith.subf %389, %398 : vector<32x32xf32>
    %400 = arith.mulf %399, %399 : vector<32x32xf32>
    %cst_115 = arith.constant dense<0.000000e+00> : vector<32xf32>
    %401 = vector.multi_reduction <add>, %400, %cst_115 [1] : vector<32x32xf32> to vector<32xf32>
    %402 = vector.shape_cast %401 : vector<32xf32> to vector<32x1xf32>
    %cst_116 = arith.constant 3.200000e+01 : f32
    %403 = vector.broadcast %cst_116 : f32 to vector<32x1xf32>
    %404 = arith.divf %402, %403 : vector<32x1xf32>
    %405 = vector.broadcast %397 : vector<32x1xf32> to vector<32x32xf32>
    %406 = arith.subf %389, %405 : vector<32x32xf32>
    %cst_117 = arith.constant 9.99999974E-6 : f32
    %407 = vector.broadcast %cst_117 : f32 to vector<32x1xf32>
    %408 = arith.addf %404, %407 : vector<32x1xf32>
    %409 = math.rsqrt %408 : vector<32x1xf32>
    %410 = vector.broadcast %409 : vector<32x1xf32> to vector<32x32xf32>
    %411 = arith.mulf %406, %410 : vector<32x32xf32>
    %412 = vector.shape_cast %391 : vector<32xf32> to vector<1x32xf32>
    %413 = vector.broadcast %412 : vector<1x32xf32> to vector<32x32xf32>
    %414 = arith.mulf %411, %413 : vector<32x32xf32>
    %415 = vector.shape_cast %393 : vector<32xf32> to vector<1x32xf32>
    %416 = vector.broadcast %415 : vector<1x32xf32> to vector<32x32xf32>
    %417 = arith.addf %414, %416 : vector<32x32xf32>
    %c0_118 = arith.constant 0 : index
    %c0_119 = arith.constant 0 : index
    %c0_120 = arith.constant 0 : index
    %418 = vector.load %arg11[%c0_118, %c0_119, %c0_120] : memref<1x32x32xf32, #tpu.memory_space<vmem>>, vector<1x32x32xf32>
    %419 = vector.shape_cast %418 : vector<1x32x32xf32> to vector<32x32xf32>
    %420 = vector.shape_cast %417 : vector<32x32xf32> to vector<1x32x32xf32>
    tpu.vector_store %arg11[%c0_118, %c0_119, %c0_120], %420 {strides = array<i32>} : memref<1x32x32xf32, #tpu.memory_space<vmem>>, vector<1x32x32xf32>,
    return
  }
  func.func @transform_0(%arg0: i32) -> (i32, i32, i32) {
    %c0_i32 = arith.constant 0 : i32
    %c0_i32_0 = arith.constant 0 : i32
    %c0_i32_1 = arith.constant 0 : i32
    return %arg0, %c0_i32, %c0_i32_0 : i32, i32, i32
  }
  func.func @transform_1(%arg0: i32) -> (i32, i32, i32) {
    %c0_i32 = arith.constant 0 : i32
    %c0_i32_0 = arith.constant 0 : i32
    %c0_i32_1 = arith.constant 0 : i32
    return %arg0, %c0_i32, %c0_i32_0 : i32, i32, i32
  }
  func.func @transform_2(%arg0: i32) -> (i32, i32, i32) {
    %c0_i32 = arith.constant 0 : i32
    %c0_i32_0 = arith.constant 0 : i32
    %c0_i32_1 = arith.constant 0 : i32
    %c0_i32_2 = arith.constant 0 : i32
    return %c0_i32, %c0_i32_0, %c0_i32_1 : i32, i32, i32
  }
  func.func @transform_3(%arg0: i32) -> (i32, i32, i32) {
    %c0_i32 = arith.constant 0 : i32
    %c0_i32_0 = arith.constant 0 : i32
    %c0_i32_1 = arith.constant 0 : i32
    %c0_i32_2 = arith.constant 0 : i32
    return %c0_i32, %c0_i32_0, %c0_i32_1 : i32, i32, i32
  }
  func.func @transform_4(%arg0: i32) -> (i32, i32, i32) {
    %c0_i32 = arith.constant 0 : i32
    %c0_i32_0 = arith.constant 0 : i32
    %c0_i32_1 = arith.constant 0 : i32
    %c0_i32_2 = arith.constant 0 : i32
    return %c0_i32, %c0_i32_0, %c0_i32_1 : i32, i32, i32
  }
  func.func @transform_5(%arg0: i32) -> (i32, i32, i32) {
    %c0_i32 = arith.constant 0 : i32
    %c0_i32_0 = arith.constant 0 : i32
    %c0_i32_1 = arith.constant 0 : i32
    %c0_i32_2 = arith.constant 0 : i32
    return %c0_i32, %c0_i32_0, %c0_i32_1 : i32, i32, i32
  }
  func.func @transform_6(%arg0: i32) -> (i32, i32, i32) {
    %c0_i32 = arith.constant 0 : i32
    %c0_i32_0 = arith.constant 0 : i32
    %c0_i32_1 = arith.constant 0 : i32
    %c0_i32_2 = arith.constant 0 : i32
    return %c0_i32, %c0_i32_0, %c0_i32_1 : i32, i32, i32
  }
  func.func @transform_7(%arg0: i32) -> (i32, i32, i32) {
    %c0_i32 = arith.constant 0 : i32
    %c0_i32_0 = arith.constant 0 : i32
    %c0_i32_1 = arith.constant 0 : i32
    %c0_i32_2 = arith.constant 0 : i32
    return %c0_i32, %c0_i32_0, %c0_i32_1 : i32, i32, i32
  }
  func.func @transform_8(%arg0: i32) -> (i32, i32, i32) {
    %c0_i32 = arith.constant 0 : i32
    %c0_i32_0 = arith.constant 0 : i32
    %c0_i32_1 = arith.constant 0 : i32
    %c0_i32_2 = arith.constant 0 : i32
    return %c0_i32, %c0_i32_0, %c0_i32_1 : i32, i32, i32
  }
  func.func @transform_9(%arg0: i32) -> (i32, i32) {
    %c0_i32 = arith.constant 0 : i32
    %c0_i32_0 = arith.constant 0 : i32
    %c0_i32_1 = arith.constant 0 : i32
    return %c0_i32, %c0_i32_0 : i32, i32
  }
  func.func @transform_10(%arg0: i32) -> (i32, i32, i32) {
    %c0_i32 = arith.constant 0 : i32
    %c0_i32_0 = arith.constant 0 : i32
    %c0_i32_1 = arith.constant 0 : i32
    return %arg0, %c0_i32, %c0_i32_0 : i32, i32, i32
  }
}

</mosaic_0001>

<bundles_post_ra>
// kernel: tpu_custom_call.1
= control target key start
LH: loop header
LB: loop body
LE: loop exit
PB: predicated region body
PF: predicated region fallthrough
CT: control target
= control target key end

     0   :  { %15 = vsyncpa [#allocation3], 0  ;;  %s5225_s0 = inlined_call_operand.vmem [shape: f32[2,32,32], index: 0, kind: input, shape index: {}]   ;;  %s5226_s1 = inlined_call_operand.vmem [shape: f32[2,32,32], index: 1, kind: input, shape index: {}]   ;;  %s5227_s2 = inlined_call_operand.hbm [shape: bf16[2,32,64], index: 2, kind: input, shape index: {}]   ;;  %s5228_s3 = inlined_call_operand.hbm [shape: bf16[2,32,32], index: 3, kind: input, shape index: {}]   ;;  %s5229_s4 = inlined_call_operand.hbm [shape: bf16[2,32,32], index: 4, kind: input, shape index: {}]   ;;  %s5230_s5 = inlined_call_operand.hbm [shape: bf16[2,32,64], index: 5, kind: input, shape index: {}]   ;;  %s5231_s6 = inlined_call_operand.vmem [shape: bf16[2,64,32], index: 6, kind: input, shape index: {}]   ;;  %s5232_s7 = inlined_call_operand.vmem [shape: f32[2,9,32], index: 7, kind: input, shape index: {}]   ;;  %s5233_s8 = inlined_call_operand.vmem [shape: f32[2,1,64], index: 8, kind: input, shape index: {}]   ;;  %s5234_s9 = inlined_call_operand.vmem [shape: f32[2,32], index: 9, kind: input, shape index: {}]   ;;  %s5235_s10 = inlined_call_operand.hbm [shape: f32[2,32,32], index: 10, kind: output, shape index: {}]  }
   0x1   :  { %16 = vsyncpa [#allocation6], 0 }
   0x2   :  { %17 = vsyncpa [#allocation9], 0 }
   0x3   :  { %18 = vsyncpa [#allocation4], 0 }
   0x4   :  { %20 = vsyncpa [#allocation4 + $0x1], 0  ;;  %s4418_s13 = smov 0   ;;  %s4420_s14 = smov 0  }
   0x5   :  { %s4422_s15 = smov 0   ;;  %s4424_s16 = smov 0  }
   0x6 LB: > { %5247 = sst [smem:[#allocation15_spill]] %s4330_s13  ;;  %s4439_s17 = sadd.s32 4294967295, %s4342_s16   ;;  %s4342_s16 = sphi %s4424_s16, %s5271_s16   ;;  %s4338_s15 = sphi %s4422_s15, %s5273_s15   ;;  %s4334_s14 = sphi %s4420_s14, %s5275_s14   ;;  %s4330_s13 = sphi %s4418_s13, %s5274_s13  }
   0x7   : > { %5248 = sst [smem:[#allocation16_spill]] %s4338_s15  ;;  %s3342_s18 = sadd.s32 4294967294, %s4342_s16  }
   0x8   : > { %5249 = sst [smem:[#allocation17_spill]] %s4342_s16  ;;  %s4443_s19 = sadd.s32 1, %s4342_s16  }
   0x9   : > { %5250 = sst [smem:[#allocation18_spill]] %s4443_s19  ;;  %s253_s20 = sadd.s32 1, %s4338_s15 }
   0xa   : > { %s250_s21 = ssub.s32 %s4342_s16, %s4443_s19  ;;  %p263_p0 = scmp.ne.s32.totalorder %s4338_s15, %s4334_s14 }
   0xb   : > { %p251_p1 = scmp.eq.s32.totalorder %s250_s21, 0  ;;  %p264_p2 = scmp.eq.s32.totalorder %s4439_s17, 1 }
   0xc   : > { %p269_p3 = scmp.ne.s32.totalorder %s4334_s14, %s4330_s13  ;;  %p270_p4 = scmp.eq.s32.totalorder %s3342_s18, 1 }
   0xd   : > { %s4454_s22 = scalar_select %p251_p1, %s4338_s15, %s253_s20  }
   0xe   : > { %p4456_p5 = por %p264_p2, %p263_p0  ;;  %p4460_p6 = por %p270_p4, %p269_p3 }
   0xf   : > { %5251 = sst [smem:[#allocation19_spill]] %s4454_s22  ;;  %p3343_p7 = scmp.ge.s32.totalorder %s4342_s16, 1 }
  0x10   : > { %s5252_s23 = scalar_select %p4456_p5, 1, 0 }
  0x11   : > { %s5253_s24 = scalar_select %p4460_p6, 1, 0 }
  0x12   : > { %p277_p8 = scmp.lt.s32.totalorder %s4342_s16, 3  ;;  %p5237_p9 = scmp.eq.s32.totalorder %s4439_s17, 0 }
  0x13   : > { %5254 = sst [smem:[#allocation20_spill]] %s5253_s24  ;;  %s4344_s26 = smov [#allocation5]  }
  0x14   : > { %p4467_p10 = pnand %p3343_p7, %p277_p8  ;;  %s302_s27 = sshll.u32 %s4344_s26, 4  ;;  %s4473_s27 = int_to_ptr.vmem [resolvable:$true] %s302_s27 }
  0x15   : > { %s4345_s29 = smov [#allocation2]   ;;  %s4346_s11 = smov [#allocation7]  }
  0x16   : > { %s5255_s25 = scalar_select %p4467_p10, 1, 0 }
  0x17   : > { %p3818_p11 = pneg %p4467_p10  ;;  %s289_s30 = sshll.u32 %s4345_s29, 4  ;;  %s4481_s30 = int_to_ptr.vmem [resolvable:$true] %s289_s30 }
  0x18   : > { %s4483_s12 = sshll.u32 %s4346_s11, 4  ;;  %s4156_s21 = scalar_lea.hbm %s5228_s3, 512  ;;  %s316_s12 = int_to_ptr.vmem [resolvable:$true] %s4483_s12 }
  0x19   : > { %p4477_p12 = pnand %p5237_p9, %p3818_p11  ;;  %p4157_p13 = scmp.ne.s32.totalorder %s5228_s3, %s4156_s21 }
  0x1a   : > { %p4163_p3 = scmp.lt.u32.totalorder %s4156_s21, %s5228_s3 }
  0x1b   : > { %p4493_p0 = pneg %p4477_p12 }
  0x1d   : > { %p4159_p1 = pnand %p4493_p0, %p4157_p13 }
  0x1f   : > { %p4160_p2 = pneg %p4159_p1 }
  0x21   : > { %p4165_p4 = pnand %p4163_p3, %p4160_p2 }
  0x23   : > { %4168 = shalt.err (!%p4165_p4)
}
  0x24   : > { %s4169_s22 = scalar_lea.vmem %s4473_s27, 512  ;;  %p4177_p9 = scmp.lt.s32.totalorder %s4473_s27, %s4473_s27 }
  0x25   : > { %p4170_p7 = scmp.ne.s32.totalorder %s4473_s27, %s4169_s22  ;;  %p4178_p6 = scmp.lt.s32.totalorder %s4169_s22, %s4169_s22 }
  0x27   : > { %p4172_p8 = pnand %p4170_p7, %p4493_p0  ;;  %p4179_p13 = por %p4178_p6, %p4177_p9 }
  0x29   : > { %p4173_p11 = pneg %p4172_p8 }
  0x2b   : > { %p4180_p1 = pnand %p4179_p13, %p4173_p11 }
  0x2d   : > { %4183 = shalt.err (!%p4180_p1)
}
  0x2e   : > { %s4347_s18 = smov 64   ;;  %s4348_s20 = smov 4  }
  0x2f   : > { %3824 = dma.hbm_to_vmem [thread:$0]  (!%p4477_p12), %s5228_s3, 512, %s4473_s27, [#allocation6], %s4347_s18, %s4347_s18, %s4348_s20  }
  0x30   : > { %s4184_s22 = scalar_lea.hbm %s5227_s2, 512 }
  0x31   : > { %p4185_p6 = scmp.ne.s32.totalorder %s5227_s2, %s4184_s22  ;;  %p4191_p3 = scmp.lt.u32.totalorder %s4184_s22, %s5227_s2 }
  0x33   : > { %p4187_p9 = pnand %p4185_p6, %p4493_p0 }
  0x35   : > { %p4188_p2 = pneg %p4187_p9 }
  0x37   : > { %p4193_p4 = pnand %p4191_p3, %p4188_p2 }
  0x39   : > { %4196 = shalt.err (!%p4193_p4)
}
  0x3a   : > { %s4197_s27 = scalar_lea.vmem %s4481_s30, 512  ;;  %p4205_p13 = scmp.lt.s32.totalorder %s4481_s30, %s4481_s30 }
  0x3b   : > { %p4198_p7 = scmp.ne.s32.totalorder %s4481_s30, %s4197_s27  ;;  %p4206_p1 = scmp.lt.s32.totalorder %s4197_s27, %s4197_s27 }
  0x3d   : > { %p4200_p8 = pnand %p4198_p7, %p4493_p0  ;;  %p4207_p6 = por %p4206_p1, %p4205_p13 }
  0x3f   : > { %p4201_p11 = pneg %p4200_p8 }
  0x41   : > { %p4208_p9 = pnand %p4207_p6, %p4201_p11 }
  0x43   : > { %4211 = shalt.err (!%p4208_p9)
}
  0x44   : > { %3821 = dma.hbm_to_vmem [thread:$0]  (!%p4477_p12), %s5227_s2, 512, %s4481_s30, [#allocation3], %s4347_s18, %s4347_s18, %s4348_s20  }
  0x45   : > { %s4212_s21 = scalar_lea.hbm %s5229_s4, 512 }
  0x46   : > { %p4213_p2 = scmp.ne.s32.totalorder %s5229_s4, %s4212_s21  ;;  %p4219_p7 = scmp.lt.u32.totalorder %s4212_s21, %s5229_s4 }
  0x48   : > { %p4215_p3 = pnand %p4213_p2, %p4493_p0 }
  0x4a   : > { %p4216_p4 = pneg %p4215_p3 }
  0x4c   : > { %p4221_p8 = pnand %p4219_p7, %p4216_p4 }
  0x4e   : > { %4224 = shalt.err (!%p4221_p8)
}
  0x4f   : > { %s4225_s27 = scalar_lea.vmem %s316_s12, 512  ;;  %p4233_p6 = scmp.lt.s32.totalorder %s316_s12, %s316_s12 }
  0x50   : > { %p4226_p11 = scmp.ne.s32.totalorder %s316_s12, %s4225_s27  ;;  %p4234_p9 = scmp.lt.s32.totalorder %s4225_s27, %s4225_s27 }
  0x52   : > { %p4228_p13 = pnand %p4226_p11, %p4493_p0  ;;  %p4235_p5 = por %p4234_p9, %p4233_p6 }
  0x54   : > { %p4229_p1 = pneg %p4228_p13 }
  0x56   : > { %p4236_p10 = pnand %p4235_p5, %p4229_p1 }
  0x58   : > { %4239 = shalt.err (!%p4236_p10)
}
  0x59   : > { %3827 = dma.hbm_to_vmem [thread:$0]  (!%p4477_p12), %s5229_s4, 512, %s316_s12, [#allocation6], %s4347_s18, %s4347_s18, %s4348_s20  }
  0x5a   : > { %s4349_s16 = smov [#allocation8]   ;;  %s4240_s26 = scalar_lea.hbm %s5230_s5, 512 }
  0x5b   : > { %s328_s19 = sshll.u32 %s4349_s16, 4  ;;  %p4241_p5 = scmp.ne.s32.totalorder %s5230_s5, %s4240_s26  ;;  %s329_s19 = int_to_ptr.vmem [resolvable:$true] %s328_s19 }
  0x5c   : > { %p4247_p3 = scmp.lt.u32.totalorder %s4240_s26, %s5230_s5 }
  0x5d   : > { %p4243_p10 = pnand %p4241_p5, %p4493_p0 }
  0x5f   : > { %p4244_p2 = pneg %p4243_p10 }
  0x61   : > { %p4249_p4 = pnand %p4247_p3, %p4244_p2 }
  0x63   : > { %4252 = shalt.err (!%p4249_p4)
}
  0x64   : > { %s4253_s12 = scalar_lea.vmem %s329_s19, 512  ;;  %p4261_p13 = scmp.lt.s32.totalorder %s329_s19, %s329_s19 }
  0x65   : > { %p4254_p7 = scmp.ne.s32.totalorder %s329_s19, %s4253_s12  ;;  %p4262_p1 = scmp.lt.s32.totalorder %s4253_s12, %s4253_s12 }
  0x67   : > { %p4256_p8 = pnand %p4254_p7, %p4493_p0  ;;  %p4263_p6 = por %p4262_p1, %p4261_p13 }
  0x69   : > { %p4257_p11 = pneg %p4256_p8 }
  0x6b   : > { %p4264_p9 = pnand %p4263_p6, %p4257_p11 }
  0x6d   : > { %4267 = shalt.err (!%p4264_p9)
}
  0x6e   : > { %3830 = dma.hbm_to_vmem [thread:$0]  (!%p4477_p12), %s5230_s5, 512, %s329_s19, [#allocation9], %s4347_s18, %s4347_s18, %s4348_s20  }
  0x6f   : > { %p5258_p5 = scmp.ne.s32.totalorder %s5255_s25, 0 }
  0x70   : > { %p5259_p0 = scmp.eq.s32.totalorder (!%p5258_p5), %s4439_s17, 0 }
  0x71   : > { %372 = sbr.rel (%p5258_p5) target bundleno = 8866 (0x22a2), region = 60 }
  0x78   : > { %4313 = dma.done.wait (%p5259_p0), [#allocation3], 512   ;;  %p5260_p10 = pmov %p5259_p0 }
  0x79   : > { %p5261_p2 = pmov %p5259_p0 }
  0x7a   : > { %4315 = vsyncadd (%p5260_p10), [#allocation3], 4294966784 }
  0x7b   : > { %4317 = dma.done.wait (%p5261_p2), [#allocation6], 1024   ;;  %p5262_p3 = pmov %p5259_p0 }
  0x7c   : > { %p5263_p4 = pmov %p5259_p0 }
  0x7d   : > { %4319 = vsyncadd (%p5262_p3), [#allocation6], 4294966272 }
  0x7e   : > { %4321 = dma.done.wait (%p5263_p4), [#allocation9], 512   ;;  %p5264_p12 = pmov %p5259_p0 }
  0x7f   : > { %p427_p7 = scmp.lt.s32.totalorder %s4439_s17, 1  ;;  %v549_v0 = vlaneseq  ;;  %v3954_v2 = vld [vmem:[#allocation2] sm:$0xff]   ;;  %v3955_v3 = vld [vmem:[#allocation2 + $0x8] sm:$0xff]   ;;  %vm491_vm0 = vcmask 261120   ;;  %s4350_s29 = smov 32   ;;  %vm652_vm1 = vcmask 64512  }
  0x80   : > { %4323 = vsyncadd (%p5264_p12), [#allocation9], 4294966784  ;;  %3568 = vmatprep.subr.bf16.mxu1 %v3954_v2  ;;  %v4626_v15 = vld [vmem:[%s5232_s7] sm:$0xff]  ;;  %s4351_s11 = smov 96   ;;  %v3957_v45 = vld [vmem:[#allocation5 + $0x8] sm:$0xff]   ;;  %s4352_s22 = smov 88  }
  0x81   : > { %s428_s15 = scalar_select %p427_p7, %s4439_s17, 1  ;;  %v4602_v1 = vshrl.u32 %v549_v0, 7  ;;  %3569 = vmatpush3.bf16.msra.mxu1 %v3954_v2  ;;  %v3956_v44 = vld [vmem:[#allocation5] sm:$0xff]   ;;  %vm1399_vm2 = vcmask 130048   ;;  %vm1404_vm3 = vcmask 195584   ;;  %vm1664_vm4 = vcmask 523264  }
  0x82   : > { %3570 = vmatprep.subr.bf16.mxu1 %v3955_v3  ;;  %s4353_s27 = smov 120   ;;  %s4354_s12 = smov 80  }
  0x83   : > { %s3457_s25 = sshll.u32 %s428_s15, 5  ;;  %v559_v4 = vsub.s32 1, %v4602_v1  ;;  %v551_v21 = vsub.s32 0, %v4602_v1  ;;  %v571_v56 = vsub.s32 2, %v4602_v1  ;;  %s4355_s30 = smov 112  }
  0x84   : > { %s4607_s20 = scalar_lea.vmem %s5225_s0, %s3457_s25  ;;  %s4612_s24 = scalar_lea.vmem %s5226_s1, %s3457_s25 }
  0x85   : > { %v438_v5 = vld [vmem:[%s4607_s20] sm:$0xff]  ;;  %v439_v6 = vld [vmem:[%s4607_s20 + $0x8] sm:$0xff]  ;;  %v440_v10 = vld [vmem:[%s4607_s20 + $0x10] sm:$0xff]  ;;  %v560_v18 = vrot.slane %v4626_v15, %v559_v4  ;;  %3571 = vmatpush3.bf16.msra.mxu1 %v3955_v3  ;;  %v552_v22 = vrot.slane %v4626_v15, %v551_v21  ;;  %v572_v57 = vrot.slane %v4626_v15, %v571_v56  ;;  %s4356_s13 = smov 72   ;;  %s4357_s15 = smov 104  }
  0x86   : > { %v442_v7 = vld [vmem:[%s4612_s24] sm:$0xff]  ;;  %v443_v8 = vld [vmem:[%s4612_s24 + $0x8] sm:$0xff]  ;;  %v441_v11 = vld [vmem:[%s4607_s20 + $0x18] sm:$0xff]  ;;  %v547_v46 = vpack.c.bf16 %v439_v6, %v438_v5  ;;  %3576 = vmatprep.subr.bf16.mxu1 %v3956_v44  ;;  %s4358_s25 = smov 8   ;;  %s4359_s28 = smov 16  }
  0x87   : > { %v473_v9 = vadd.f32 %v442_v7, %v438_v5  ;;  %v474_v12 = vadd.f32 %v443_v8, %v439_v6  ;;  %v444_v13 = vld [vmem:[%s4612_s24 + $0x10] sm:$0xff]  ;;  %v445_v14 = vld [vmem:[%s4612_s24 + $0x18] sm:$0xff]  ;;  %562 = vrot.lane.b32.xlu0 %v560_v18, %s4350_s29  ;;  %v548_v47 = vpack.c.bf16 %v441_v11, %v440_v10  ;;  %s5245_s18 = smov 24   ;;  %s424_s19 = sand.u32 1, %s4334_s14  }
  0x88   : > { %v475_v16 = vadd.f32 %v444_v13, %v440_v10  ;;  %v476_v17 = vadd.f32 %v445_v14, %v441_v11  ;;  %p5266_p11 = scmp.ne.s32.totalorder %s5252_s23, 0 }
  0x89   : > { %v477_v19 = vpack.c.bf16 %v474_v12, %v473_v9 }
  0x8a   : > { %v478_v20 = vpack.c.bf16 %v476_v17, %v475_v16 }
  0x8b   : > { %3572 = vmatprep.mubr.msk.bf16.mxu1 %vm491_vm0, %v477_v19 }
  0x8c   : > { %3573 = vmatmul.mubr.msk.bf16.vlgmr.msra.gmra.mrb[0].mxu1 %vm491_vm0, %v478_v20 }
  0x8d   : > { %3580 = vmatprep.mubr.msk.bf16.mxu1 %vm491_vm0, %v547_v46  ;;  %3577 = vmatpush3.bf16.msra.mxu1 %v3956_v44 }
  0x8e   : > { %3578 = vmatprep.subr.bf16.mxu1 %v3957_v45 }
  0x91   : > { %3579 = vmatpush3.bf16.msra.mxu1 %v3957_v45 }
  0x94   : > { %3581 = vmatmul.mubr.msk.bf16.vlgmr.msra.gmra.mrb[4].mxu1 %vm491_vm0, %v548_v47 }
  0xf9   : > { %v563_v23 = vpop.permute.xlu0 %562 }
 0x15f   : > { %v3574_v24 = vpop.f32.mrb[0].mxu1 }
 0x160   : > { %v555_v25 = vadd.f32 %v3574_v24, %v552_v22  ;;  %v532_v26 = vpop.f32.mrb[1].mxu1  ;;  %v567_v28 = vadd.f32 %v3574_v24, %v563_v23 }
 0x161   : > { %v3575_v27 = vpop.f32.mrb[2].mxu1  ;;  %v553_v32 = vadd.f32 %v552_v22, %v532_v26  ;;  %v565_v33 = vadd.f32 %v563_v23, %v532_v26 }
 0x162   : > { %v556_v29 = vadd.f32 %v3575_v27, %v552_v22  ;;  %v568_v30 = vadd.f32 %v3575_v27, %v563_v23  ;;  %v535_v31 = vpop.f32.mrb[3].mxu1 }
 0x163   : > { %v554_v34 = vadd.f32 %v552_v22, %v535_v31  ;;  %v566_v35 = vadd.f32 %v563_v23, %v535_v31 }
 0x164   : > { %v4638_v36 = vpack.c.bf16 %v556_v29, %v555_v25  ;;  %v4640_v37 = vpack.c.bf16 %v568_v30, %v567_v28 }
 0x165   : > { %v4642_v38 = vpack.c.bf16 %v554_v34, %v553_v32  ;;  %v4644_v39 = vpack.c.bf16 %v566_v35, %v565_v33 }
 0x166   : > { %650 = vrot.lane.b32.xlu1 %v4640_v37, %s4351_s11 }
 0x167   : > { %648 = vrot.lane.b32.xlu0 %v4644_v39, %s4351_s11  ;;  %3588 = vmatprep.mubr.msk.bf16.mxu0 %vm652_vm1, %v4642_v38  ;;  %v3582_v58 = vpop.f32.mrb[4].mxu1 }
 0x168   : > { %v634_v59 = vadd.f32 %v3582_v58, %v572_v57  ;;  %v625_v60 = vpop.f32.mrb[5].mxu1 }
 0x169   : > { %v626_v61 = vadd.f32 %v625_v60, %v572_v57  ;;  %v3583_v62 = vpop.f32.mrb[6].mxu1 }
 0x16a   : > { %v637_v63 = vadd.f32 %v3583_v62, %v572_v57  ;;  %v628_v0 = vpop.f32.mrb[7].mxu1 }
 0x16b   : > { %v629_v2 = vadd.f32 %v628_v0, %v572_v57 }
 0x16c   : > { %v4668_v3 = vpack.c.bf16 %v637_v63, %v634_v59 }
 0x16d   : > { %v4670_v5 = vpack.c.bf16 %v629_v2, %v626_v61 }
 0x16f   : > { %3592 = vmatprep.subr.bf16.mxu1 %v4670_v5 }
 0x170   : > { %3593 = vmatpush3.bf16.msra.mxu1 %v4670_v5 }
 0x171   : > { %3594 = vmatprep.subr.bf16.mxu1 %v4668_v3 }
 0x174   : > { %3595 = vmatpush3.bf16.msra.mxu1 %v4668_v3 }
 0x1d8   : > { %v651_v42 = vpop.permute.xlu1 %650 }
 0x1d9   : > { %v649_v40 = vpop.permute.xlu0 %648  ;;  %v663_v43 = vsel %vm652_vm1, %v651_v42, 0 }
 0x1da   : > { %3784 = vmatprep.subr.msk.bf16.mxu0 %vm652_vm1, %v649_v40  ;;  %v660_v41 = vsel %vm652_vm1, %v649_v40, 0 }
 0x1db   : > { %3585 = vmatpush3.bf16.xpose.msra.mxu0 %v660_v41 }
 0x1dc   : > { %3785 = vmatprep.subr.msk.bf16.mxu0 %vm652_vm1, %v651_v42 }
 0x1e3   : > { %3587 = vmatpush3.bf16.xpose.msra.mxu0 %v663_v43 }
 0x1ea   : > { %3589 = vmatmul.mubr.msk.bf16.vlgmr.msra.gmra.mrb[0].mxu0 %vm652_vm1, %v4638_v36 }
 0x2bd   : > { %v3590_v48 = vpop.f32.mrb[0].mxu0 }
 0x2be   : > { %v699_v49 = vpop.f32.mrb[1].mxu0  ;;  %v720_v55 = vsel %vm491_vm0, %v3590_v48, -inf }
 0x2bf   : > { %v3591_v50 = vpop.f32.mrb[2].mxu0  ;;  %v714_v51 = vsel %vm491_vm0, %v699_v49, -inf }
 0x2c0   : > { %715 = vmax.xlane.f32.xlu1 %v714_v51  ;;  %v702_v52 = vpop.f32.mrb[3].mxu0  ;;  %v723_v54 = vsel %vm491_vm0, %v3591_v50, -inf }
 0x2c1   : > { %v717_v53 = vsel %vm491_vm0, %v702_v52, -inf }
 0x2c2   : > { %718 = vmax.xlane.f32.xlu0 %v717_v53 }
 0x2c4   : > { %724 = vmax.xlane.f32.xlu1 %v723_v54 }
 0x2c6   : > { %721 = vmax.xlane.f32.xlu0 %v720_v55 }
 0x34d   : > { %v716_v6 = vpop.xlane.xlu1 %715 }
 0x34e   : > { %v726_v10 = vsub.f32 %v699_v49, %v716_v6 }
 0x34f   : > { %v719_v7 = vpop.xlane.xlu0 %718 }
 0x350   : > { %v727_v8 = vsub.f32 %v702_v52, %v719_v7  ;;  %v730_v17 = vmul.f32 1.442695, %v726_v10 }
 0x351   : > { %v725_v9 = vpop.xlane.xlu1 %724 }
 0x352   : > { %v732_v11 = vmul.f32 1.442695, %v727_v8  ;;  %v729_v12 = vsub.f32 %v3591_v50, %v725_v9 }
 0x353   : > { %v722_v13 = vpop.xlane.xlu0 %721 }
 0x354   : > { %3978 = vpow2.f32 %v732_v11  ;;  %v736_v14 = vmul.f32 1.442695, %v729_v12  ;;  %v728_v16 = vsub.f32 %v3590_v48, %v722_v13 }
 0x356   : > { %3980 = vpow2.f32 %v736_v14  ;;  %v734_v18 = vmul.f32 1.442695, %v728_v16 }
 0x358   : > { %3982 = vpow2.f32 %v734_v18 }
 0x359   : > { %3984 = vpow2.f32 %v730_v17 }
 0x35e   : > { %v3979_v19 = vpop.eup %3978 }
 0x35f   : > { %v741_v20 = vsel %vm491_vm0, %v3979_v19, 0.0 }
 0x360   : > { %v3981_v22 = vpop.eup %3980  ;;  %742 = vadd.xlane.f32.xlu1 %v741_v20 }
 0x361   : > { %v747_v24 = vsel %vm491_vm0, %v3981_v22, 0.0 }
 0x362   : > { %v3983_v23 = vpop.eup %3982 }
 0x363   : > { %v744_v25 = vsel %vm491_vm0, %v3983_v23, 0.0  ;;  %v3985_v26 = vpop.eup %3984 }
 0x364   : > { %748 = vadd.xlane.f32.xlu1 %v747_v24  ;;  %745 = vadd.xlane.f32.xlu0 %v744_v25  ;;  %v738_v27 = vsel %vm491_vm0, %v3985_v26, 0.0 }
 0x368   : > { %739 = vadd.xlane.f32.xlu0 %v738_v27 }
 0x375   : > { %823 = vrot.lane.b32.xlu1 %v4640_v37, %s4352_s22 }
 0x379   : > { %817 = vrot.lane.b32.xlu1 %v4642_v38, %s4353_s27 }
 0x37e   : > { %821 = vrot.lane.b32.xlu0 %v4644_v39, %s4352_s22 }
 0x382   : > { %819 = vrot.lane.b32.xlu0 %v4638_v36, %s4353_s27 }
 0x3ed   : > { %v743_v28 = vpop.xlane.xlu1 %742 }
 0x3f1   : > { %v749_v29 = vpop.xlane.xlu1 %748  ;;  %v746_v30 = vpop.xlane.xlu0 %745 }
 0x3f2   : > { %3986 = vrcp.f32 %v749_v29 }
 0x3f3   : > { %3988 = vrcp.f32 %v746_v30 }
 0x3f4   : > { %3990 = vrcp.f32 %v743_v28 }
 0x3f5   : > { %v740_v31 = vpop.xlane.xlu0 %739  ;;  %v824_v43 = vpop.permute.xlu1 %823 }
 0x3f6   : > { %3992 = vrcp.f32 %v740_v31  ;;  %v835_v50 = vsel %vm652_vm1, %v824_v43, 0 }
 0x3f9   : > { %v822_v32 = vpop.permute.xlu0 %821  ;;  %v818_v48 = vpop.permute.xlu1 %817 }
 0x3fa   : > { %3786 = vmatprep.subr.msk.bf16.mxu1 %vm652_vm1, %v822_v32  ;;  %v832_v49 = vsel %vm652_vm1, %v822_v32, 0 }
 0x3fc   : > { %v3987_v33 = vpop.eup %3986 }
 0x3fd   : > { %v3989_v34 = vpop.eup %3988  ;;  %v757_v41 = vmul.f32 %v3987_v33, %v3981_v22  ;;  %v820_v51 = vpop.permute.xlu0 %819 }
 0x3fe   : > { %v3991_v35 = vpop.eup %3990  ;;  %v756_v42 = vmul.f32 %v3989_v34, %v3983_v23 }
 0x3ff   : > { %v755_v45 = vmul.f32 %v3991_v35, %v3979_v19 }
 0x400   : > { %v3993_v40 = vpop.eup %3992  ;;  %v759_v47 = vpack.c.bf16 %v757_v41, %v756_v42 }
 0x401   : > { %v754_v44 = vmul.f32 %v3993_v40, %v3985_v26 }
 0x403   : > { %v758_v46 = vpack.c.bf16 %v755_v45, %v754_v44 }
 0x405   : > { %3596 = vmatprep.mubr.msk.bf16.mxu1 %vm491_vm0, %v758_v46 }
 0x406   : > { %3597 = vmatmul.mubr.msk.bf16.vlgmr.msra.gmra.mrb[8].mxu1 %vm491_vm0, %v759_v47 }
 0x407   : > { %3601 = vmatpush3.bf16.xpose.msra.mxu1 %v832_v49  ;;  %3604 = vmatprep.mubr.msk.bf16.mxu1 %vm652_vm1, %v818_v48 }
 0x408   : > { %3787 = vmatprep.subr.msk.bf16.mxu1 %vm652_vm1, %v824_v43 }
 0x40f   : > { %3603 = vmatpush3.bf16.xpose.msra.mxu1 %v835_v50 }
 0x416   : > { %3605 = vmatmul.mubr.msk.bf16.vlgmr.msra.gmra.mrb[12].mxu1 %vm652_vm1, %v820_v51 }
 0x4d9   : > { %v4696_v52 = vpop.f32.mrb[8].mxu1 }
 0x4da   : > { %v4698_v53 = vpop.f32.mrb[9].mxu1 }
 0x4db   : > { %v4700_v54 = vpop.f32.mrb[10].mxu1 }
 0x4dc   : > { %v4702_v55 = vpop.f32.mrb[11].mxu1 }
 0x4e9   : > { %v3606_v57 = vpop.f32.mrb[12].mxu1 }
 0x4ea   : > { %v871_v58 = vpop.f32.mrb[13].mxu1  ;;  %v892_v0 = vsel %vm491_vm0, %v3606_v57, -inf }
 0x4eb   : > { %v3607_v59 = vpop.f32.mrb[14].mxu1  ;;  %v886_v60 = vsel %vm491_vm0, %v871_v58, -inf }
 0x4ec   : > { %887 = vmax.xlane.f32.xlu1 %v886_v60  ;;  %v874_v61 = vpop.f32.mrb[15].mxu1  ;;  %v895_v63 = vsel %vm491_vm0, %v3607_v59, -inf }
 0x4ed   : > { %v889_v62 = vsel %vm491_vm0, %v874_v61, -inf }
 0x4ee   : > { %890 = vmax.xlane.f32.xlu0 %v889_v62 }
 0x4f0   : > { %896 = vmax.xlane.f32.xlu1 %v895_v63 }
 0x4f2   : > { %893 = vmax.xlane.f32.xlu0 %v892_v0 }
 0x501   : > { %936 = vrot.lane.b32.xlu1 %v4668_v3, %s4353_s27 }
 0x579   : > { %v888_v2 = vpop.xlane.xlu1 %887 }
 0x57a   : > { %v898_v9 = vsub.f32 %v871_v58, %v888_v2 }
 0x57b   : > { %v891_v6 = vpop.xlane.xlu0 %890 }
 0x57c   : > { %v899_v7 = vsub.f32 %v874_v61, %v891_v6  ;;  %v902_v16 = vmul.f32 1.442695, %v898_v9 }
 0x57d   : > { %v897_v8 = vpop.xlane.xlu1 %896 }
 0x57e   : > { %v901_v10 = vsub.f32 %v3607_v59, %v897_v8  ;;  %v904_v11 = vmul.f32 1.442695, %v899_v7 }
 0x57f   : > { %v894_v12 = vpop.xlane.xlu0 %893 }
 0x580   : > { %v908_v13 = vmul.f32 1.442695, %v901_v10  ;;  %v900_v14 = vsub.f32 %v3606_v57, %v894_v12 }
 0x581   : > { %v937_v27 = vpop.permute.xlu1 %936 }
 0x582   : > { %3994 = vpow2.f32 %v908_v13  ;;  %v906_v17 = vmul.f32 1.442695, %v900_v14 }
 0x583   : > { %3996 = vpow2.f32 %v904_v11 }
 0x584   : > { %3998 = vpow2.f32 %v906_v17 }
 0x585   : > { %4000 = vpow2.f32 %v902_v16 }
 0x58c   : > { %v3995_v18 = vpop.eup %3994 }
 0x58d   : > { %v3997_v19 = vpop.eup %3996  ;;  %v919_v20 = vsel %vm491_vm0, %v3995_v18, 0.0 }
 0x58e   : > { %v3999_v22 = vpop.eup %3998  ;;  %920 = vadd.xlane.f32.xlu1 %v919_v20  ;;  %v913_v25 = vsel %vm491_vm0, %v3997_v19, 0.0 }
 0x58f   : > { %v916_v23 = vsel %vm491_vm0, %v3999_v22, 0.0  ;;  %v4001_v24 = vpop.eup %4000 }
 0x590   : > { %917 = vadd.xlane.f32.xlu0 %v916_v23  ;;  %v910_v26 = vsel %vm491_vm0, %v4001_v24, 0.0 }
 0x592   : > { %914 = vadd.xlane.f32.xlu1 %v913_v25 }
 0x594   : > { %911 = vadd.xlane.f32.xlu0 %v910_v26 }
 0x5a3   : > { %999 = vrot.lane.b32.xlu1 %v4644_v39, %s4354_s12 }
 0x5a7   : > { %995 = vrot.lane.b32.xlu1 %v4642_v38, %s4355_s30 }
 0x5aa   : > { %934 = vrot.lane.b32.xlu0 %v4670_v5, %s4353_s27 }
 0x5ae   : > { %1001 = vrot.lane.b32.xlu0 %v4640_v37, %s4354_s12 }
 0x5b2   : > { %997 = vrot.lane.b32.xlu0 %v4638_v36, %s4355_s30 }
 0x61b   : > { %v921_v28 = vpop.xlane.xlu1 %920 }
 0x61d   : > { %v918_v29 = vpop.xlane.xlu0 %917 }
 0x61e   : > { %4002 = vrcp.f32 %v918_v29 }
 0x61f   : > { %v915_v30 = vpop.xlane.xlu1 %914 }
 0x620   : > { %4004 = vrcp.f32 %v915_v30 }
 0x621   : > { %4006 = vrcp.f32 %v921_v28  ;;  %v912_v31 = vpop.xlane.xlu0 %911 }
 0x622   : > { %4008 = vrcp.f32 %v912_v31 }
 0x623   : > { %v1000_v40 = vpop.permute.xlu1 %999 }
 0x624   : > { %v1010_v49 = vsel %vm652_vm1, %v1000_v40, 0 }
 0x625   : > { %v935_v32 = vpop.permute.xlu0 %934 }
 0x626   : > { %3608 = vmatprep.subr.bf16.mxu0 %v935_v32 }
 0x627   : > { %3609 = vmatpush3.bf16.msra.mxu0 %v935_v32  ;;  %v996_v48 = vpop.permute.xlu1 %995 }
 0x628   : > { %3610 = vmatprep.subr.bf16.mxu0 %v937_v27  ;;  %v4003_v33 = vpop.eup %4002 }
 0x629   : > { %v928_v42 = vmul.f32 %v4003_v33, %v3999_v22  ;;  %v1002_v50 = vpop.permute.xlu0 %1001 }
 0x62a   : > { %v4005_v34 = vpop.eup %4004  ;;  %v1013_v51 = vsel %vm652_vm1, %v1002_v50, 0 }
 0x62b   : > { %v4007_v35 = vpop.eup %4006  ;;  %3611 = vmatpush3.bf16.msra.mxu0 %v937_v27  ;;  %v927_v44 = vmul.f32 %v4005_v34, %v3997_v19 }
 0x62c   : > { %v4009_v41 = vpop.eup %4008  ;;  %3788 = vmatprep.subr.msk.bf16.mxu0 %vm652_vm1, %v1000_v40  ;;  %v929_v45 = vmul.f32 %v4007_v35, %v3995_v18 }
 0x62d   : > { %v926_v43 = vmul.f32 %v4009_v41, %v4001_v24  ;;  %v998_v57 = vpop.permute.xlu0 %997 }
 0x62e   : > { %v931_v47 = vpack.c.bf16 %v929_v45, %v928_v42 }
 0x62f   : > { %v930_v46 = vpack.c.bf16 %v927_v44, %v926_v43 }
 0x631   : > { %3612 = vmatprep.mubr.msk.bf16.mxu0 %vm491_vm0, %v930_v46 }
 0x632   : > { %3613 = vmatmul.mubr.msk.bf16.vlgmr.msra.gmra.mrb[4].mxu0 %vm491_vm0, %v931_v47 }
 0x633   : > { %3620 = vmatprep.mubr.msk.bf16.mxu0 %vm652_vm1, %v996_v48 }
 0x634   : > { %3617 = vmatpush3.bf16.xpose.msra.mxu0 %v1010_v49 }
 0x635   : > { %3789 = vmatprep.subr.msk.bf16.mxu0 %vm652_vm1, %v1002_v50 }
 0x63c   : > { %3619 = vmatpush3.bf16.xpose.msra.mxu0 %v1013_v51 }
 0x643   : > { %3621 = vmatmul.mubr.msk.bf16.vlgmr.msra.gmra.mrb[8].mxu0 %vm652_vm1, %v998_v57 }
 0x705   : > { %v4732_v58 = vpop.f32.mrb[4].mxu0 }
 0x706   : > { %v4734_v59 = vpop.f32.mrb[5].mxu0 }
 0x707   : > { %v4736_v60 = vpop.f32.mrb[6].mxu0 }
 0x708   : > { %v3899_v61 = vpack.i.bf16 %v4736_v60, %v4732_v58  ;;  %v4740_v62 = vpop.f32.mrb[7].mxu0 }
 0x709   : > { %v3894_v63 = vpack.i.bf16 %v4740_v62, %v4734_v59 }
 0x716   : > { %v3622_v0 = vpop.f32.mrb[8].mxu0 }
 0x717   : > { %v1049_v2 = vpop.f32.mrb[9].mxu0  ;;  %v1070_v11 = vsel %vm491_vm0, %v3622_v0, -inf }
 0x718   : > { %v3623_v6 = vpop.f32.mrb[10].mxu0  ;;  %v1064_v7 = vsel %vm491_vm0, %v1049_v2, -inf }
 0x719   : > { %1065 = vmax.xlane.f32.xlu1 %v1064_v7  ;;  %v1052_v8 = vpop.f32.mrb[11].mxu0  ;;  %v1073_v10 = vsel %vm491_vm0, %v3623_v6, -inf }
 0x71a   : > { %v1067_v9 = vsel %vm491_vm0, %v1052_v8, -inf }
 0x71b   : > { %1068 = vmax.xlane.f32.xlu0 %v1067_v9 }
 0x71d   : > { %1074 = vmax.xlane.f32.xlu1 %v1073_v10 }
 0x71f   : > { %1071 = vmax.xlane.f32.xlu0 %v1070_v11 }
 0x72e   : > { %1112 = vrot.lane.b32.xlu1 %v4668_v3, %s4355_s30 }
 0x7a6   : > { %v1066_v12 = vpop.xlane.xlu1 %1065 }
 0x7a7   : > { %v1076_v17 = vsub.f32 %v1049_v2, %v1066_v12 }
 0x7a8   : > { %v1069_v13 = vpop.xlane.xlu0 %1068 }
 0x7a9   : > { %v1077_v14 = vsub.f32 %v1052_v8, %v1069_v13  ;;  %v1080_v24 = vmul.f32 1.442695, %v1076_v17 }
 0x7aa   : > { %v1075_v16 = vpop.xlane.xlu1 %1074 }
 0x7ab   : > { %v1079_v18 = vsub.f32 %v3623_v6, %v1075_v16  ;;  %v1082_v19 = vmul.f32 1.442695, %v1077_v14 }
 0x7ac   : > { %v1072_v20 = vpop.xlane.xlu0 %1071 }
 0x7ad   : > { %v1086_v22 = vmul.f32 1.442695, %v1079_v18  ;;  %v1078_v23 = vsub.f32 %v3622_v0, %v1072_v20 }
 0x7ae   : > { %v1113_v34 = vpop.permute.xlu1 %1112 }
 0x7af   : > { %4010 = vpow2.f32 %v1086_v22  ;;  %v1084_v25 = vmul.f32 1.442695, %v1078_v23 }
 0x7b0   : > { %4012 = vpow2.f32 %v1082_v19 }
 0x7b1   : > { %4014 = vpow2.f32 %v1084_v25 }
 0x7b2   : > { %4016 = vpow2.f32 %v1080_v24 }
 0x7b9   : > { %v4011_v26 = vpop.eup %4010 }
 0x7ba   : > { %v4013_v27 = vpop.eup %4012  ;;  %v1097_v28 = vsel %vm491_vm0, %v4011_v26, 0.0 }
 0x7bb   : > { %v4015_v29 = vpop.eup %4014  ;;  %1098 = vadd.xlane.f32.xlu1 %v1097_v28  ;;  %v1091_v32 = vsel %vm491_vm0, %v4013_v27, 0.0 }
 0x7bc   : > { %v1094_v30 = vsel %vm491_vm0, %v4015_v29, 0.0  ;;  %v4017_v31 = vpop.eup %4016 }
 0x7bd   : > { %1095 = vadd.xlane.f32.xlu0 %v1094_v30  ;;  %v1088_v33 = vsel %vm491_vm0, %v4017_v31, 0.0 }
 0x7bf   : > { %1092 = vadd.xlane.f32.xlu1 %v1091_v32 }
 0x7c1   : > { %1089 = vadd.xlane.f32.xlu0 %v1088_v33 }
 0x7d0   : > { %1175 = vrot.lane.b32.xlu1 %v4644_v39, %s4356_s13 }
 0x7d4   : > { %1171 = vrot.lane.b32.xlu1 %v4642_v38, %s4357_s15 }
 0x7d7   : > { %1110 = vrot.lane.b32.xlu0 %v4670_v5, %s4355_s30 }
 0x7db   : > { %1177 = vrot.lane.b32.xlu0 %v4640_v37, %s4356_s13 }
 0x7df   : > { %1173 = vrot.lane.b32.xlu0 %v4638_v36, %s4357_s15 }
 0x848   : > { %v1099_v35 = vpop.xlane.xlu1 %1098 }
 0x84a   : > { %v1096_v40 = vpop.xlane.xlu0 %1095 }
 0x84b   : > { %4018 = vrcp.f32 %v1096_v40 }
 0x84c   : > { %v1093_v41 = vpop.xlane.xlu1 %1092 }
 0x84d   : > { %4020 = vrcp.f32 %v1093_v41 }
 0x84e   : > { %4022 = vrcp.f32 %v1099_v35  ;;  %v1090_v39 = vpop.xlane.xlu0 %1089 }
 0x84f   : > { %4024 = vrcp.f32 %v1090_v39 }
 0x850   : > { %v1176_v37 = vpop.permute.xlu1 %1175 }
 0x851   : > { %v1186_v57 = vsel %vm652_vm1, %v1176_v37, 0 }
 0x852   : > { %v1111_v42 = vpop.permute.xlu0 %1110 }
 0x853   : > { %3624 = vmatprep.subr.bf16.mxu1 %v1111_v42 }
 0x854   : > { %3625 = vmatpush3.bf16.msra.mxu1 %v1111_v42  ;;  %v1172_v51 = vpop.permute.xlu1 %1171 }
 0x855   : > { %3626 = vmatprep.subr.bf16.mxu1 %v1113_v34  ;;  %v4019_v38 = vpop.eup %4018 }
 0x856   : > { %v1106_v36 = vmul.f32 %v4019_v38, %v4015_v29  ;;  %v1178_v0 = vpop.permute.xlu0 %1177 }
 0x857   : > { %v4021_v43 = vpop.eup %4020  ;;  %v1189_v2 = vsel %vm652_vm1, %v1178_v0, 0 }
 0x858   : > { %v4023_v44 = vpop.eup %4022  ;;  %3627 = vmatpush3.bf16.msra.mxu1 %v1113_v34  ;;  %v1105_v47 = vmul.f32 %v4021_v43, %v4013_v27 }
 0x859   : > { %v4025_v45 = vpop.eup %4024  ;;  %3790 = vmatprep.subr.msk.bf16.mxu1 %vm652_vm1, %v1176_v37  ;;  %v1107_v48 = vmul.f32 %v4023_v44, %v4011_v26 }
 0x85a   : > { %v1104_v46 = vmul.f32 %v4025_v45, %v4017_v31  ;;  %v1174_v6 = vpop.permute.xlu0 %1173 }
 0x85b   : > { %v1109_v50 = vpack.c.bf16 %v1107_v48, %v1106_v36 }
 0x85c   : > { %v1108_v49 = vpack.c.bf16 %v1105_v47, %v1104_v46 }
 0x85e   : > { %3628 = vmatprep.mubr.msk.bf16.mxu1 %vm491_vm0, %v1108_v49 }
 0x85f   : > { %3629 = vmatmul.mubr.msk.bf16.vlgmr.msra.gmra.mrb[16].mxu1 %vm491_vm0, %v1109_v50 }
 0x860   : > { %3636 = vmatprep.mubr.msk.bf16.mxu1 %vm652_vm1, %v1172_v51  ;;  %v3958_v51 = vld [vmem:[#allocation7] sm:$0xff]  }
 0x861   : > { %3633 = vmatpush3.bf16.xpose.msra.mxu1 %v1186_v57  ;;  %v3959_v57 = vld [vmem:[#allocation7 + $0x8] sm:$0xff]  }
 0x862   : > { %3791 = vmatprep.subr.msk.bf16.mxu1 %vm652_vm1, %v1178_v0 }
 0x869   : > { %3635 = vmatpush3.bf16.xpose.msra.mxu1 %v1189_v2 }
 0x870   : > { %3637 = vmatmul.mubr.msk.bf16.vlgmr.msra.gmra.mrb[20].mxu1 %vm652_vm1, %v1174_v6 }
 0x932   : > { %v3630_v7 = vpop.f32.mrb[16].mxu1 }
 0x933   : > { %v1156_v8 = vpop.f32.mrb[17].mxu1 }
 0x934   : > { %v3631_v9 = vpop.f32.mrb[18].mxu1 }
 0x935   : > { %v3909_v10 = vpack.i.bf16 %v3631_v9, %v3630_v7  ;;  %v1159_v11 = vpop.f32.mrb[19].mxu1 }
 0x936   : > { %v3904_v12 = vpack.i.bf16 %v1159_v11, %v1156_v8 }
 0x943   : > { %v3638_v13 = vpop.f32.mrb[20].mxu1 }
 0x944   : > { %v1225_v14 = vpop.f32.mrb[21].mxu1  ;;  %v1246_v22 = vsel %vm491_vm0, %v3638_v13, -inf }
 0x945   : > { %v3639_v16 = vpop.f32.mrb[22].mxu1  ;;  %v1240_v17 = vsel %vm491_vm0, %v1225_v14, -inf }
 0x946   : > { %1241 = vmax.xlane.f32.xlu1 %v1240_v17  ;;  %v1228_v18 = vpop.f32.mrb[23].mxu1  ;;  %v1249_v20 = vsel %vm491_vm0, %v3639_v16, -inf }
 0x947   : > { %v1243_v19 = vsel %vm491_vm0, %v1228_v18, -inf }
 0x948   : > { %1244 = vmax.xlane.f32.xlu0 %v1243_v19 }
 0x94a   : > { %1250 = vmax.xlane.f32.xlu1 %v1249_v20 }
 0x94c   : > { %1247 = vmax.xlane.f32.xlu0 %v1246_v22 }
 0x9d3   : > { %v1242_v23 = vpop.xlane.xlu1 %1241 }
 0x9d4   : > { %v1252_v27 = vsub.f32 %v1225_v14, %v1242_v23 }
 0x9d5   : > { %v1245_v24 = vpop.xlane.xlu0 %1244 }
 0x9d6   : > { %v1253_v25 = vsub.f32 %v1228_v18, %v1245_v24  ;;  %v1256_v33 = vmul.f32 1.442695, %v1252_v27 }
 0x9d7   : > { %v1251_v26 = vpop.xlane.xlu1 %1250 }
 0x9d8   : > { %v1255_v28 = vsub.f32 %v3639_v16, %v1251_v26  ;;  %v1258_v29 = vmul.f32 1.442695, %v1253_v25 }
 0x9d9   : > { %v1248_v30 = vpop.xlane.xlu0 %1247 }
 0x9da   : > { %v1262_v31 = vmul.f32 1.442695, %v1255_v28  ;;  %v1254_v32 = vsub.f32 %v3638_v13, %v1248_v30 }
 0x9dc   : > { %4026 = vpow2.f32 %v1262_v31  ;;  %v1260_v34 = vmul.f32 1.442695, %v1254_v32 }
 0x9dd   : > { %4028 = vpow2.f32 %v1258_v29 }
 0x9de   : > { %4030 = vpow2.f32 %v1260_v34 }
 0x9df   : > { %4032 = vpow2.f32 %v1256_v33 }
 0x9e6   : > { %v4027_v35 = vpop.eup %4026 }
 0x9e7   : > { %v4029_v40 = vpop.eup %4028  ;;  %v1273_v41 = vsel %vm491_vm0, %v4027_v35, 0.0 }
 0x9e8   : > { %v4031_v39 = vpop.eup %4030  ;;  %1274 = vadd.xlane.f32.xlu1 %v1273_v41  ;;  %v1267_v43 = vsel %vm491_vm0, %v4029_v40, 0.0 }
 0x9e9   : > { %v1270_v42 = vsel %vm491_vm0, %v4031_v39, 0.0  ;;  %v4033_v38 = vpop.eup %4032 }
 0x9ea   : > { %1271 = vadd.xlane.f32.xlu0 %v1270_v42  ;;  %v1264_v44 = vsel %vm491_vm0, %v4033_v38, 0.0 }
 0x9ec   : > { %1268 = vadd.xlane.f32.xlu1 %v1267_v43 }
 0x9ee   : > { %1265 = vadd.xlane.f32.xlu0 %v1264_v44 }
 0x9fd   : > { %1288 = vrot.lane.b32.xlu1 %v4668_v3, %s4357_s15 }
 0xa01   : > { %3895 = vrot.lane.b32.xlu1 %v3894_v63, %s4358_s25 }
 0xa04   : > { %1286 = vrot.lane.b32.xlu0 %v4670_v5, %s4357_s15 }
 0xa05   : > { %3905 = vrot.lane.b32.xlu1 %v3904_v12, %s4359_s28 }
 0xa08   : > { %3900 = vrot.lane.b32.xlu0 %v3899_v61, %s4358_s25 }
 0xa0c   : > { %3910 = vrot.lane.b32.xlu0 %v3909_v10, %s4359_s28 }
 0xa75   : > { %v1275_v3 = vpop.xlane.xlu1 %1274 }
 0xa77   : > { %v1272_v37 = vpop.xlane.xlu0 %1271 }
 0xa78   : > { %4034 = vrcp.f32 %v1272_v37 }
 0xa79   : > { %v1269_v45 = vpop.xlane.xlu1 %1268 }
 0xa7a   : > { %4036 = vrcp.f32 %v1269_v45 }
 0xa7b   : > { %4038 = vrcp.f32 %v1275_v3  ;;  %v1266_v59 = vpop.xlane.xlu0 %1265 }
 0xa7c   : > { %4040 = vrcp.f32 %v1266_v59 }
 0xa7d   : > { %v1289_v5 = vpop.permute.xlu1 %1288 }
 0xa7f   : > { %v1287_v62 = vpop.permute.xlu0 %1286 }
 0xa80   : > { %3640 = vmatprep.subr.bf16.mxu0 %v1287_v62 }
 0xa81   : > { %3641 = vmatpush3.bf16.msra.mxu0 %v1287_v62  ;;  %v3896_v11 = vpop.permute.xlu1 %3895 }
 0xa82   : > { %3642 = vmatprep.subr.bf16.mxu0 %v1289_v5  ;;  %v4035_v63 = vpop.eup %4034  ;;  %v3898_v13 = vunpack.i.h.bf16 %v3896_v11  ;;  %v3897_v14 = vunpack.i.l.bf16 %v3896_v11 }
 0xa83   : > { %v1282_v60 = vmul.f32 %v4035_v63, %v4031_v39  ;;  %v3901_v10 = vpop.permute.xlu0 %3900 }
 0xa84   : > { %v4037_v36 = vpop.eup %4036  ;;  %v3903_v17 = vunpack.i.h.bf16 %v3901_v10  ;;  %v3902_v18 = vunpack.i.l.bf16 %v3901_v10  ;;  %v1396_v24 = vsel %vm652_vm1, %v4702_v55, %v3898_v13  ;;  %v1395_v25 = vsel %vm652_vm1, %v4698_v53, %v3897_v14 }
 0xa85   : > { %v4039_v46 = vpop.eup %4038  ;;  %3643 = vmatpush3.bf16.msra.mxu0 %v1289_v5  ;;  %v1281_v47 = vmul.f32 %v4037_v36, %v4029_v40  ;;  %v3906_v16 = vpop.permute.xlu1 %3905  ;;  %v4146_v36 = vld [vmem:[%s4607_s20] sm:$0xff] }
 0xa86   : > { %v4041_v58 = vpop.eup %4040  ;;  %v1283_v48 = vmul.f32 %v4039_v46, %v4027_v35  ;;  %3648 = vmatprep.subr.bf16.mxu0 %v3958_v51  ;;  %v3908_v22 = vunpack.i.h.bf16 %v3906_v16  ;;  %v3907_v23 = vunpack.i.l.bf16 %v3906_v16  ;;  %v1398_v27 = vsel %vm652_vm1, %v4700_v54, %v3903_v17 }
 0xa87   : > { %v1280_v61 = vmul.f32 %v4041_v58, %v4033_v38  ;;  %v3911_v12 = vpop.permute.xlu0 %3910  ;;  %v1397_v28 = vsel %vm652_vm1, %v4696_v52, %v3902_v18  ;;  %v1413_v38 = vsub.s32 3, %v4602_v1 }
 0xa88   : > { %v1285_v50 = vpack.c.bf16 %v1283_v48, %v1282_v60  ;;  %v3913_v19 = vunpack.i.h.bf16 %v3911_v12  ;;  %v3912_v20 = vunpack.i.l.bf16 %v3911_v12  ;;  %v1400_v53 = vsel %vm1399_vm2, %v1395_v25, %v3907_v23  ;;  %v4147_v60 = vld [vmem:[%s4607_s20 + $0x8] sm:$0xff] }
 0xa89   : > { %v1284_v49 = vpack.c.bf16 %v1281_v47, %v1280_v61  ;;  %v1401_v35 = vsel %vm1399_vm2, %v1396_v24, %v3908_v22  ;;  %v1414_v43 = vrot.slane %v4626_v15, %v1413_v38  ;;  %v4148_v47 = vld [vmem:[%s4607_s20 + $0x18] sm:$0xff] }
 0xa8a   : > { %v1402_v32 = vsel %vm1399_vm2, %v1397_v28, %v3912_v20  ;;  %v1403_v33 = vsel %vm1399_vm2, %v1398_v27, %v3913_v19  ;;  %v3961_v27 = vld [vmem:[#allocation8 + $0x8] sm:$0xff]   ;;  %v3962_v28 = vld [vmem:[%s5231_s6] sm:$0xff]  }
 0xa8b   : > { %3644 = vmatprep.mubr.msk.bf16.mxu0 %vm491_vm0, %v1284_v49  ;;  %v4149_v49 = vld [vmem:[%s4607_s20 + $0x10] sm:$0xff] }
 0xa8c   : > { %3645 = vmatmul.mubr.msk.bf16.vlgmr.msra.gmra.mrb[12].mxu0 %vm491_vm0, %v1285_v50 }
 0xa8d   : > { %3649 = vmatpush3.bf16.msra.mxu0 %v3958_v51 }
 0xa8e   : > { %3650 = vmatprep.subr.bf16.mxu0 %v3959_v57 }
 0xa91   : > { %3651 = vmatpush3.bf16.msra.mxu0 %v3959_v57 }
 0xa92   : > { %3664 = vmatprep.subr.bf16.mxu0 %v3962_v28 }
 0xb5f   : > { %v3646_v0 = vpop.f32.mrb[12].mxu0 }
 0xb60   : > { %v1332_v2 = vpop.f32.mrb[13].mxu0 }
 0xb61   : > { %v3647_v6 = vpop.f32.mrb[14].mxu0 }
 0xb62   : > { %v3919_v7 = vpack.i.bf16 %v3647_v6, %v3646_v0  ;;  %v1335_v8 = vpop.f32.mrb[15].mxu0 }
 0xb63   : > { %v3914_v9 = vpack.i.bf16 %v1335_v8, %v1332_v2 }
 0xb64   : > { %3920 = vrot.lane.b32.xlu0 %v3919_v7, %s5245_s18 }
 0xb65   : > { %3915 = vrot.lane.b32.xlu1 %v3914_v9, %s5245_s18  ;;  %s4361_s18 = smov [#allocation10]  }
 0xb66   : > { %s4272_s16 = sshll.u32 %s4361_s18, 4  ;;  %s4273_s16 = int_to_ptr.vmem [resolvable:$false] %s4272_s16 }
 0xbd6   : > { %v3921_v26 = vpop.permute.xlu0 %3920 }
 0xbd7   : > { %v3923_v29 = vunpack.i.h.bf16 %v3921_v26  ;;  %v3922_v30 = vunpack.i.l.bf16 %v3921_v26  ;;  %v3916_v31 = vpop.permute.xlu1 %3915  ;;  %v3960_v26 = vld [vmem:[#allocation8] sm:$0xff]  }
 0xbd8   : > { %v3918_v55 = vunpack.i.h.bf16 %v3916_v31  ;;  %v3917_v34 = vunpack.i.l.bf16 %v3916_v31  ;;  %3656 = vmatprep.subr.bf16.mxu1 %v3960_v26 }
 0xbd9   : > { %v1407_v40 = vsel %vm1404_vm3, %v1402_v32, %v3922_v30  ;;  %v1408_v54 = vsel %vm1404_vm3, %v1403_v33, %v3923_v29  ;;  %3657 = vmatpush3.bf16.msra.mxu1 %v3960_v26  ;;  %v3963_v29 = vld [vmem:[%s5231_s6 + $0x8] sm:$0xff]  }
 0xbda   : > { %v1410_v41 = vpack.c.bf16 %v1408_v54, %v1407_v40  ;;  %v1406_v52 = vsel %vm1404_vm3, %v1401_v35, %v3918_v55  ;;  %v1405_v39 = vsel %vm1404_vm3, %v1400_v53, %v3917_v34  ;;  %3658 = vmatprep.subr.bf16.mxu1 %v3961_v27 }
 0xbdb   : > { %v1409_v42 = vpack.c.bf16 %v1406_v52, %v1405_v39  ;;  %v1541_v39 = vsub.s32 5, %v4602_v1 }
 0xbdd   : > { %3652 = vmatprep.mubr.msk.bf16.mxu0 %vm491_vm0, %v1409_v42  ;;  %3659 = vmatpush3.bf16.msra.mxu1 %v3961_v27  ;;  %v4842_v42 = vld [vmem:[%s5232_s7] sm:$0xff] }
 0xbde   : > { %3653 = vmatmul.mubr.msk.bf16.vlgmr.msra.gmra.mrb[16].mxu0 %vm491_vm0, %v1410_v41 }
 0xbdf   : > { %3665 = vmatpush3.bf16.msra.mxu0 %v3962_v28 }
 0xbe0   : > { %3666 = vmatprep.subr.bf16.mxu0 %v3963_v29 }
 0xbe3   : > { %3667 = vmatpush3.bf16.msra.mxu0 %v3963_v29 }
 0xcb1   : > { %v3654_v44 = vpop.f32.mrb[16].mxu0 }
 0xcb2   : > { %v1467_v3 = vpop.f32.mrb[17].mxu0  ;;  %v1476_v5 = vadd.f32 %v3654_v44, %v1414_v43  ;;  %v1549_v44 = vsub.s32 6, %v4602_v1 }
 0xcb3   : > { %v1468_v37 = vadd.f32 %v1467_v3, %v1414_v43  ;;  %v3655_v45 = vpop.f32.mrb[18].mxu0 }
 0xcb4   : > { %v1479_v59 = vadd.f32 %v3655_v45, %v1414_v43  ;;  %v1470_v62 = vpop.f32.mrb[19].mxu0  ;;  %v1484_v50 = vadd.f32 %v4149_v49, %v1476_v5  ;;  %v1550_v5 = vrot.slane %v4842_v42, %v1549_v44 }
 0xcb5   : > { %v1471_v63 = vadd.f32 %v1470_v62, %v1414_v43  ;;  %v1482_v46 = vadd.f32 %v4146_v36, %v1468_v37  ;;  %v1542_v43 = vrot.slane %v4842_v42, %v1541_v39 }
 0xcb6   : > { %v1485_v48 = vadd.f32 %v4148_v47, %v1479_v59  ;;  %v1492_v57 = vsel %vm491_vm0, %v1484_v50, 0.0 }
 0xcb7   : > { %v1486_v58 = vsel %vm491_vm0, %v1482_v46, 0.0  ;;  %v1483_v61 = vadd.f32 %v4147_v60, %v1471_v63 }
 0xcb8   : > { %1487 = vadd.xlane.f32.xlu1 %v1486_v58  ;;  %v1495_v51 = vsel %vm491_vm0, %v1485_v48, 0.0 }
 0xcb9   : > { %v1489_v15 = vsel %vm491_vm0, %v1483_v61, 0.0 }
 0xcba   : > { %1490 = vadd.xlane.f32.xlu0 %v1489_v15 }
 0xcbc   : > { %1496 = vadd.xlane.f32.xlu1 %v1495_v51 }
 0xcbe   : > { %1493 = vadd.xlane.f32.xlu0 %v1492_v57 }
 0xd45   : > { %v1488_v0 = vpop.xlane.xlu1 %1487 }
 0xd46   : > { %v1499_v2 = vmul.f32 0.03125, %v1488_v0  ;;  %v3964_v0 = vld [vmem:[%s5231_s6 + $0x10] sm:$0xff]  }
 0xd47   : > { %v1491_v6 = vpop.xlane.xlu0 %1490  ;;  %3668 = vmatprep.subr.bf16.mxu0 %v3964_v0 }
 0xd48   : > { %v1503_v7 = vsub.f32 %v1482_v46, %v1499_v2  ;;  %v1500_v8 = vmul.f32 0.03125, %v1491_v6  ;;  %3669 = vmatpush3.bf16.msra.mxu0 %v3964_v0  ;;  %v3965_v2 = vld [vmem:[%s5231_s6 + $0x18] sm:$0xff]   ;;  %v3387_v6 = vld [vmem:[%s5233_s8] ss:$0 sm:$0xff] }
 0xd49   : > { %v1497_v9 = vpop.xlane.xlu1 %1496  ;;  %3670 = vmatprep.subr.bf16.mxu0 %v3965_v2  ;;  %v3967_v0 = vld [vmem:[#allocation2 + $0x18] sm:$0xff]  }
 0xd4a   : > { %v1504_v10 = vsub.f32 %v1483_v61, %v1500_v8  ;;  %v1502_v11 = vmul.f32 0.03125, %v1497_v9  ;;  %v1507_v12 = vmul.f32 %v1503_v7, %v1503_v7 }
 0xd4b   : > { %v1494_v13 = vpop.xlane.xlu0 %1493 }
 0xd4c   : > { %v1506_v14 = vsub.f32 %v1485_v48, %v1502_v11  ;;  %v1501_v16 = vmul.f32 0.03125, %v1494_v13  ;;  %v1511_v17 = vsel %vm491_vm0, %v1507_v12, 0.0  ;;  %v1508_v18 = vmul.f32 %v1504_v10, %v1504_v10  ;;  %3671 = vmatpush3.bf16.msra.mxu0 %v3965_v2  ;;  %v3968_v2 = vld [vmem:[#allocation5 + $0x10] sm:$0xff]  }
 0xd4d   : > { %1512 = vadd.xlane.f32.xlu0 %v1511_v17 }
 0xd4e   : > { %v1505_v19 = vsub.f32 %v1484_v50, %v1501_v16  ;;  %v1514_v20 = vsel %vm491_vm0, %v1508_v18, 0.0  ;;  %v1510_v22 = vmul.f32 %v1506_v14, %v1506_v14 }
 0xd4f   : > { %1515 = vadd.xlane.f32.xlu1 %v1514_v20 }
 0xd50   : > { %v1509_v23 = vmul.f32 %v1505_v19, %v1505_v19  ;;  %v1520_v25 = vsel %vm491_vm0, %v1510_v22, 0.0 }
 0xd52   : > { %v1517_v24 = vsel %vm491_vm0, %v1509_v23, 0.0  ;;  %v1638_v23 = vsub.s32 4, %v4602_v1 }
 0xd53   : > { %1518 = vadd.xlane.f32.xlu0 %v1517_v24  ;;  %1521 = vadd.xlane.f32.xlu1 %v1520_v25 }
 0xd54   : > { %v1639_v24 = vrot.slane %v4842_v42, %v1638_v23 }
 0xdda   : > { %v1513_v30 = vpop.xlane.xlu0 %1512 }
 0xddb   : > { %v1523_v31 = vmul.f32 0.03125, %v1513_v30 }
 0xddc   : > { %v1516_v32 = vpop.xlane.xlu1 %1515 }
 0xddd   : > { %v1527_v33 = vadd.f32 1e-05, %v1523_v31  ;;  %v1524_v55 = vmul.f32 0.03125, %v1516_v32 }
 0xddf   : > { %4042 = vrsqrt.f32 %v1527_v33  ;;  %v1528_v34 = vadd.f32 1e-05, %v1524_v55 }
 0xde0   : > { %v1519_v53 = vpop.xlane.xlu0 %1518  ;;  %v1522_v35 = vpop.xlane.xlu1 %1521 }
 0xde1   : > { %4044 = vrsqrt.f32 %v1528_v34  ;;  %v1525_v40 = vmul.f32 0.03125, %v1519_v53  ;;  %v1526_v54 = vmul.f32 0.03125, %v1522_v35 }
 0xde3   : > { %v1529_v41 = vadd.f32 1e-05, %v1525_v40  ;;  %v1530_v52 = vadd.f32 1e-05, %v1526_v54 }
 0xde5   : > { %4046 = vrsqrt.f32 %v1529_v41 }
 0xde6   : > { %4048 = vrsqrt.f32 %v1530_v52 }
 0xde9   : > { %v4043_v3 = vpop.eup %4042 }
 0xdea   : > { %v1535_v37 = vmul.f32 %v4043_v3, %v1503_v7 }
 0xdeb   : > { %v4045_v45 = vpop.eup %4044 }
 0xdec   : > { %v1536_v59 = vmul.f32 %v4045_v45, %v1504_v10  ;;  %v1543_v62 = vmul.f32 %v1542_v43, %v1535_v37 }
 0xdee   : > { %v1544_v63 = vmul.f32 %v1542_v43, %v1536_v59  ;;  %v1551_v60 = vadd.f32 %v1550_v5, %v1543_v62 }
 0xdef   : > { %v4047_v36 = vpop.eup %4046 }
 0xdf0   : > { %v4049_v46 = vpop.eup %4048  ;;  %v1537_v58 = vmul.f32 %v4047_v36, %v1505_v19  ;;  %v1552_v61 = vadd.f32 %v1550_v5, %v1544_v63 }
 0xdf1   : > { %v1538_v47 = vmul.f32 %v4049_v46, %v1506_v14 }
 0xdf2   : > { %v1545_v48 = vmul.f32 %v1542_v43, %v1537_v58  ;;  %v1555_v15 = vpack.c.bf16 %v1552_v61, %v1551_v60 }
 0xdf3   : > { %v1546_v49 = vmul.f32 %v1542_v43, %v1538_v47 }
 0xdf4   : > { %3660 = vmatprep.mubr.msk.bf16.mxu1 %vm491_vm0, %v1555_v15  ;;  %v1553_v50 = vadd.f32 %v1550_v5, %v1545_v48 }
 0xdf5   : > { %v1554_v51 = vadd.f32 %v1550_v5, %v1546_v49 }
 0xdf7   : > { %v1556_v57 = vpack.c.bf16 %v1554_v51, %v1553_v50 }
 0xdf9   : > { %3661 = vmatmul.mubr.msk.bf16.vlgmr.msra.gmra.mrb[24].mxu1 %vm491_vm0, %v1556_v57  ;;  %v3966_v57 = vld [vmem:[#allocation2 + $0x10] sm:$0xff]  }
 0xdfa   : > { %3676 = vmatprep.subr.bf16.mxu1 %v3966_v57 }
 0xdfb   : > { %3677 = vmatpush3.bf16.msra.mxu1 %v3966_v57 }
 0xdfc   : > { %3678 = vmatprep.subr.bf16.mxu1 %v3967_v0 }
 0xdff   : > { %3679 = vmatpush3.bf16.msra.mxu1 %v3967_v0 }
 0xe00   : > { %3684 = vmatprep.subr.bf16.mxu1 %v3968_v2 }
 0xecc   : > { %v3662_v7 = vpop.f32.mrb[24].mxu1 }
 0xecd   : > { %v1624_v8 = vadd.f32 %v3662_v7, %v3387_v6  ;;  %v1615_v9 = vpop.f32.mrb[25].mxu1 }
 0xece   : > { %v1616_v10 = vadd.f32 %v3387_v6, %v1615_v9  ;;  %v3663_v11 = vpop.f32.mrb[26].mxu1 }
 0xecf   : > { %v1627_v12 = vadd.f32 %v3663_v11, %v3387_v6  ;;  %v1618_v13 = vpop.f32.mrb[27].mxu1  ;;  %v1632_v16 = vmax.f32 %v1624_v8, 0.0 }
 0xed0   : > { %v1619_v14 = vadd.f32 %v3387_v6, %v1618_v13  ;;  %v1630_v18 = vmax.f32 %v1616_v10, 0.0  ;;  %v4879_v6 = vld [vmem:[%s5232_s7 + $0x10] sm:$0xff] }
 0xed1   : > { %v1633_v17 = vmax.f32 %v1627_v12, 0.0  ;;  %v1912_v7 = vrot.slane %v4879_v6, %v559_v4 }
 0xed2   : > { %v1631_v19 = vmax.f32 %v1619_v14, 0.0 }
 0xed3   : > { %v1635_v20 = vpack.c.bf16 %v1633_v17, %v1632_v16 }
 0xed4   : > { %v1634_v22 = vpack.c.bf16 %v1631_v19, %v1630_v18 }
 0xed6   : > { %3672 = vmatprep.mubr.msk.bf16.mxu0 %vm1664_vm4, %v1634_v22  ;;  %v1778_v22 = vsub.s32 7, %v4602_v1 }
 0xed7   : > { %3673 = vmatmul.mubr.msk.bf16.vlgmr.msra.gmra.mrb[20].mxu0 %vm1664_vm4, %v1635_v20 }
 0xed8   : > { %v1779_v4 = vrot.slane %v4842_v42, %v1778_v22 }
 0xfaa   : > { %v3674_v25 = vpop.f32.mrb[20].mxu0 }
 0xfab   : > { %v1705_v26 = vpop.f32.mrb[21].mxu0  ;;  %v1714_v27 = vadd.f32 %v3674_v25, %v1639_v24 }
 0xfac   : > { %v1706_v28 = vadd.f32 %v1705_v26, %v1639_v24  ;;  %v3675_v29 = vpop.f32.mrb[22].mxu0 }
 0xfad   : > { %v1708_v30 = vpop.f32.mrb[23].mxu0  ;;  %v1717_v31 = vadd.f32 %v3675_v29, %v1639_v24  ;;  %v1722_v53 = vadd.f32 %v1714_v27, %v1553_v50  ;;  %v3398_v27 = vld [vmem:[%s5232_s7 + $0x8] ss:$0 sm:$0xff] }
 0xfae   : > { %v1709_v32 = vadd.f32 %v1708_v30, %v1639_v24  ;;  %v1720_v33 = vadd.f32 %v1706_v28, %v1551_v60 }
 0xfaf   : > { %v1723_v40 = vadd.f32 %v1717_v31, %v1554_v51  ;;  %v1730_v54 = vsel %vm491_vm0, %v1722_v53, 0.0 }
 0xfb0   : > { %v1724_v55 = vsel %vm491_vm0, %v1720_v33, 0.0  ;;  %v1721_v34 = vadd.f32 %v1709_v32, %v1552_v61 }
 0xfb1   : > { %1725 = vadd.xlane.f32.xlu0 %v1724_v55  ;;  %v1733_v41 = vsel %vm491_vm0, %v1723_v40, 0.0 }
 0xfb2   : > { %v1727_v35 = vsel %vm491_vm0, %v1721_v34, 0.0 }
 0xfb3   : > { %1728 = vadd.xlane.f32.xlu1 %v1727_v35 }
 0xfb5   : > { %1731 = vadd.xlane.f32.xlu0 %v1730_v54  ;;  %v4151_v54 = vld [vmem:[%s4612_s24] sm:$0xff] }
 0xfb7   : > { %1734 = vadd.xlane.f32.xlu1 %v1733_v41 }
0x103e   : > { %v1726_v52 = vpop.xlane.xlu0 %1725 }
0x103f   : > { %v1736_v43 = vmul.f32 0.03125, %v1726_v52  ;;  %v4152_v52 = vld [vmem:[%s4612_s24 + $0x8] sm:$0xff] }
0x1040   : > { %v1729_v3 = vpop.xlane.xlu1 %1728 }
0x1041   : > { %v1740_v37 = vsub.f32 %v1720_v33, %v1736_v43  ;;  %v1737_v45 = vmul.f32 0.03125, %v1729_v3 }
0x1042   : > { %v1732_v59 = vpop.xlane.xlu0 %1731 }
0x1043   : > { %v1741_v62 = vsub.f32 %v1721_v34, %v1737_v45  ;;  %v1738_v5 = vmul.f32 0.03125, %v1732_v59  ;;  %v1744_v63 = vmul.f32 %v1740_v37, %v1740_v37  ;;  %v4153_v45 = vld [vmem:[%s4612_s24 + $0x10] sm:$0xff] }
0x1044   : > { %v1735_v36 = vpop.xlane.xlu1 %1734 }
0x1045   : > { %v1742_v46 = vsub.f32 %v1722_v53, %v1738_v5  ;;  %v1739_v58 = vmul.f32 0.03125, %v1735_v36  ;;  %v1748_v60 = vsel %vm491_vm0, %v1744_v63, 0.0  ;;  %v1745_v61 = vmul.f32 %v1741_v62, %v1741_v62  ;;  %v3969_v36 = vld [vmem:[#allocation5 + $0x18] sm:$0xff]  }
0x1046   : > { %1749 = vadd.xlane.f32.xlu0 %v1748_v60  ;;  %v1904_v60 = vrot.slane %v4879_v6, %v551_v21 }
0x1047   : > { %v1743_v47 = vsub.f32 %v1723_v40, %v1739_v58  ;;  %v1751_v48 = vsel %vm491_vm0, %v1745_v61, 0.0  ;;  %v1746_v15 = vmul.f32 %v1742_v46, %v1742_v46 }
0x1048   : > { %1752 = vadd.xlane.f32.xlu1 %v1751_v48 }
0x1049   : > { %v1754_v49 = vsel %vm491_vm0, %v1746_v15, 0.0  ;;  %v1747_v50 = vmul.f32 %v1743_v47, %v1743_v47 }
0x104a   : > { %1755 = vadd.xlane.f32.xlu0 %v1754_v49 }
0x104b   : > { %v1757_v51 = vsel %vm491_vm0, %v1747_v50, 0.0 }
0x104c   : > { %1758 = vadd.xlane.f32.xlu1 %v1757_v51 }
0x1060   : > { %1914 = vrot.lane.b32.xlu0 %v1912_v7, %s4350_s29  ;;  %s4274_s29 = scalar_lea.vmem %s4273_s16, 1024 }
0x10d3   : > { %v1750_v8 = vpop.xlane.xlu0 %1749 }
0x10d4   : > { %v1760_v9 = vmul.f32 0.03125, %v1750_v8 }
0x10d5   : > { %v1753_v10 = vpop.xlane.xlu1 %1752 }
0x10d6   : > { %v1764_v11 = vadd.f32 1e-05, %v1760_v9  ;;  %v1761_v12 = vmul.f32 0.03125, %v1753_v10 }
0x10d7   : > { %v1756_v13 = vpop.xlane.xlu0 %1755 }
0x10d8   : > { %4050 = vrsqrt.f32 %v1764_v11  ;;  %v1765_v14 = vadd.f32 1e-05, %v1761_v12  ;;  %v1762_v16 = vmul.f32 0.03125, %v1756_v13  ;;  %v1924_v13 = vrot.slane %v4879_v6, %v571_v56 }
0x10d9   : > { %v1759_v17 = vpop.xlane.xlu1 %1758 }
0x10da   : > { %4052 = vrsqrt.f32 %v1765_v14  ;;  %v1766_v18 = vadd.f32 1e-05, %v1762_v16  ;;  %v1763_v19 = vmul.f32 0.03125, %v1759_v17 }
0x10dc   : > { %4054 = vrsqrt.f32 %v1766_v18  ;;  %v1767_v20 = vadd.f32 1e-05, %v1763_v19 }
0x10de   : > { %4056 = vrsqrt.f32 %v1767_v20 }
0x10e2   : > { %v4051_v24 = vpop.eup %4050 }
0x10e3   : > { %v1772_v25 = vmul.f32 %v4051_v24, %v1740_v37 }
0x10e4   : > { %v4053_v26 = vpop.eup %4052 }
0x10e5   : > { %v1780_v28 = vmul.f32 %v1779_v4, %v1772_v25  ;;  %v1773_v29 = vmul.f32 %v4053_v26, %v1741_v62  ;;  %v4154_v62 = vld [vmem:[%s4612_s24 + $0x18] sm:$0xff]  ;;  %s5265_s24 = smov 24  }
0x10e6   : > { %v4055_v30 = vpop.eup %4054 }
0x10e7   : > { %v1781_v31 = vmul.f32 %v1779_v4, %v1773_v29  ;;  %v1774_v32 = vmul.f32 %v4055_v30, %v1742_v46  ;;  %v4892_v33 = vadd.f32 %v3398_v27, %v1780_v28 }
0x10e8   : > { %v4057_v55 = vpop.eup %4056 }
0x10e9   : > { %v1782_v42 = vmul.f32 %v1779_v4, %v1774_v32  ;;  %v1775_v34 = vmul.f32 %v4057_v55, %v1743_v47  ;;  %v4894_v53 = vadd.f32 %v3398_v27, %v1781_v31  ;;  %v1826_v41 = vadd.f32 %v4151_v54, %v4892_v33  ;;  %v1915_v47 = vpop.permute.xlu0 %1914 }
0x10eb   : > { %v4896_v35 = vadd.f32 %v3398_v27, %v1782_v42  ;;  %v1783_v40 = vmul.f32 %v1779_v4, %v1775_v34  ;;  %v1827_v43 = vadd.f32 %v4152_v52, %v4894_v53  ;;  %v1899_v46 = vpack.c.bf16 %v4894_v53, %v4892_v33 }
0x10ed   : > { %v4902_v3 = vadd.f32 %v3398_v27, %v1783_v40  ;;  %v1830_v37 = vpack.c.bf16 %v1827_v43, %v1826_v41  ;;  %v1828_v59 = vadd.f32 %v4153_v45, %v4896_v35 }
0x10ef   : > { %3680 = vmatprep.mubr.msk.bf16.mxu1 %vm491_vm0, %v1830_v37  ;;  %v1829_v5 = vadd.f32 %v4154_v62, %v4902_v3  ;;  %v1900_v58 = vpack.c.bf16 %v4902_v3, %v4896_v35 }
0x10f1   : > { %v1831_v63 = vpack.c.bf16 %v1829_v5, %v1828_v59 }
0x10f3   : > { %3681 = vmatmul.mubr.msk.bf16.vlgmr.msra.gmra.mrb[28].mxu1 %vm491_vm0, %v1831_v63 }
0x10f4   : > { %3685 = vmatpush3.bf16.msra.mxu1 %v3968_v2  ;;  %3688 = vmatprep.mubr.msk.bf16.mxu1 %vm491_vm0, %v1899_v46 }
0x10f5   : > { %3686 = vmatprep.subr.bf16.mxu1 %v3969_v36 }
0x10f8   : > { %3687 = vmatpush3.bf16.msra.mxu1 %v3969_v36 }
0x10fb   : > { %3689 = vmatmul.mubr.msk.bf16.vlgmr.msra.gmra.mrb[32].mxu1 %vm491_vm0, %v1900_v58 }
0x11c6   : > { %v3682_v61 = vpop.f32.mrb[28].mxu1 }
0x11c7   : > { %v1907_v48 = vadd.f32 %v3682_v61, %v1904_v60  ;;  %v1884_v15 = vpop.f32.mrb[29].mxu1  ;;  %v1919_v51 = vadd.f32 %v3682_v61, %v1915_v47 }
0x11c8   : > { %v3683_v49 = vpop.f32.mrb[30].mxu1  ;;  %v1905_v2 = vadd.f32 %v1904_v60, %v1884_v15  ;;  %v1917_v7 = vadd.f32 %v1915_v47, %v1884_v15 }
0x11c9   : > { %v1908_v50 = vadd.f32 %v3683_v49, %v1904_v60  ;;  %v1920_v57 = vadd.f32 %v3683_v49, %v1915_v47  ;;  %v1887_v0 = vpop.f32.mrb[31].mxu1 }
0x11ca   : > { %v1906_v8 = vadd.f32 %v1904_v60, %v1887_v0  ;;  %v1918_v9 = vadd.f32 %v1915_v47, %v1887_v0 }
0x11cb   : > { %v4919_v10 = vpack.c.bf16 %v1908_v50, %v1907_v48  ;;  %v4921_v11 = vpack.c.bf16 %v1920_v57, %v1919_v51 }
0x11cc   : > { %v4923_v12 = vpack.c.bf16 %v1906_v8, %v1905_v2  ;;  %v4925_v21 = vpack.c.bf16 %v1918_v9, %v1917_v7 }
0x11ce   : > { %v3690_v14 = vpop.f32.mrb[32].mxu1  ;;  %3696 = vmatprep.mubr.msk.bf16.mxu0 %vm652_vm1, %v4923_v12  ;;  %2000 = vrot.lane.b32.xlu1 %v4925_v21, %s4351_s11 }
0x11cf   : > { %v1977_v16 = vpop.f32.mrb[33].mxu1  ;;  %v1986_v18 = vadd.f32 %v3690_v14, %v1924_v13 }
0x11d0   : > { %v3691_v17 = vpop.f32.mrb[34].mxu1  ;;  %v1978_v4 = vadd.f32 %v1977_v16, %v1924_v13 }
0x11d1   : > { %v1989_v19 = vadd.f32 %v3691_v17, %v1924_v13  ;;  %v1980_v20 = vpop.f32.mrb[35].mxu1 }
0x11d2   : > { %v1981_v24 = vadd.f32 %v1980_v20, %v1924_v13  ;;  %2002 = vrot.lane.b32.xlu1 %v4921_v11, %s4351_s11 }
0x11d3   : > { %v4936_v25 = vpack.c.bf16 %v1989_v19, %v1986_v18 }
0x11d4   : > { %v4938_v56 = vpack.c.bf16 %v1981_v24, %v1978_v4 }
0x11d6   : > { %3700 = vmatprep.subr.bf16.mxu1 %v4938_v56 }
0x11d7   : > { %3701 = vmatpush3.bf16.msra.mxu1 %v4938_v56 }
0x11d8   : > { %3702 = vmatprep.subr.bf16.mxu1 %v4936_v25 }
0x11db   : > { %3703 = vmatpush3.bf16.msra.mxu1 %v4936_v25 }
0x1240   : > { %v2001_v26 = vpop.permute.xlu1 %2000 }
0x1241   : > { %v2011_v27 = vsel %vm652_vm1, %v2001_v26, 0  ;;  %3792 = vmatprep.subr.msk.bf16.mxu0 %vm652_vm1, %v2001_v26 }
0x1242   : > { %3693 = vmatpush3.bf16.xpose.msra.mxu0 %v2011_v27 }
0x1244   : > { %v2003_v28 = vpop.permute.xlu1 %2002 }
0x1245   : > { %3793 = vmatprep.subr.msk.bf16.mxu0 %vm652_vm1, %v2003_v28  ;;  %v2014_v29 = vsel %vm652_vm1, %v2003_v28, 0 }
0x124a   : > { %3695 = vmatpush3.bf16.xpose.msra.mxu0 %v2014_v29 }
0x1251   : > { %3697 = vmatmul.mubr.msk.bf16.vlgmr.msra.gmra.mrb[24].mxu0 %vm652_vm1, %v4919_v10 }
0x1324   : > { %v3698_v30 = vpop.f32.mrb[24].mxu0 }
0x1325   : > { %v2050_v31 = vpop.f32.mrb[25].mxu0  ;;  %v2071_v40 = vsel %vm491_vm0, %v3698_v30, -inf }
0x1326   : > { %v3699_v32 = vpop.f32.mrb[26].mxu0  ;;  %v2065_v55 = vsel %vm491_vm0, %v2050_v31, -inf }
0x1327   : > { %2066 = vmax.xlane.f32.xlu0 %v2065_v55  ;;  %v2053_v42 = vpop.f32.mrb[27].mxu0  ;;  %v2074_v54 = vsel %vm491_vm0, %v3699_v32, -inf }
0x1328   : > { %v2068_v34 = vsel %vm491_vm0, %v2053_v42, -inf }
0x1329   : > { %2069 = vmax.xlane.f32.xlu1 %v2068_v34 }
0x132b   : > { %2072 = vmax.xlane.f32.xlu0 %v2071_v40 }
0x132f   : > { %2075 = vmax.xlane.f32.xlu0 %v2074_v54 }
0x13b4   : > { %v2067_v41 = vpop.xlane.xlu0 %2066 }
0x13b5   : > { %v2077_v43 = vsub.f32 %v2050_v31, %v2067_v41 }
0x13b6   : > { %v2070_v52 = vpop.xlane.xlu1 %2069 }
0x13b7   : > { %v2078_v37 = vsub.f32 %v2053_v42, %v2070_v52  ;;  %v2081_v5 = vmul.f32 1.442695, %v2077_v43 }
0x13b8   : > { %v2073_v45 = vpop.xlane.xlu0 %2072 }
0x13b9   : > { %v2083_v59 = vmul.f32 1.442695, %v2078_v37  ;;  %v2079_v62 = vsub.f32 %v3698_v30, %v2073_v45 }
0x13bb   : > { %4058 = vpow2.f32 %v2083_v59  ;;  %v2085_v63 = vmul.f32 1.442695, %v2079_v62 }
0x13bc   : > { %v2076_v36 = vpop.xlane.xlu0 %2075 }
0x13bd   : > { %4060 = vpow2.f32 %v2085_v63  ;;  %v2080_v46 = vsub.f32 %v3699_v32, %v2076_v36 }
0x13be   : > { %4062 = vpow2.f32 %v2081_v5 }
0x13bf   : > { %v2087_v58 = vmul.f32 1.442695, %v2080_v46 }
0x13c1   : > { %4064 = vpow2.f32 %v2087_v58 }
0x13c5   : > { %v4059_v60 = vpop.eup %4058 }
0x13c6   : > { %v2092_v61 = vsel %vm491_vm0, %v4059_v60, 0.0 }
0x13c7   : > { %v4061_v47 = vpop.eup %4060  ;;  %2093 = vadd.xlane.f32.xlu0 %v2092_v61 }
0x13c8   : > { %v2095_v48 = vsel %vm491_vm0, %v4061_v47, 0.0  ;;  %v4063_v15 = vpop.eup %4062 }
0x13c9   : > { %2096 = vadd.xlane.f32.xlu1 %v2095_v48  ;;  %v2089_v50 = vsel %vm491_vm0, %v4063_v15, 0.0 }
0x13cb   : > { %v4065_v49 = vpop.eup %4064 }
0x13cc   : > { %v2098_v51 = vsel %vm491_vm0, %v4065_v49, 0.0 }
0x13cd   : > { %2090 = vadd.xlane.f32.xlu1 %v2089_v50  ;;  %2099 = vadd.xlane.f32.xlu0 %v2098_v51 }
0x13de   : > { %2172 = vrot.lane.b32.xlu1 %v4925_v21, %s4352_s22 }
0x13e2   : > { %2168 = vrot.lane.b32.xlu1 %v4923_v12, %s4353_s27 }
0x13e3   : > { %2174 = vrot.lane.b32.xlu0 %v4921_v11, %s4352_s22  ;;  %s3354_s22 = sshll.u32 %s424_s19, 5 }
0x13e6   : > { %2170 = vrot.lane.b32.xlu1 %v4919_v10, %s4353_s27 }
0x1454   : > { %v2094_v57 = vpop.xlane.xlu0 %2093 }
0x1456   : > { %v2097_v0 = vpop.xlane.xlu1 %2096 }
0x1457   : > { %4066 = vrcp.f32 %v2097_v0 }
0x1458   : > { %4068 = vrcp.f32 %v2094_v57 }
0x145a   : > { %v2100_v2 = vpop.xlane.xlu0 %2099  ;;  %v2091_v7 = vpop.xlane.xlu1 %2090 }
0x145b   : > { %4070 = vrcp.f32 %v2100_v2 }
0x145c   : > { %4072 = vrcp.f32 %v2091_v7 }
0x145e   : > { %v2173_v8 = vpop.permute.xlu1 %2172  ;;  %v2175_v28 = vpop.permute.xlu0 %2174 }
0x145f   : > { %3794 = vmatprep.subr.msk.bf16.mxu1 %vm652_vm1, %v2173_v8  ;;  %v2183_v26 = vsel %vm652_vm1, %v2173_v8, 0  ;;  %v2186_v29 = vsel %vm652_vm1, %v2175_v28, 0 }
0x1461   : > { %v4067_v9 = vpop.eup %4066 }
0x1462   : > { %v4069_v13 = vpop.eup %4068  ;;  %v2107_v17 = vmul.f32 %v4067_v9, %v4061_v47  ;;  %v2169_v27 = vpop.permute.xlu1 %2168 }
0x1463   : > { %v2106_v20 = vmul.f32 %v4069_v13, %v4059_v60 }
0x1465   : > { %v4071_v14 = vpop.eup %4070 }
0x1466   : > { %v4073_v16 = vpop.eup %4072  ;;  %v2108_v18 = vmul.f32 %v4071_v14, %v4065_v49  ;;  %v2171_v30 = vpop.permute.xlu1 %2170 }
0x1467   : > { %v2105_v19 = vmul.f32 %v4073_v16, %v4063_v15 }
0x1468   : > { %v2110_v4 = vpack.c.bf16 %v2108_v18, %v2107_v17 }
0x1469   : > { %v2109_v24 = vpack.c.bf16 %v2106_v20, %v2105_v19 }
0x146b   : > { %3704 = vmatprep.mubr.msk.bf16.mxu1 %vm491_vm0, %v2109_v24 }
0x146c   : > { %3705 = vmatmul.mubr.msk.bf16.vlgmr.msra.gmra.mrb[36].mxu1 %vm491_vm0, %v2110_v4 }
0x146d   : > { %3709 = vmatpush3.bf16.xpose.msra.mxu1 %v2183_v26  ;;  %3712 = vmatprep.mubr.msk.bf16.mxu1 %vm652_vm1, %v2169_v27 }
0x146e   : > { %3795 = vmatprep.subr.msk.bf16.mxu1 %vm652_vm1, %v2175_v28 }
0x1475   : > { %3711 = vmatpush3.bf16.xpose.msra.mxu1 %v2186_v29 }
0x147c   : > { %3713 = vmatmul.mubr.msk.bf16.vlgmr.msra.gmra.mrb[40].mxu1 %vm652_vm1, %v2171_v30 }
0x153f   : > { %v4974_v31 = vpop.f32.mrb[36].mxu1 }
0x1540   : > { %v4976_v32 = vpop.f32.mrb[37].mxu1 }
0x1541   : > { %v4978_v55 = vpop.f32.mrb[38].mxu1 }
0x1542   : > { %v4980_v42 = vpop.f32.mrb[39].mxu1 }
0x154f   : > { %v3714_v34 = vpop.f32.mrb[40].mxu1 }
0x1550   : > { %v2222_v40 = vpop.f32.mrb[41].mxu1  ;;  %v2243_v37 = vsel %vm491_vm0, %v3714_v34, -inf }
0x1551   : > { %v3715_v54 = vpop.f32.mrb[42].mxu1  ;;  %v2237_v41 = vsel %vm491_vm0, %v2222_v40, -inf }
0x1552   : > { %2238 = vmax.xlane.f32.xlu0 %v2237_v41  ;;  %v2225_v52 = vpop.f32.mrb[43].mxu1  ;;  %v2246_v45 = vsel %vm491_vm0, %v3715_v54, -inf }
0x1553   : > { %v2240_v43 = vsel %vm491_vm0, %v2225_v52, -inf }
0x1554   : > { %2241 = vmax.xlane.f32.xlu1 %v2240_v43 }
0x1556   : > { %2244 = vmax.xlane.f32.xlu0 %v2243_v37 }
0x155a   : > { %2247 = vmax.xlane.f32.xlu0 %v2246_v45 }
0x1565   : > { %2285 = vrot.lane.b32.xlu1 %v4938_v56, %s4353_s27 }
0x15df   : > { %v2239_v59 = vpop.xlane.xlu0 %2238 }
0x15e0   : > { %v2249_v5 = vsub.f32 %v2222_v40, %v2239_v59 }
0x15e1   : > { %v2242_v62 = vpop.xlane.xlu1 %2241 }
0x15e2   : > { %v2253_v58 = vmul.f32 1.442695, %v2249_v5  ;;  %v2250_v60 = vsub.f32 %v2225_v52, %v2242_v62 }
0x15e3   : > { %v2245_v63 = vpop.xlane.xlu0 %2244 }
0x15e4   : > { %v2251_v36 = vsub.f32 %v3714_v34, %v2245_v63  ;;  %v2255_v15 = vmul.f32 1.442695, %v2250_v60 }
0x15e5   : > { %v2286_v46 = vpop.permute.xlu1 %2285 }
0x15e6   : > { %v2257_v61 = vmul.f32 1.442695, %v2251_v36  ;;  %3716 = vmatprep.subr.bf16.mxu0 %v2286_v46 }
0x15e7   : > { %v2248_v47 = vpop.xlane.xlu0 %2247  ;;  %3717 = vmatpush3.bf16.msra.mxu0 %v2286_v46 }
0x15e8   : > { %4074 = vpow2.f32 %v2257_v61  ;;  %v2252_v48 = vsub.f32 %v3715_v54, %v2248_v47 }
0x15e9   : > { %4076 = vpow2.f32 %v2253_v58 }
0x15ea   : > { %v2259_v49 = vmul.f32 1.442695, %v2252_v48 }
0x15ec   : > { %4078 = vpow2.f32 %v2259_v49 }
0x15ed   : > { %4080 = vpow2.f32 %v2255_v15 }
0x15f2   : > { %v4075_v50 = vpop.eup %4074 }
0x15f3   : > { %v2267_v51 = vsel %vm491_vm0, %v4075_v50, 0.0  ;;  %v4077_v57 = vpop.eup %4076 }
0x15f4   : > { %2268 = vadd.xlane.f32.xlu1 %v2267_v51  ;;  %v2261_v7 = vsel %vm491_vm0, %v4077_v57, 0.0 }
0x15f6   : > { %v4079_v0 = vpop.eup %4078 }
0x15f7   : > { %v2270_v2 = vsel %vm491_vm0, %v4079_v0, 0.0  ;;  %v4081_v8 = vpop.eup %4080 }
0x15f8   : > { %2271 = vadd.xlane.f32.xlu0 %v2270_v2  ;;  %2262 = vadd.xlane.f32.xlu1 %v2261_v7  ;;  %v2264_v9 = vsel %vm491_vm0, %v4081_v8, 0.0 }
0x15fc   : > { %2265 = vadd.xlane.f32.xlu0 %v2264_v9 }
0x1609   : > { %2350 = vrot.lane.b32.xlu1 %v4925_v21, %s4354_s12 }
0x160d   : > { %2352 = vrot.lane.b32.xlu1 %v4921_v11, %s4354_s12 }
0x1611   : > { %2348 = vrot.lane.b32.xlu1 %v4919_v10, %s4355_s30 }
0x1612   : > { %2287 = vrot.lane.b32.xlu0 %v4936_v25, %s4353_s27 }
0x1616   : > { %2346 = vrot.lane.b32.xlu0 %v4923_v12, %s4355_s30 }
0x1681   : > { %v2269_v13 = vpop.xlane.xlu1 %2268 }
0x1685   : > { %v2272_v14 = vpop.xlane.xlu0 %2271  ;;  %v2263_v16 = vpop.xlane.xlu1 %2262 }
0x1686   : > { %4082 = vrcp.f32 %v2272_v14 }
0x1687   : > { %4084 = vrcp.f32 %v2263_v16 }
0x1688   : > { %4086 = vrcp.f32 %v2269_v13 }
0x1689   : > { %v2266_v17 = vpop.xlane.xlu0 %2265  ;;  %v2351_v19 = vpop.permute.xlu1 %2350 }
0x168a   : > { %4088 = vrcp.f32 %v2266_v17  ;;  %v2361_v54 = vsel %vm652_vm1, %v2351_v19, 0 }
0x168d   : > { %v2288_v18 = vpop.permute.xlu0 %2287  ;;  %v2353_v52 = vpop.permute.xlu1 %2352 }
0x168e   : > { %3718 = vmatprep.subr.bf16.mxu0 %v2288_v18  ;;  %v2364_v43 = vsel %vm652_vm1, %v2353_v52, 0 }
0x168f   : > { %3719 = vmatpush3.bf16.msra.mxu0 %v2288_v18 }
0x1690   : > { %3796 = vmatprep.subr.msk.bf16.mxu0 %vm652_vm1, %v2351_v19  ;;  %v4083_v20 = vpop.eup %4082 }
0x1691   : > { %v4085_v4 = vpop.eup %4084  ;;  %v2280_v27 = vmul.f32 %v4083_v20, %v4079_v0  ;;  %v2347_v41 = vpop.permute.xlu0 %2346 }
0x1692   : > { %v4087_v24 = vpop.eup %4086  ;;  %v2277_v28 = vmul.f32 %v4085_v4, %v4077_v57  ;;  %v2349_v37 = vpop.permute.xlu1 %2348 }
0x1693   : > { %v2279_v30 = vmul.f32 %v4087_v24, %v4075_v50 }
0x1694   : > { %v4089_v26 = vpop.eup %4088 }
0x1695   : > { %v2278_v29 = vmul.f32 %v4089_v26, %v4081_v8  ;;  %v2282_v40 = vpack.c.bf16 %v2280_v27, %v2279_v30 }
0x1697   : > { %v2281_v34 = vpack.c.bf16 %v2278_v29, %v2277_v28 }
0x1699   : > { %3720 = vmatprep.mubr.msk.bf16.mxu0 %vm491_vm0, %v2281_v34 }
0x169a   : > { %3721 = vmatmul.mubr.msk.bf16.vlgmr.msra.gmra.mrb[28].mxu0 %vm491_vm0, %v2282_v40 }
0x169b   : > { %3725 = vmatpush3.bf16.xpose.msra.mxu0 %v2361_v54  ;;  %3728 = vmatprep.mubr.msk.bf16.mxu0 %vm652_vm1, %v2347_v41 }
0x169c   : > { %3797 = vmatprep.subr.msk.bf16.mxu0 %vm652_vm1, %v2353_v52 }
0x16a3   : > { %3727 = vmatpush3.bf16.xpose.msra.mxu0 %v2364_v43 }
0x16aa   : > { %3729 = vmatmul.mubr.msk.bf16.vlgmr.msra.gmra.mrb[32].mxu0 %vm652_vm1, %v2349_v37 }
0x176d   : > { %v5010_v45 = vpop.f32.mrb[28].mxu0 }
0x176e   : > { %v5012_v59 = vpop.f32.mrb[29].mxu0 }
0x176f   : > { %v5014_v62 = vpop.f32.mrb[30].mxu0 }
0x1770   : > { %v3929_v5 = vpack.i.bf16 %v5014_v62, %v5010_v45  ;;  %v5018_v63 = vpop.f32.mrb[31].mxu0 }
0x1771   : > { %v3924_v36 = vpack.i.bf16 %v5018_v63, %v5012_v59 }
0x177d   : > { %v3730_v46 = vpop.f32.mrb[32].mxu0 }
0x177e   : > { %v2400_v58 = vpop.f32.mrb[33].mxu0  ;;  %v2421_v15 = vsel %vm491_vm0, %v3730_v46, -inf }
0x177f   : > { %v3731_v60 = vpop.f32.mrb[34].mxu0  ;;  %v2415_v61 = vsel %vm491_vm0, %v2400_v58, -inf }
0x1780   : > { %2416 = vmax.xlane.f32.xlu0 %v2415_v61  ;;  %v2403_v47 = vpop.f32.mrb[35].mxu0  ;;  %v2424_v49 = vsel %vm491_vm0, %v3731_v60, -inf }
0x1781   : > { %v2418_v48 = vsel %vm491_vm0, %v2403_v47, -inf }
0x1782   : > { %2419 = vmax.xlane.f32.xlu1 %v2418_v48 }
0x1784   : > { %2422 = vmax.xlane.f32.xlu0 %v2421_v15 }
0x1788   : > { %2425 = vmax.xlane.f32.xlu0 %v2424_v49 }
0x1793   : > { %2461 = vrot.lane.b32.xlu1 %v4938_v56, %s4355_s30 }
0x180d   : > { %v2417_v50 = vpop.xlane.xlu0 %2416 }
0x180e   : > { %v2427_v57 = vsub.f32 %v2400_v58, %v2417_v50 }
0x180f   : > { %v2420_v51 = vpop.xlane.xlu1 %2419 }
0x1810   : > { %v2431_v8 = vmul.f32 1.442695, %v2427_v57  ;;  %v2428_v9 = vsub.f32 %v2403_v47, %v2420_v51 }
0x1811   : > { %v2423_v0 = vpop.xlane.xlu0 %2422 }
0x1812   : > { %v2429_v2 = vsub.f32 %v3730_v46, %v2423_v0  ;;  %v2433_v17 = vmul.f32 1.442695, %v2428_v9 }
0x1813   : > { %v2462_v7 = vpop.permute.xlu1 %2461 }
0x1814   : > { %v2435_v13 = vmul.f32 1.442695, %v2429_v2  ;;  %3732 = vmatprep.subr.bf16.mxu1 %v2462_v7 }
0x1815   : > { %v2426_v14 = vpop.xlane.xlu0 %2425  ;;  %3733 = vmatpush3.bf16.msra.mxu1 %v2462_v7 }
0x1816   : > { %4090 = vpow2.f32 %v2435_v13  ;;  %v2430_v16 = vsub.f32 %v3731_v60, %v2426_v14 }
0x1817   : > { %4092 = vpow2.f32 %v2431_v8 }
0x1818   : > { %v2437_v18 = vmul.f32 1.442695, %v2430_v16 }
0x181a   : > { %4094 = vpow2.f32 %v2437_v18 }
0x181b   : > { %4096 = vpow2.f32 %v2433_v17 }
0x1820   : > { %v4091_v19 = vpop.eup %4090 }
0x1821   : > { %v2445_v20 = vsel %vm491_vm0, %v4091_v19, 0.0  ;;  %v4093_v4 = vpop.eup %4092 }
0x1822   : > { %2446 = vadd.xlane.f32.xlu1 %v2445_v20  ;;  %v2439_v27 = vsel %vm491_vm0, %v4093_v4, 0.0 }
0x1824   : > { %v4095_v24 = vpop.eup %4094 }
0x1825   : > { %v2448_v26 = vsel %vm491_vm0, %v4095_v24, 0.0  ;;  %v4097_v28 = vpop.eup %4096 }
0x1826   : > { %2449 = vadd.xlane.f32.xlu0 %v2448_v26  ;;  %2440 = vadd.xlane.f32.xlu1 %v2439_v27  ;;  %v2442_v29 = vsel %vm491_vm0, %v4097_v28, 0.0 }
0x182a   : > { %2443 = vadd.xlane.f32.xlu0 %v2442_v29 }
0x1837   : > { %2526 = vrot.lane.b32.xlu1 %v4925_v21, %s4356_s13 }
0x183b   : > { %2528 = vrot.lane.b32.xlu1 %v4921_v11, %s4356_s13  ;;  %s3459_s13 = sshll.u32 %s4439_s17, 9  ;;  %s5183_s17 = scalar_lea.sflag [#allocation4], %s424_s19 }
0x183c   : > { %s5177_s26 = scalar_lea.hbm %s5235_s10, %s3459_s13 }
0x183f   : > { %2524 = vrot.lane.b32.xlu1 %v4919_v10, %s4357_s15 }
0x1840   : > { %2463 = vrot.lane.b32.xlu0 %v4936_v25, %s4355_s30  ;;  %s426_s30 = scalar_lea.vmem [#allocation10], %s3354_s22 }
0x1844   : > { %2522 = vrot.lane.b32.xlu0 %v4923_v12, %s4357_s15 }
0x18af   : > { %v2447_v30 = vpop.xlane.xlu1 %2446 }
0x18b3   : > { %v2450_v34 = vpop.xlane.xlu0 %2449  ;;  %v2441_v40 = vpop.xlane.xlu1 %2440 }
0x18b4   : > { %4098 = vrcp.f32 %v2450_v34 }
0x18b5   : > { %4100 = vrcp.f32 %v2441_v40 }
0x18b6   : > { %4102 = vrcp.f32 %v2447_v30 }
0x18b7   : > { %v2444_v54 = vpop.xlane.xlu0 %2443  ;;  %v2527_v11 = vpop.permute.xlu1 %2526 }
0x18b8   : > { %4104 = vrcp.f32 %v2444_v54  ;;  %v2537_v47 = vsel %vm652_vm1, %v2527_v11, 0 }
0x18bb   : > { %v2464_v21 = vpop.permute.xlu0 %2463  ;;  %v2529_v15 = vpop.permute.xlu1 %2528 }
0x18bc   : > { %3734 = vmatprep.subr.bf16.mxu1 %v2464_v21  ;;  %v2540_v49 = vsel %vm652_vm1, %v2529_v15, 0 }
0x18bd   : > { %3735 = vmatpush3.bf16.msra.mxu1 %v2464_v21 }
0x18be   : > { %3798 = vmatprep.subr.msk.bf16.mxu1 %vm652_vm1, %v2527_v11  ;;  %v4099_v10 = vpop.eup %4098 }
0x18bf   : > { %v4101_v41 = vpop.eup %4100  ;;  %v2458_v37 = vmul.f32 %v4099_v10, %v4095_v24  ;;  %v2523_v48 = vpop.permute.xlu0 %2522 }
0x18c0   : > { %v4103_v52 = vpop.eup %4102  ;;  %v2455_v12 = vmul.f32 %v4101_v41, %v4093_v4  ;;  %v2525_v50 = vpop.permute.xlu1 %2524 }
0x18c1   : > { %v2457_v58 = vmul.f32 %v4103_v52, %v4091_v19 }
0x18c2   : > { %v4105_v43 = vpop.eup %4104 }
0x18c3   : > { %v2456_v46 = vmul.f32 %v4105_v43, %v4097_v28  ;;  %v2460_v61 = vpack.c.bf16 %v2458_v37, %v2457_v58 }
0x18c5   : > { %v2459_v60 = vpack.c.bf16 %v2456_v46, %v2455_v12 }
0x18c7   : > { %3736 = vmatprep.mubr.msk.bf16.mxu1 %vm491_vm0, %v2459_v60 }
0x18c8   : > { %3737 = vmatmul.mubr.msk.bf16.vlgmr.msra.gmra.mrb[44].mxu1 %vm491_vm0, %v2460_v61 }
0x18c9   : > { %3741 = vmatpush3.bf16.xpose.msra.mxu1 %v2537_v47  ;;  %3744 = vmatprep.mubr.msk.bf16.mxu1 %vm652_vm1, %v2523_v48 }
0x18ca   : > { %3799 = vmatprep.subr.msk.bf16.mxu1 %vm652_vm1, %v2529_v15 }
0x18d1   : > { %3743 = vmatpush3.bf16.xpose.msra.mxu1 %v2540_v49 }
0x18d8   : > { %3745 = vmatmul.mubr.msk.bf16.vlgmr.msra.gmra.mrb[48].mxu1 %vm652_vm1, %v2525_v50 }
0x199b   : > { %v3738_v51 = vpop.f32.mrb[44].mxu1 }
0x199c   : > { %v2507_v57 = vpop.f32.mrb[45].mxu1 }
0x199d   : > { %v3739_v0 = vpop.f32.mrb[46].mxu1 }
0x199e   : > { %v3939_v2 = vpack.i.bf16 %v3739_v0, %v3738_v51  ;;  %v2510_v7 = vpop.f32.mrb[47].mxu1  ;;  %v3971_v0 = vld [vmem:[#allocation7 + $0x18] sm:$0xff]  }
0x199f   : > { %v3934_v8 = vpack.i.bf16 %v2510_v7, %v2507_v57  ;;  %v3970_v57 = vld [vmem:[#allocation7 + $0x10] sm:$0xff]  }
0x19ab   : > { %v3746_v9 = vpop.f32.mrb[48].mxu1 }
0x19ac   : > { %v2576_v13 = vpop.f32.mrb[49].mxu1  ;;  %v2597_v19 = vsel %vm491_vm0, %v3746_v9, -inf }
0x19ad   : > { %v3747_v14 = vpop.f32.mrb[50].mxu1  ;;  %v2591_v16 = vsel %vm491_vm0, %v2576_v13, -inf }
0x19ae   : > { %2592 = vmax.xlane.f32.xlu0 %v2591_v16  ;;  %v2579_v17 = vpop.f32.mrb[51].mxu1  ;;  %v2600_v20 = vsel %vm491_vm0, %v3747_v14, -inf }
0x19af   : > { %v2594_v18 = vsel %vm491_vm0, %v2579_v17, -inf }
0x19b0   : > { %2595 = vmax.xlane.f32.xlu1 %v2594_v18 }
0x19b2   : > { %2598 = vmax.xlane.f32.xlu0 %v2597_v19 }
0x19b6   : > { %2601 = vmax.xlane.f32.xlu0 %v2600_v20 }
0x1a3b   : > { %v2593_v4 = vpop.xlane.xlu0 %2592 }
0x1a3c   : > { %v2603_v24 = vsub.f32 %v2576_v13, %v2593_v4 }
0x1a3d   : > { %v2596_v26 = vpop.xlane.xlu1 %2595 }
0x1a3e   : > { %v2607_v29 = vmul.f32 1.442695, %v2603_v24  ;;  %v2604_v30 = vsub.f32 %v2579_v17, %v2596_v26 }
0x1a3f   : > { %v2599_v27 = vpop.xlane.xlu0 %2598 }
0x1a40   : > { %v2605_v28 = vsub.f32 %v3746_v9, %v2599_v27  ;;  %v2609_v21 = vmul.f32 1.442695, %v2604_v30 }
0x1a42   : > { %v2611_v34 = vmul.f32 1.442695, %v2605_v28 }
0x1a43   : > { %v2602_v40 = vpop.xlane.xlu0 %2601 }
0x1a44   : > { %4106 = vpow2.f32 %v2611_v34  ;;  %v2606_v54 = vsub.f32 %v3747_v14, %v2602_v40 }
0x1a45   : > { %4108 = vpow2.f32 %v2607_v29 }
0x1a46   : > { %v2613_v11 = vmul.f32 1.442695, %v2606_v54 }
0x1a48   : > { %4110 = vpow2.f32 %v2613_v11 }
0x1a49   : > { %4112 = vpow2.f32 %v2609_v21 }
0x1a4e   : > { %v4107_v10 = vpop.eup %4106 }
0x1a4f   : > { %v2621_v41 = vsel %vm491_vm0, %v4107_v10, 0.0  ;;  %v4109_v52 = vpop.eup %4108 }
0x1a50   : > { %2622 = vadd.xlane.f32.xlu1 %v2621_v41  ;;  %v2615_v12 = vsel %vm491_vm0, %v4109_v52, 0.0 }
0x1a52   : > { %v4111_v43 = vpop.eup %4110 }
0x1a53   : > { %v2624_v37 = vsel %vm491_vm0, %v4111_v43, 0.0  ;;  %v4113_v46 = vpop.eup %4112 }
0x1a54   : > { %2625 = vadd.xlane.f32.xlu0 %v2624_v37  ;;  %2616 = vadd.xlane.f32.xlu1 %v2615_v12  ;;  %v2618_v58 = vsel %vm491_vm0, %v4113_v46, 0.0 }
0x1a58   : > { %2619 = vadd.xlane.f32.xlu0 %v2618_v58 }
0x1a65   : > { %2637 = vrot.lane.b32.xlu1 %v4938_v56, %s4357_s15 }
0x1a69   : > { %3925 = vrot.lane.b32.xlu1 %v3924_v36, %s4358_s25 }
0x1a6d   : > { %3930 = vrot.lane.b32.xlu1 %v3929_v5, %s4358_s25 }
0x1a6e   : > { %2639 = vrot.lane.b32.xlu0 %v4936_v25, %s4357_s15  ;;  %s3227_s15 = sshll.u32 %s426_s30, 4  ;;  %s5180_s15 = int_to_ptr.vmem [resolvable:$true] %s3227_s15 }
0x1a6f   : > { %s4268_s20 = scalar_lea.vmem %s5180_s15, 512  ;;  %p4275_p6 = scmp.lt.s32.totalorder %s5180_s15, %s4273_s16 }
0x1a70   : > { %p4269_p8 = scmp.ne.s32.totalorder %s5180_s15, %s4268_s20  ;;  %p4276_p9 = scmp.lt.s32.totalorder %s4274_s29, %s4268_s20 }
0x1a71   : > { %3940 = vrot.lane.b32.xlu1 %v3939_v2, %s4359_s28 }
0x1a72   : > { %3935 = vrot.lane.b32.xlu0 %v3934_v8, %s4359_s28  ;;  %p4270_p13 = pnand %p4269_p8, %p5266_p11  ;;  %p4277_p5 = por %p4276_p9, %p4275_p6 }
0x1a74   : > { %p4271_p1 = pneg %p4270_p13 }
0x1a76   : > { %p4278_p0 = pnand %p4277_p5, %p4271_p1 }
0x1add   : > { %v2623_v60 = vpop.xlane.xlu1 %2622 }
0x1ae1   : > { %v2626_v61 = vpop.xlane.xlu0 %2625  ;;  %v2617_v56 = vpop.xlane.xlu1 %2616 }
0x1ae2   : > { %4114 = vrcp.f32 %v2626_v61 }
0x1ae3   : > { %4116 = vrcp.f32 %v2617_v56 }
0x1ae4   : > { %4118 = vrcp.f32 %v2623_v60 }
0x1ae5   : > { %v2620_v59 = vpop.xlane.xlu0 %2619  ;;  %v2638_v63 = vpop.permute.xlu1 %2637 }
0x1ae6   : > { %4120 = vrcp.f32 %v2620_v59  ;;  %3748 = vmatprep.subr.bf16.mxu0 %v2638_v63  ;;  %v2763_v59 = vrot.slane %v4879_v6, %v1413_v38 }
0x1ae7   : > { %3749 = vmatpush3.bf16.msra.mxu0 %v2638_v63 }
0x1ae9   : > { %v2640_v45 = vpop.permute.xlu0 %2639  ;;  %v3926_v16 = vpop.permute.xlu1 %3925 }
0x1aea   : > { %3750 = vmatprep.subr.bf16.mxu0 %v2640_v45  ;;  %v3928_v19 = vunpack.i.h.bf16 %v3926_v16  ;;  %v3927_v20 = vunpack.i.l.bf16 %v3926_v16 }
0x1aeb   : > { %3751 = vmatpush3.bf16.msra.mxu0 %v2640_v45 }
0x1aec   : > { %v4115_v62 = vpop.eup %4114  ;;  %3756 = vmatprep.subr.bf16.mxu0 %v3970_v57  ;;  %v2747_v34 = vsel %vm652_vm1, %v4980_v42, %v3928_v19  ;;  %v2746_v40 = vsel %vm652_vm1, %v4976_v32, %v3927_v20 }
0x1aed   : > { %v4117_v25 = vpop.eup %4116  ;;  %v2634_v47 = vmul.f32 %v4115_v62, %v4111_v43  ;;  %v3931_v17 = vpop.permute.xlu1 %3930 }
0x1aee   : > { %v4119_v5 = vpop.eup %4118  ;;  %v2631_v48 = vmul.f32 %v4117_v25, %v4109_v52  ;;  %v3936_v4 = vpop.permute.xlu0 %3935  ;;  %v3933_v24 = vunpack.i.h.bf16 %v3931_v17  ;;  %v3932_v26 = vunpack.i.l.bf16 %v3931_v17 }
0x1aef   : > { %v2633_v49 = vmul.f32 %v4119_v5, %v4107_v10  ;;  %v3938_v29 = vunpack.i.h.bf16 %v3936_v4  ;;  %v3937_v30 = vunpack.i.l.bf16 %v3936_v4 }
0x1af0   : > { %v4121_v36 = vpop.eup %4120  ;;  %v2749_v21 = vsel %vm652_vm1, %v4978_v55, %v3933_v24  ;;  %v2748_v11 = vsel %vm652_vm1, %v4974_v31, %v3932_v26 }
0x1af1   : > { %v2632_v15 = vmul.f32 %v4121_v36, %v4113_v46  ;;  %v2636_v51 = vpack.c.bf16 %v2634_v47, %v2633_v49  ;;  %v3941_v18 = vpop.permute.xlu1 %3940  ;;  %v2750_v42 = vsel %vm1399_vm2, %v2746_v40, %v3937_v30  ;;  %v2751_v32 = vsel %vm1399_vm2, %v2747_v34, %v3938_v29  ;;  %v3972_v29 = vld [vmem:[#allocation8 + $0x10] sm:$0xff]   ;;  %v3973_v30 = vld [vmem:[#allocation8 + $0x18] sm:$0xff]   ;;  %v3974_v34 = vld [vmem:[%s5231_s6 + $0x20] sm:$0xff]  }
0x1af2   : > { %v3943_v27 = vunpack.i.h.bf16 %v3941_v18  ;;  %v3942_v28 = vunpack.i.l.bf16 %v3941_v18  ;;  %3764 = vmatprep.subr.bf16.mxu1 %v3972_v29  ;;  %v3975_v40 = vld [vmem:[%s5231_s6 + $0x28] sm:$0xff]  }
0x1af3   : > { %v2635_v50 = vpack.c.bf16 %v2632_v15, %v2631_v48  ;;  %3765 = vmatpush3.bf16.msra.mxu1 %v3972_v29 }
0x1af4   : > { %v2752_v43 = vsel %vm1399_vm2, %v2748_v11, %v3942_v28  ;;  %v2753_v37 = vsel %vm1399_vm2, %v2749_v21, %v3943_v27  ;;  %3766 = vmatprep.subr.bf16.mxu1 %v3973_v30 }
0x1af5   : > { %3752 = vmatprep.mubr.msk.bf16.mxu0 %vm491_vm0, %v2635_v50 }
0x1af6   : > { %3753 = vmatmul.mubr.msk.bf16.vlgmr.msra.gmra.mrb[36].mxu0 %vm491_vm0, %v2636_v51 }
0x1af7   : > { %3757 = vmatpush3.bf16.msra.mxu0 %v3970_v57  ;;  %3767 = vmatpush3.bf16.msra.mxu1 %v3973_v30 }
0x1af8   : > { %3758 = vmatprep.subr.bf16.mxu0 %v3971_v0 }
0x1afb   : > { %3759 = vmatpush3.bf16.msra.mxu0 %v3971_v0 }
0x1afc   : > { %3772 = vmatprep.subr.bf16.mxu0 %v3974_v34 }
0x1bc9   : > { %v3754_v2 = vpop.f32.mrb[36].mxu0 }
0x1bca   : > { %v2683_v7 = vpop.f32.mrb[37].mxu0 }
0x1bcb   : > { %v3755_v8 = vpop.f32.mrb[38].mxu0 }
0x1bcc   : > { %v3949_v9 = vpack.i.bf16 %v3755_v8, %v3754_v2  ;;  %v2686_v13 = vpop.f32.mrb[39].mxu0 }
0x1bcd   : > { %v3944_v14 = vpack.i.bf16 %v2686_v13, %v2683_v7 }
0x1bce   : > { %3950 = vrot.lane.b32.xlu1 %v3949_v9, %s5265_s24 }
0x1bcf   : > { %3945 = vrot.lane.b32.xlu0 %v3944_v14, %s5265_s24 }
0x1c40   : > { %v3951_v54 = vpop.permute.xlu1 %3950 }
0x1c41   : > { %v3953_v10 = vunpack.i.h.bf16 %v3951_v54  ;;  %v3952_v41 = vunpack.i.l.bf16 %v3951_v54  ;;  %v3946_v52 = vpop.permute.xlu0 %3945 }
0x1c42   : > { %v3948_v12 = vunpack.i.h.bf16 %v3946_v52  ;;  %v3947_v46 = vunpack.i.l.bf16 %v3946_v52 }
0x1c43   : > { %v2756_v58 = vsel %vm1404_vm3, %v2752_v43, %v3952_v41  ;;  %v2757_v55 = vsel %vm1404_vm3, %v2753_v37, %v3953_v10 }
0x1c44   : > { %v2759_v60 = vpack.c.bf16 %v2757_v55, %v2756_v58  ;;  %v2754_v31 = vsel %vm1404_vm3, %v2750_v42, %v3947_v46  ;;  %v2755_v61 = vsel %vm1404_vm3, %v2751_v32, %v3948_v12  ;;  %v5118_v58 = vld [vmem:[%s5232_s7 + $0x10] sm:$0xff] }
0x1c45   : > { %v2758_v56 = vpack.c.bf16 %v2755_v61, %v2754_v31  ;;  %v2890_v55 = vrot.slane %v5118_v58, %v1541_v39 }
0x1c47   : > { %3760 = vmatprep.mubr.msk.bf16.mxu0 %vm491_vm0, %v2758_v56 }
0x1c48   : > { %3761 = vmatmul.mubr.msk.bf16.vlgmr.msra.gmra.mrb[40].mxu0 %vm491_vm0, %v2759_v60 }
0x1c49   : > { %3773 = vmatpush3.bf16.msra.mxu0 %v3974_v34 }
0x1c4a   : > { %3774 = vmatprep.subr.bf16.mxu0 %v3975_v40 }
0x1c4d   : > { %3775 = vmatpush3.bf16.msra.mxu0 %v3975_v40 }
0x1d1b   : > { %v3762_v63 = vpop.f32.mrb[40].mxu0 }
0x1d1c   : > { %v2816_v45 = vpop.f32.mrb[41].mxu0  ;;  %v2825_v62 = vadd.f32 %v3762_v63, %v2763_v59  ;;  %v2898_v63 = vrot.slane %v5118_v58, %v1549_v44  ;;  %v3976_v44 = vld [vmem:[%s5231_s6 + $0x30] sm:$0xff]  }
0x1d1d   : > { %v2817_v25 = vadd.f32 %v2816_v45, %v2763_v59  ;;  %v3763_v5 = vpop.f32.mrb[42].mxu0  ;;  %3776 = vmatprep.subr.bf16.mxu0 %v3976_v44 }
0x1d1e   : > { %v2819_v36 = vpop.f32.mrb[43].mxu0  ;;  %v2833_v15 = vadd.f32 %v2825_v62, %v4896_v35  ;;  %v2828_v49 = vadd.f32 %v3763_v5, %v2763_v59  ;;  %3777 = vmatpush3.bf16.msra.mxu0 %v3976_v44 }
0x1d1f   : > { %v2831_v47 = vadd.f32 %v2817_v25, %v4892_v33  ;;  %v2820_v48 = vadd.f32 %v2819_v36, %v2763_v59 }
0x1d20   : > { %v2834_v38 = vadd.f32 %v2828_v49, %v4902_v3  ;;  %v2841_v6 = vsel %vm491_vm0, %v2833_v15, 0.0 }
0x1d21   : > { %v2832_v50 = vadd.f32 %v2820_v48, %v4894_v53  ;;  %v2835_v51 = vsel %vm491_vm0, %v2831_v47, 0.0 }
0x1d22   : > { %2836 = vadd.xlane.f32.xlu0 %v2835_v51  ;;  %v2844_v0 = vsel %vm491_vm0, %v2834_v38, 0.0 }
0x1d23   : > { %v2838_v57 = vsel %vm491_vm0, %v2832_v50, 0.0 }
0x1d24   : > { %2839 = vadd.xlane.f32.xlu1 %v2838_v57 }
0x1d26   : > { %2842 = vadd.xlane.f32.xlu0 %v2841_v6  ;;  %v3438_v6 = vld [vmem:[%s5233_s8 + $0x1] ss:$0 sm:$0xff] }
0x1d2a   : > { %2845 = vadd.xlane.f32.xlu0 %v2844_v0 }
0x1daf   : > { %v2837_v33 = vpop.xlane.xlu0 %2836 }
0x1db0   : > { %v2847_v2 = vmul.f32 0.03125, %v2837_v33 }
0x1db1   : > { %v2840_v35 = vpop.xlane.xlu1 %2839 }
0x1db2   : > { %v2851_v7 = vsub.f32 %v2831_v47, %v2847_v2  ;;  %v2848_v8 = vmul.f32 0.03125, %v2840_v35 }
0x1db3   : > { %v2843_v53 = vpop.xlane.xlu0 %2842 }
0x1db4   : > { %v2852_v9 = vsub.f32 %v2832_v50, %v2848_v8  ;;  %v2849_v13 = vmul.f32 0.03125, %v2843_v53  ;;  %v2855_v14 = vmul.f32 %v2851_v7, %v2851_v7 }
0x1db6   : > { %v2853_v16 = vsub.f32 %v2833_v15, %v2849_v13  ;;  %v2859_v17 = vsel %vm491_vm0, %v2855_v14, 0.0  ;;  %v2856_v18 = vmul.f32 %v2852_v9, %v2852_v9 }
0x1db7   : > { %2860 = vadd.xlane.f32.xlu1 %v2859_v17  ;;  %v2846_v3 = vpop.xlane.xlu0 %2845 }
0x1db8   : > { %v2850_v19 = vmul.f32 0.03125, %v2846_v3  ;;  %v2862_v20 = vsel %vm491_vm0, %v2856_v18, 0.0  ;;  %v2857_v4 = vmul.f32 %v2853_v16, %v2853_v16 }
0x1db9   : > { %2863 = vadd.xlane.f32.xlu0 %v2862_v20 }
0x1dba   : > { %v2854_v24 = vsub.f32 %v2834_v38, %v2850_v19  ;;  %v2865_v26 = vsel %vm491_vm0, %v2857_v4, 0.0  ;;  %v3977_v38 = vld [vmem:[%s5231_s6 + $0x38] sm:$0xff]   ;;  %v2987_v19 = vrot.slane %v5118_v58, %v1638_v23 }
0x1dbb   : > { %2866 = vadd.xlane.f32.xlu1 %v2865_v26  ;;  %3778 = vmatprep.subr.bf16.mxu0 %v3977_v38 }
0x1dbc   : > { %v2858_v27 = vmul.f32 %v2854_v24, %v2854_v24  ;;  %3779 = vmatpush3.bf16.msra.mxu0 %v3977_v38 }
0x1dbe   : > { %v2868_v28 = vsel %vm491_vm0, %v2858_v27, 0.0 }
0x1dbf   : > { %2869 = vadd.xlane.f32.xlu0 %v2868_v28 }
0x1e44   : > { %v2861_v54 = vpop.xlane.xlu1 %2860 }
0x1e45   : > { %v2871_v21 = vmul.f32 0.03125, %v2861_v54 }
0x1e46   : > { %v2864_v11 = vpop.xlane.xlu0 %2863 }
0x1e47   : > { %v2875_v10 = vadd.f32 1e-05, %v2871_v21  ;;  %v2872_v41 = vmul.f32 0.03125, %v2864_v11 }
0x1e48   : > { %v2867_v52 = vpop.xlane.xlu1 %2866 }
0x1e49   : > { %4122 = vrsqrt.f32 %v2875_v10  ;;  %v2876_v43 = vadd.f32 1e-05, %v2872_v41  ;;  %v2873_v37 = vmul.f32 0.03125, %v2867_v52 }
0x1e4b   : > { %4124 = vrsqrt.f32 %v2876_v43  ;;  %v2877_v12 = vadd.f32 1e-05, %v2873_v37 }
0x1e4c   : > { %v2870_v46 = vpop.xlane.xlu0 %2869 }
0x1e4d   : > { %4126 = vrsqrt.f32 %v2877_v12  ;;  %v2874_v42 = vmul.f32 0.03125, %v2870_v46 }
0x1e4f   : > { %v2878_v32 = vadd.f32 1e-05, %v2874_v42 }
0x1e51   : > { %4128 = vrsqrt.f32 %v2878_v32 }
0x1e53   : > { %v4123_v60 = vpop.eup %4122 }
0x1e54   : > { %v2883_v31 = vmul.f32 %v4123_v60, %v2851_v7 }
0x1e55   : > { %v4125_v61 = vpop.eup %4124 }
0x1e56   : > { %v2884_v56 = vmul.f32 %v4125_v61, %v2852_v9  ;;  %v2891_v59 = vmul.f32 %v2890_v55, %v2883_v31 }
0x1e57   : > { %v4127_v45 = vpop.eup %4126 }
0x1e58   : > { %v2885_v62 = vmul.f32 %v4127_v45, %v2853_v16  ;;  %v2892_v25 = vmul.f32 %v2890_v55, %v2884_v56  ;;  %v2899_v5 = vadd.f32 %v2898_v63, %v2891_v59 }
0x1e5a   : > { %v2900_v36 = vadd.f32 %v2898_v63, %v2892_v25  ;;  %v2893_v48 = vmul.f32 %v2890_v55, %v2885_v62 }
0x1e5b   : > { %v4129_v47 = vpop.eup %4128 }
0x1e5c   : > { %v2886_v15 = vmul.f32 %v4129_v47, %v2854_v24  ;;  %v2903_v49 = vpack.c.bf16 %v2900_v36, %v2899_v5  ;;  %v2901_v39 = vadd.f32 %v2898_v63, %v2893_v48 }
0x1e5e   : > { %v2894_v50 = vmul.f32 %v2890_v55, %v2886_v15  ;;  %3768 = vmatprep.mubr.msk.bf16.mxu1 %vm491_vm0, %v2903_v49 }
0x1e60   : > { %v2902_v51 = vadd.f32 %v2898_v63, %v2894_v50 }
0x1e62   : > { %v2904_v57 = vpack.c.bf16 %v2902_v51, %v2901_v39 }
0x1e64   : > { %3769 = vmatmul.mubr.msk.bf16.vlgmr.msra.gmra.mrb[52].mxu1 %vm491_vm0, %v2904_v57 }
0x1f37   : > { %v3770_v0 = vpop.f32.mrb[52].mxu1 }
0x1f38   : > { %v2972_v33 = vadd.f32 %v3770_v0, %v3438_v6  ;;  %v2963_v2 = vpop.f32.mrb[53].mxu1 }
0x1f39   : > { %v2964_v35 = vadd.f32 %v3438_v6, %v2963_v2  ;;  %v3771_v7 = vpop.f32.mrb[54].mxu1  ;;  %v3126_v2 = vrot.slane %v5118_v58, %v1778_v22 }
0x1f3a   : > { %v2975_v8 = vadd.f32 %v3771_v7, %v3438_v6  ;;  %v2966_v53 = vpop.f32.mrb[55].mxu1  ;;  %v2980_v13 = vmax.f32 %v2972_v33, 0.0 }
0x1f3b   : > { %v2967_v9 = vadd.f32 %v3438_v6, %v2966_v53  ;;  %v2978_v16 = vmax.f32 %v2964_v35, 0.0  ;;  %v3449_v53 = vld [vmem:[%s5232_s7 + $0x18] ss:$0 sm:$0xff] }
0x1f3c   : > { %v2981_v14 = vmax.f32 %v2975_v8, 0.0 }
0x1f3d   : > { %v2979_v17 = vmax.f32 %v2967_v9, 0.0 }
0x1f3e   : > { %v2983_v18 = vpack.c.bf16 %v2981_v14, %v2980_v13 }
0x1f3f   : > { %v2982_v3 = vpack.c.bf16 %v2979_v17, %v2978_v16 }
0x1f41   : > { %3780 = vmatprep.mubr.msk.bf16.mxu0 %vm1664_vm4, %v2982_v3 }
0x1f42   : > { %3781 = vmatmul.mubr.msk.bf16.vlgmr.msra.gmra.mrb[44].mxu0 %vm1664_vm4, %v2983_v18 }
0x2015   : > { %v3782_v20 = vpop.f32.mrb[44].mxu0 }
0x2016   : > { %v3052_v4 = vpop.f32.mrb[45].mxu0  ;;  %v3061_v24 = vadd.f32 %v3782_v20, %v2987_v19 }
0x2017   : > { %v3053_v26 = vadd.f32 %v3052_v4, %v2987_v19  ;;  %v3783_v27 = vpop.f32.mrb[46].mxu0 }
0x2018   : > { %v3055_v28 = vpop.f32.mrb[47].mxu0  ;;  %v3064_v30 = vadd.f32 %v3783_v27, %v2987_v19  ;;  %v3069_v40 = vadd.f32 %v3061_v24, %v2901_v39 }
0x2019   : > { %v3067_v29 = vadd.f32 %v3053_v26, %v2899_v5  ;;  %v3056_v34 = vadd.f32 %v3055_v28, %v2987_v19 }
0x201a   : > { %v3070_v11 = vadd.f32 %v3064_v30, %v2902_v51  ;;  %v3077_v23 = vsel %vm491_vm0, %v3069_v40, 0.0 }
0x201b   : > { %v3068_v54 = vadd.f32 %v3056_v34, %v2900_v36  ;;  %v3071_v21 = vsel %vm491_vm0, %v3067_v29, 0.0 }
0x201c   : > { %3072 = vadd.xlane.f32.xlu1 %v3071_v21  ;;  %v3080_v41 = vsel %vm491_vm0, %v3070_v11, 0.0 }
0x201d   : > { %v3074_v10 = vsel %vm491_vm0, %v3068_v54, 0.0 }
0x201e   : > { %3075 = vadd.xlane.f32.xlu0 %v3074_v10 }
0x2020   : > { %3078 = vadd.xlane.f32.xlu1 %v3077_v23 }
0x2022   : > { %3081 = vadd.xlane.f32.xlu0 %v3080_v41 }
0x20a9   : > { %v3073_v52 = vpop.xlane.xlu1 %3072 }
0x20aa   : > { %v3083_v43 = vmul.f32 0.03125, %v3073_v52 }
0x20ab   : > { %v3076_v37 = vpop.xlane.xlu0 %3075 }
0x20ac   : > { %v3087_v12 = vsub.f32 %v3067_v29, %v3083_v43  ;;  %v3084_v46 = vmul.f32 0.03125, %v3076_v37 }
0x20ad   : > { %v3079_v42 = vpop.xlane.xlu1 %3078 }
0x20ae   : > { %v3088_v32 = vsub.f32 %v3068_v54, %v3084_v46  ;;  %v3085_v55 = vmul.f32 0.03125, %v3079_v42  ;;  %v3091_v60 = vmul.f32 %v3087_v12, %v3087_v12 }
0x20af   : > { %v3082_v31 = vpop.xlane.xlu0 %3081 }
0x20b0   : > { %v3089_v61 = vsub.f32 %v3069_v40, %v3085_v55  ;;  %v3086_v56 = vmul.f32 0.03125, %v3082_v31  ;;  %v3095_v59 = vsel %vm491_vm0, %v3091_v60, 0.0  ;;  %v3092_v63 = vmul.f32 %v3088_v32, %v3088_v32 }
0x20b1   : > { %3096 = vadd.xlane.f32.xlu1 %v3095_v59 }
0x20b2   : > { %v3090_v45 = vsub.f32 %v3070_v11, %v3086_v56  ;;  %v3098_v62 = vsel %vm491_vm0, %v3092_v63, 0.0  ;;  %v3093_v25 = vmul.f32 %v3089_v61, %v3089_v61 }
0x20b3   : > { %3099 = vadd.xlane.f32.xlu0 %v3098_v62 }
0x20b4   : > { %v3101_v5 = vsel %vm491_vm0, %v3093_v25, 0.0  ;;  %v3094_v36 = vmul.f32 %v3090_v45, %v3090_v45 }
0x20b5   : > { %3102 = vadd.xlane.f32.xlu1 %v3101_v5 }
0x20b6   : > { %v3104_v47 = vsel %vm491_vm0, %v3094_v36, 0.0 }
0x20b7   : > { %3105 = vadd.xlane.f32.xlu0 %v3104_v47 }
0x213e   : > { %v3097_v48 = vpop.xlane.xlu1 %3096 }
0x213f   : > { %v3107_v15 = vmul.f32 0.03125, %v3097_v48 }
0x2140   : > { %v3100_v49 = vpop.xlane.xlu0 %3099 }
0x2141   : > { %v3111_v50 = vadd.f32 1e-05, %v3107_v15  ;;  %v3108_v39 = vmul.f32 0.03125, %v3100_v49 }
0x2142   : > { %v3103_v51 = vpop.xlane.xlu1 %3102 }
0x2143   : > { %4130 = vrsqrt.f32 %v3111_v50  ;;  %v3112_v57 = vadd.f32 1e-05, %v3108_v39  ;;  %v3109_v44 = vmul.f32 0.03125, %v3103_v51  ;;  %v3450_v50 = vld [vmem:[%s5234_s9] ss:$0 sm:$0xff] }
0x2144   : > { %v3106_v38 = vpop.xlane.xlu0 %3105 }
0x2145   : > { %4132 = vrsqrt.f32 %v3112_v57  ;;  %v3113_v6 = vadd.f32 1e-05, %v3109_v44  ;;  %v3110_v0 = vmul.f32 0.03125, %v3106_v38  ;;  %v3451_v57 = vld [vmem:[%s5234_s9 + $0x1] ss:$0 sm:$0xff] }
0x2147   : > { %4134 = vrsqrt.f32 %v3113_v6  ;;  %v3114_v33 = vadd.f32 1e-05, %v3110_v0 }
0x2149   : > { %4136 = vrsqrt.f32 %v3114_v33 }
0x214d   : > { %v4131_v35 = vpop.eup %4130 }
0x214e   : > { %v3119_v7 = vmul.f32 %v4131_v35, %v3087_v12 }
0x214f   : > { %v4133_v8 = vpop.eup %4132 }
0x2150   : > { %v3127_v9 = vmul.f32 %v3126_v2, %v3119_v7  ;;  %v3120_v13 = vmul.f32 %v4133_v8, %v3088_v32 }
0x2151   : > { %v4135_v14 = vpop.eup %4134 }
0x2152   : > { %v3135_v16 = vadd.f32 %v3449_v53, %v3127_v9  ;;  %v3128_v17 = vmul.f32 %v3126_v2, %v3120_v13  ;;  %v3121_v18 = vmul.f32 %v4135_v14, %v3089_v61 }
0x2153   : > { %v4137_v3 = vpop.eup %4136 }
0x2154   : > { %v3141_v19 = vsel %vm491_vm0, %v3135_v16, 0.0  ;;  %v3136_v20 = vadd.f32 %v3449_v53, %v3128_v17  ;;  %v3129_v1 = vmul.f32 %v3126_v2, %v3121_v18  ;;  %v3122_v4 = vmul.f32 %v4137_v3, %v3090_v45 }
0x2155   : > { %3142 = vadd.xlane.f32.xlu1 %v3141_v19 }
0x2156   : > { %v3144_v22 = vsel %vm491_vm0, %v3136_v20, 0.0  ;;  %v3137_v58 = vadd.f32 %v3449_v53, %v3129_v1  ;;  %v3130_v24 = vmul.f32 %v3126_v2, %v3122_v4 }
0x2157   : > { %3145 = vadd.xlane.f32.xlu0 %v3144_v22 }
0x2158   : > { %v3147_v26 = vsel %vm491_vm0, %v3137_v58, 0.0  ;;  %v3138_v27 = vadd.f32 %v3449_v53, %v3130_v24 }
0x2159   : > { %3148 = vadd.xlane.f32.xlu1 %v3147_v26 }
0x215a   : > { %v3150_v28 = vsel %vm491_vm0, %v3138_v27, 0.0 }
0x215b   : > { %3151 = vadd.xlane.f32.xlu0 %v3150_v28 }
0x21e2   : > { %v3143_v29 = vpop.xlane.xlu1 %3142 }
0x21e3   : > { %v3153_v30 = vmul.f32 0.03125, %v3143_v29 }
0x21e4   : > { %v3146_v34 = vpop.xlane.xlu0 %3145 }
0x21e5   : > { %v3157_v40 = vsub.f32 %v3135_v16, %v3153_v30  ;;  %v3154_v54 = vmul.f32 0.03125, %v3146_v34 }
0x21e6   : > { %v3149_v21 = vpop.xlane.xlu1 %3148 }
0x21e7   : > { %v3158_v11 = vsub.f32 %v3136_v20, %v3154_v54  ;;  %v3155_v10 = vmul.f32 0.03125, %v3149_v21  ;;  %v3161_v23 = vmul.f32 %v3157_v40, %v3157_v40 }
0x21e8   : > { %v3152_v41 = vpop.xlane.xlu0 %3151 }
0x21e9   : > { %v3159_v52 = vsub.f32 %v3137_v58, %v3155_v10  ;;  %v3156_v43 = vmul.f32 0.03125, %v3152_v41  ;;  %v3165_v37 = vsel %vm491_vm0, %v3161_v23, 0.0  ;;  %v3162_v12 = vmul.f32 %v3158_v11, %v3158_v11 }
0x21ea   : > { %3166 = vadd.xlane.f32.xlu1 %v3165_v37 }
0x21eb   : > { %v3160_v46 = vsub.f32 %v3138_v27, %v3156_v43  ;;  %v3168_v42 = vsel %vm491_vm0, %v3162_v12, 0.0  ;;  %v3163_v32 = vmul.f32 %v3159_v52, %v3159_v52 }
0x21ec   : > { %3169 = vadd.xlane.f32.xlu0 %v3168_v42 }
0x21ed   : > { %v3171_v55 = vsel %vm491_vm0, %v3163_v32, 0.0  ;;  %v3164_v60 = vmul.f32 %v3160_v46, %v3160_v46 }
0x21ee   : > { %3172 = vadd.xlane.f32.xlu1 %v3171_v55 }
0x21ef   : > { %v3174_v31 = vsel %vm491_vm0, %v3164_v60, 0.0 }
0x21f0   : > { %3175 = vadd.xlane.f32.xlu0 %v3174_v31 }
0x2277   : > { %v3167_v61 = vpop.xlane.xlu1 %3166 }
0x2278   : > { %v3177_v56 = vmul.f32 0.03125, %v3167_v61 }
0x2279   : > { %v3170_v59 = vpop.xlane.xlu0 %3169 }
0x227a   : > { %v3181_v63 = vadd.f32 1e-05, %v3177_v56  ;;  %v3178_v45 = vmul.f32 0.03125, %v3170_v59 }
0x227b   : > { %v3173_v62 = vpop.xlane.xlu1 %3172 }
0x227c   : > { %4138 = vrsqrt.f32 %v3181_v63  ;;  %v3182_v25 = vadd.f32 1e-05, %v3178_v45  ;;  %v3179_v5 = vmul.f32 0.03125, %v3173_v62 }
0x227d   : > { %v3176_v36 = vpop.xlane.xlu0 %3175 }
0x227e   : > { %4140 = vrsqrt.f32 %v3182_v25  ;;  %v3183_v47 = vadd.f32 1e-05, %v3179_v5  ;;  %v3180_v48 = vmul.f32 0.03125, %v3176_v36 }
0x2280   : > { %4142 = vrsqrt.f32 %v3183_v47  ;;  %v3184_v15 = vadd.f32 1e-05, %v3180_v48 }
0x2282   : > { %4144 = vrsqrt.f32 %v3184_v15 }
0x2286   : > { %v4139_v49 = vpop.eup %4138 }
0x2287   : > { %v3189_v39 = vmul.f32 %v4139_v49, %v3157_v40 }
0x2288   : > { %v4141_v51 = vpop.eup %4140 }
0x2289   : > { %v3197_v44 = vmul.f32 %v3450_v50, %v3189_v39  ;;  %v3190_v38 = vmul.f32 %v4141_v51, %v3158_v11 }
0x228a   : > { %v4143_v6 = vpop.eup %4142 }
0x228b   : > { %v3205_v0 = vadd.f32 %v3451_v57, %v3197_v44  ;;  %v3198_v33 = vmul.f32 %v3450_v50, %v3190_v38  ;;  %v3191_v2 = vmul.f32 %v4143_v6, %v3159_v52 }
0x228c   : > { %v4145_v35 = vpop.eup %4144 }
0x228d   : > { %v3206_v7 = vadd.f32 %v3451_v57, %v3198_v33  ;;  %v3199_v8 = vmul.f32 %v3450_v50, %v3191_v2  ;;  %3209 = vst.msk [vmem:[%s426_s30] sm:$0xff] %vm491_vm0, %v3205_v0  ;;  %v3192_v53 = vmul.f32 %v4145_v35, %v3160_v46 }
0x228f   : > { %v3207_v9 = vadd.f32 %v3451_v57, %v3199_v8  ;;  %3210 = vst.msk [vmem:[%s426_s30 + $0x8] sm:$0xff] %vm491_vm0, %v3206_v7  ;;  %v3200_v13 = vmul.f32 %v3450_v50, %v3192_v53 }
0x2291   : > { %3211 = vst.msk [vmem:[%s426_s30 + $0x10] sm:$0xff] %vm491_vm0, %v3207_v9  ;;  %v3208_v14 = vadd.f32 %v3451_v57, %v3200_v13 }
0x2293   : > { %3212 = vst.msk [vmem:[%s426_s30 + $0x18] sm:$0xff] %vm491_vm0, %v3208_v14 }
0x2294   : > { %4281 = shalt.err (!%p4278_p0)
}
0x2295   : > { %s4282_s19 = scalar_lea.hbm %s5177_s26, 512  ;;  %s4286_s22 = scalar_lea.hbm %s5235_s10, 1024 }
0x2296   : > { %p4283_p10 = scmp.ne.s32.totalorder %s5177_s26, %s4282_s19  ;;  %p4287_p4 = scmp.lt.u32.totalorder %s5177_s26, %s5235_s10 }
0x2297   : > { %p4288_p12 = scmp.lt.u32.totalorder %s4286_s22, %s4282_s19  ;;  %p4290_p8 = scmp.lt.u32.totalorder %s4282_s19, %s5177_s26 }
0x2298   : > { %p4284_p2 = pnand %p4283_p10, %p5266_p11 }
0x2299   : > { %p4289_p7 = por %p4288_p12, %p4287_p4 }
0x229a   : > { %p4285_p3 = pneg %p4284_p2 }
0x229b   : > { %p4291_p13 = por %p4290_p8, %p4289_p7 }
0x229d   : > { %p4292_p1 = pnand %p4291_p13, %p4285_p3 }
0x229f   : > { %4295 = shalt.err (!%p4292_p1)
}
0x22a0   : > { %s4362_s30 = smov 128  }
0x22a1   : > { %3816 = dma.vmem_to_hbm [thread:$0]  (%p5266_p11), %s5180_s15, 512, %s5177_s26, %s5183_s17, %s4362_s30, %s4362_s30, %s4358_s25  }
0x22a2 PF: > { %s5267_s13 = sld [smem:[#allocation17_spill]]  ;;  %s5268_s28 = sld [smem:[#allocation15_spill]] }
0x22a3   : > { %s5269_s21 = sld [smem:[#allocation20_spill]] }
0x22a8   : > { %p3843_p6 = scmp.ge.s32.totalorder %s5267_s13, 2  ;;  %s3242_s20 = sand.u32 1, %s5268_s28  }
0x22a9   : > { %p5270_p9 = scmp.ne.s32.totalorder %s5269_s21, 0  ;;  %s3243_s18 = scalar_lea.sflag [#allocation4], %s3242_s20 }
0x22ab   : > { %p3832_p5 = pnand %p3843_p6, %p5270_p9 }
0x22ad   : > { %4325 = dma.done.wait (!%p3832_p5), %s3243_s18, 512  }
0x22ae   : > { %4327 = vsyncadd (!%p3832_p5), %s3243_s18, 4294966784  ;;  %s5271_s16 = sld [smem:[#allocation18_spill]]  ;;  %s5272_s29 = sld [smem:[#allocation16_spill]] }
0x22af   : > { %s5273_s15 = sld [smem:[#allocation19_spill]]  ;;  %s5274_s13 = smov %s4334_s14 }
0x22b4   : > { %p23_p0 = scmp.ge.s32.totalorder %s5271_s16, 4   ;;  %s5275_s14 = smov %s5272_s29 }
0x22b6   :  { %25 = sbr.rel (!%p23_p0) target bundleno = 6 (0x6), region = 122 }
0x22bd   :  { %3248 = vsyncpa [#allocation3], 1 }
0x22be   :  { %3250 = vsyncpa [#allocation3 + $0x1], 1 }
0x22bf   :  { %3251 = vsyncpa [#allocation6], 1 }
0x22c0   :  { %3252 = vsyncpa [#allocation9], 1 }
0x22c1   :  { %3253 = vsyncpa [#allocation4], 1 }
0x22c2   :  { %3255 = vsyncpa [#allocation4 + $0x1], 1 }

</bundles_post_ra>
